<compile_context>
chip_gen: v7x
topology: tpu7x:2x2x1
jax: 0.10.0
libtpu: 0.0.40
codegen_flags: <defaults>
</compile_context>

<pallas_src>
import functools
import math

import jax
import jax.numpy as jnp
from jax.experimental import pallas as pl
from jax.experimental.pallas import tpu as pltpu

_BN_EPS = 1e-5


# ----------------------------------------------------------------------------
# Fully fused BasicBlock kernel (one grid step == one image)
# ----------------------------------------------------------------------------
def _basic_block_kernel(x_ref, w1_ref, b1_ref, w2_ref, b2_ref, *rest,
                        stride, Ho, Wo, has_down):
    """x_ref : (s*s, Hq, Wq, Cin) bf16  phase-split padded input
       w1_ref: (9, Cin, P) bf16 ; b1_ref: (1, P) f32   (BN folded)
       w2_ref: (9, P,   P) bf16 ; b2_ref: (1, P) f32   (BN folded)
       rest  : [wd_ref (1,Cin,P) bf16, bd_ref (1,P) f32,]  o_ref (1,Ho*Wo,P) bf16,
               mid_ref (Ho+2, Wo+2, P) bf16 VMEM scratch."""
    if has_down:
        wd_ref, bd_ref, o_ref, mid_ref = rest
    else:
        o_ref, mid_ref = rest

    s = stride
    Cin = w1_ref.shape[1]
    P = w1_ref.shape[2]
    M = Ho * Wo
    taps = tuple((ih, iw) for ih in range(3) for iw in range(3))

    # ---- conv1 (3x3, stride s, pad 1) + bn1 bias + ReLU (9 MXU matmuls) ----
    acc1 = None
    a_center = None                       # == x[i*s, j*s, :]; reused by residual branch
    for t, (ih, iw) in enumerate(taps):   # statically unrolled
        ph, pw = ih % s, iw % s
        oh, ow = ih // s, iw // s
        a = x_ref[ph * s + pw, oh:oh + Ho, ow:ow + Wo, :].reshape(M, Cin)
        if (ih, iw) == (1, 1):
            a_center = a
        d = jnp.dot(a, w1_ref[t], preferred_element_type=jnp.float32)
        acc1 = d if acc1 is None else acc1 + d
    y1 = jnp.maximum(acc1 + b1_ref[...], 0.0)                         # (M, P) f32

    # ---- residual branch: 1x1 conv + bn (downsample) or identity -----------
    if has_down:
        resid = (jnp.dot(a_center, wd_ref[0], preferred_element_type=jnp.float32)
                 + bd_ref[...])
    else:
        resid = a_center.astype(jnp.float32)                          # Cin == P, s == 1

    # ---- stage conv1 output zero-padded in VMEM (no HBM round-trip) --------
    mid_ref[...] = jnp.zeros_like(mid_ref)
    mid_ref[1:1 + Ho, 1:1 + Wo, :] = y1.reshape(Ho, Wo, P).astype(mid_ref.dtype)

    # ---- conv2 (3x3, stride 1, pad 1) + bn2 bias + residual + ReLU ---------
    acc2 = None
    for t, (ih, iw) in enumerate(taps):
        a = mid_ref[ih:ih + Ho, iw:iw + Wo, :].reshape(M, P)
        d = jnp.dot(a, w2_ref[t], preferred_element_type=jnp.float32)
        acc2 = d if acc2 is None else acc2 + d
    y = jnp.maximum(acc2 + b2_ref[...] + resid, 0.0)
    o_ref[0] = y.astype(o_ref.dtype)


def basic_block_forward(x, fused):
    """x: (B, H, W, Cin) bf16 NHWC.  Returns (B, Ho, Wo, planes) bf16."""
    s = fused['stride']
    c1, c2 = fused['conv1'], fused['conv2']
    has_down = 'down' in fused

    B, H, W, Cin = x.shape
    P = c1['w'].shape[-1]
    pad = 1
    Ho = (H + 2 * pad - 3) // s + 1
    Wo = (W + 2 * pad - 3) // s + 1
    M = Ho * Wo
    # TODO(synk): general Wo handled only when it is sublane-aligned (true for all shapes
    #             used here); otherwise the in-kernel reshapes would relayout.
    assert Wo % 8 == 0, "output width must be a multiple of 8 (sublane) for this kernel"
    if not has_down:
        assert s == 1 and Cin == P, "identity residual requires stride 1 and Cin == planes"

    # Phase-split padded input: x_phase[b, ph*s+pw, i, j, c] == x_pad[b, i*s+ph, j*s+pw, c]
    Hq = max(-(-(H + 2 * pad) // s), (3 - 1) // s + Ho)
    Wq = max(-(-(W + 2 * pad) // s), (3 - 1) // s + Wo)
    xp = jnp.pad(x, ((0, 0),
                     (pad, Hq * s - H - pad),
                     (pad, Wq * s - W - pad),
                     (0, 0)))
    if s > 1:
        xp = xp.reshape(B, Hq, s, Wq, s, Cin)
        xp = xp.transpose(0, 2, 4, 1, 3, 5).reshape(B * s * s, Hq, Wq, Cin)
    # (for s == 1 the phase tensor is just the padded input, leading dim B)

    args = [xp, c1['w'], c1['b'], c2['w'], c2['b']]
    in_specs = [
        pl.BlockSpec((s * s, Hq, Wq, Cin), lambda b: (b, 0, 0, 0)),
        pl.BlockSpec((9, Cin, P), lambda b: (0, 0, 0)),
        pl.BlockSpec((1, P), lambda b: (0, 0)),
        pl.BlockSpec((9, P, P), lambda b: (0, 0, 0)),
        pl.BlockSpec((1, P), lambda b: (0, 0)),
    ]
    if has_down:
        d = fused['down']
        args += [d['w'], d['b']]
        in_specs += [
            pl.BlockSpec((1, Cin, P), lambda b: (0, 0, 0)),
            pl.BlockSpec((1, P), lambda b: (0, 0)),
        ]

    kern = functools.partial(_basic_block_kernel, stride=s, Ho=Ho, Wo=Wo,
                             has_down=has_down)
    out = pl.pallas_call(
        kern,
        out_shape=jax.ShapeDtypeStruct((B, M, P), jnp.bfloat16),
        grid_spec=pltpu.PrefetchScalarGridSpec(
            num_scalar_prefetch=0,
            grid=(B,),
            in_specs=in_specs,
            out_specs=pl.BlockSpec((1, M, P), lambda b: (b, 0, 0)),
            scratch_shapes=[pltpu.VMEM((Ho + 2, Wo + 2, P), jnp.bfloat16)]),
        compiler_params=pltpu.CompilerParams(
            dimension_semantics=("parallel",)),
    )(*args)
    return out.reshape(B, Ho, Wo, P)


# ----------------------------------------------------------------------------
# Parameter construction + one-time BN folding (pure preprocessing)
# ----------------------------------------------------------------------------
def _fold_bn_into_conv(w_oihw, bn, eps=_BN_EPS):
    """Return folded bf16 weights (kh*kw, Cin, Cout) and f32 bias (1, Cout)."""
    scale = bn['gamma'] / jnp.sqrt(bn['var'] + eps)          # (Cout,)
    bias = bn['beta'] - bn['mean'] * scale                   # (Cout,)
    cout, cin, kh, kw = w_oihw.shape
    wf = (jnp.transpose(w_oihw, (2, 3, 1, 0)) * scale)       # (kh, kw, Cin, Cout)
    wf = wf.reshape(kh * kw, cin, cout).astype(jnp.bfloat16)
    return dict(w=wf, b=bias.reshape(1, cout).astype(jnp.float32))


def make_basic_block_params(key, inplanes, planes, stride=1):
    ks = jax.random.split(key, 6)

    def conv_w(k, cout, cin, ksz):
        fan_in = cin * ksz * ksz
        return jax.random.normal(k, (cout, cin, ksz, ksz), jnp.float32) / math.sqrt(fan_in)

    def bn_p(k, c):
        k1, k2, k3, k4 = jax.random.split(k, 4)
        return dict(gamma=jax.random.uniform(k1, (c,), jnp.float32, 0.5, 1.5),
                    beta=jax.random.normal(k2, (c,), jnp.float32) * 0.1,
                    mean=jax.random.normal(k3, (c,), jnp.float32) * 0.1,
                    var=jax.random.uniform(k4, (c,), jnp.float32, 0.5, 1.5))

    raw = dict(stride=stride,
               conv1=conv_w(ks[0], planes, inplanes, 3), bn1=bn_p(ks[1], planes),
               conv2=conv_w(ks[2], planes, planes, 3), bn2=bn_p(ks[3], planes))
    if stride != 1 or inplanes != planes:                    # downsample = 1x1 conv + BN
        raw['down_conv'] = conv_w(ks[4], planes, inplanes, 1)
        raw['down_bn'] = bn_p(ks[5], planes)

    fused = dict(stride=stride,
                 conv1=_fold_bn_into_conv(raw['conv1'], raw['bn1']),
                 conv2=_fold_bn_into_conv(raw['conv2'], raw['bn2']))
    if 'down_conv' in raw:
        fused['down'] = _fold_bn_into_conv(raw['down_conv'], raw['down_bn'])
    return raw, fused


# ----------------------------------------------------------------------------
# Pure-JAX f32 reference (matches the PyTorch BasicBlock forward in eval mode)
# ----------------------------------------------------------------------------
def _ref_conv(x, w_oihw, stride, pad):
    return jax.lax.conv_general_dilated(
        x, jnp.transpose(w_oihw, (2, 3, 1, 0)),
        window_strides=(stride, stride),
        padding=((pad, pad), (pad, pad)),
        dimension_numbers=("NHWC", "HWIO", "NHWC"))


def _ref_bn(x, bn, eps=_BN_EPS):
    return (x - bn['mean']) * (bn['gamma'] / jnp.sqrt(bn['var'] + eps)) + bn['beta']


def _ref_basic_block(x, raw):
    out = jax.nn.relu(_ref_bn(_ref_conv(x, raw['conv1'], raw['stride'], 1), raw['bn1']))
    out = _ref_bn(_ref_conv(out, raw['conv2'], 1, 1), raw['bn2'])
    if 'down_conv' in raw:
        identity = _ref_bn(_ref_conv(x, raw['down_conv'], raw['stride'], 0), raw['down_bn'])
    else:
        identity = x
    return jax.nn.relu(out + identity)


# ----------------------------------------------------------------------------
if __name__ == "__main__":
    key = jax.random.PRNGKey(0)
    k1, k2, kx = jax.random.split(key, 3)

    B, Cin, H, W = 2, 32, 16, 16
    # block1: stride-2 with 1x1 downsample;  block2: stride-1 identity residual
    raw1, fused1 = make_basic_block_params(k1, Cin, 64, stride=2)
    raw2, fused2 = make_basic_block_params(k2, 64, 64, stride=1)

    x_nchw = jax.random.normal(kx, (B, Cin, H, W), jnp.float32)
    x_nhwc = jnp.transpose(x_nchw, (0, 2, 3, 1))             # layout: NCHW -> NHWC

    @jax.jit
    def pallas_forward(xin):
        a = basic_block_forward(xin.astype(jnp.bfloat16), fused1)
        a = basic_block_forward(a, fused2)
        return a

    y = jax.block_until_ready(pallas_forward(x_nhwc))
    assert y.shape == (B, H // 2, W // 2, 64)

    # f32 reference check (bf16 MXU inputs -> loose tolerance)
    r = _ref_basic_block(x_nhwc, raw1)
    r = jax.block_until_ready(_ref_basic_block(r, raw2))
    err = float(jnp.max(jnp.abs(y.astype(jnp.float32) - r)))
    scale = float(jnp.max(jnp.abs(r)))
    assert err <= 0.06 * scale + 0.1, f"mismatch: max_err={err}, max_ref={scale}"

    out_nchw = jnp.transpose(y.astype(jnp.float32), (0, 3, 1, 2))   # back to NCHW
    assert out_nchw.shape == (B, 64, H // 2, W // 2)
    print("KERNEL_OK")
</pallas_src>

<mosaic_0001>
module attributes {stable_mosaic.version = 11 : i64} {
  func.func @_basic_block_kernel(%arg0: i32, %arg1: memref<4x9x9x32xbf16, #tpu.memory_space<vmem>>, %arg2: memref<9x32x64xbf16, #tpu.memory_space<vmem>>, %arg3: memref<1x64xf32, #tpu.memory_space<vmem>>, %arg4: memref<9x64x64xbf16, #tpu.memory_space<vmem>>, %arg5: memref<1x64xf32, #tpu.memory_space<vmem>>, %arg6: memref<1x32x64xbf16, #tpu.memory_space<vmem>>, %arg7: memref<1x64xf32, #tpu.memory_space<vmem>>, %arg8: memref<1x64x64xbf16, #tpu.memory_space<vmem>>, %arg9: memref<10x10x64xbf16, #tpu.memory_space<vmem>>) attributes {dimension_semantics = [#tpu.dimension_semantics<parallel>], iteration_bounds = array<i64: 2>, scalar_prefetch = 0 : i64, scratch_operands = 1 : i64, tpu.core_type = #tpu.core_type<tc>, window_params = [{transform_indices = @transform_0, window_bounds = array<i64: 4, 9, 9, 32>}, {pipeline_mode = #tpu.pipeline_mode<synchronous>, transform_indices = @transform_1, window_bounds = array<i64: 9, 32, 64>}, {pipeline_mode = #tpu.pipeline_mode<synchronous>, transform_indices = @transform_2, window_bounds = array<i64: 1, 64>}, {pipeline_mode = #tpu.pipeline_mode<synchronous>, transform_indices = @transform_3, window_bounds = array<i64: 9, 64, 64>}, {pipeline_mode = #tpu.pipeline_mode<synchronous>, transform_indices = @transform_4, window_bounds = array<i64: 1, 64>}, {pipeline_mode = #tpu.pipeline_mode<synchronous>, transform_indices = @transform_5, window_bounds = array<i64: 1, 32, 64>}, {pipeline_mode = #tpu.pipeline_mode<synchronous>, transform_indices = @transform_6, window_bounds = array<i64: 1, 64>}, {transform_indices = @transform_7, window_bounds = array<i64: 1, 64, 64>}]} {
    %c0 = arith.constant 0 : index
    %c0_0 = arith.constant 0 : index
    %c0_1 = arith.constant 0 : index
    %c0_2 = arith.constant 0 : index
    %0 = vector.load %arg1[%c0, %c0_0, %c0_1, %c0_2] : memref<4x9x9x32xbf16, #tpu.memory_space<vmem>>, vector<1x8x8x32xbf16>
    %1 = vector.shape_cast %0 : vector<1x8x8x32xbf16> to vector<8x8x32xbf16>
    %2 = vector.shape_cast %1 : vector<8x8x32xbf16> to vector<64x32xbf16>
    %c0_3 = arith.constant 0 : index
    %c0_4 = arith.constant 0 : index
    %c0_5 = arith.constant 0 : index
    %3 = vector.load %arg2[%c0_3, %c0_4, %c0_5] : memref<9x32x64xbf16, #tpu.memory_space<vmem>>, vector<1x32x64xbf16>
    %4 = vector.shape_cast %3 : vector<1x32x64xbf16> to vector<32x64xbf16>
    %cst = arith.constant dense<0.000000e+00> : vector<64x64xf32>
    %5 = tpu.matmul %2, %4, %cst {dimension_numbers = #tpu.dot_dimension_numbers<[1], [0], [0], [1], [0, 0, 1, 1], [], []>} : vector<64x32xbf16>, vector<32x64xbf16>, vector<64x64xf32> -> vector<64x64xf32>
    %c1 = arith.constant 1 : index
    %c0_6 = arith.constant 0 : index
    %c0_7 = arith.constant 0 : index
    %c0_8 = arith.constant 0 : index
    %6 = vector.load %arg1[%c1, %c0_6, %c0_7, %c0_8] : memref<4x9x9x32xbf16, #tpu.memory_space<vmem>>, vector<1x8x8x32xbf16>
    %7 = vector.shape_cast %6 : vector<1x8x8x32xbf16> to vector<8x8x32xbf16>
    %8 = vector.shape_cast %7 : vector<8x8x32xbf16> to vector<64x32xbf16>
    %c1_9 = arith.constant 1 : index
    %c0_10 = arith.constant 0 : index
    %c0_11 = arith.constant 0 : index
    %9 = vector.load %arg2[%c1_9, %c0_10, %c0_11] : memref<9x32x64xbf16, #tpu.memory_space<vmem>>, vector<1x32x64xbf16>
    %10 = vector.shape_cast %9 : vector<1x32x64xbf16> to vector<32x64xbf16>
    %cst_12 = arith.constant dense<0.000000e+00> : vector<64x64xf32>
    %11 = tpu.matmul %8, %10, %cst_12 {dimension_numbers = #tpu.dot_dimension_numbers<[1], [0], [0], [1], [0, 0, 1, 1], [], []>} : vector<64x32xbf16>, vector<32x64xbf16>, vector<64x64xf32> -> vector<64x64xf32>
    %12 = arith.addf %5, %11 : vector<64x64xf32>
    %c0_13 = arith.constant 0 : index
    %c0_14 = arith.constant 0 : index
    %c1_15 = arith.constant 1 : index
    %c0_16 = arith.constant 0 : index
    %13 = vector.load %arg1[%c0_13, %c0_14, %c1_15, %c0_16] : memref<4x9x9x32xbf16, #tpu.memory_space<vmem>>, vector<1x8x8x32xbf16>
    %14 = vector.shape_cast %13 : vector<1x8x8x32xbf16> to vector<8x8x32xbf16>
    %15 = vector.shape_cast %14 : vector<8x8x32xbf16> to vector<64x32xbf16>
    %c2 = arith.constant 2 : index
    %c0_17 = arith.constant 0 : index
    %c0_18 = arith.constant 0 : index
    %16 = vector.load %arg2[%c2, %c0_17, %c0_18] : memref<9x32x64xbf16, #tpu.memory_space<vmem>>, vector<1x32x64xbf16>
    %17 = vector.shape_cast %16 : vector<1x32x64xbf16> to vector<32x64xbf16>
    %cst_19 = arith.constant dense<0.000000e+00> : vector<64x64xf32>
    %18 = tpu.matmul %15, %17, %cst_19 {dimension_numbers = #tpu.dot_dimension_numbers<[1], [0], [0], [1], [0, 0, 1, 1], [], []>} : vector<64x32xbf16>, vector<32x64xbf16>, vector<64x64xf32> -> vector<64x64xf32>
    %19 = arith.addf %12, %18 : vector<64x64xf32>
    %c2_20 = arith.constant 2 : index
    %c0_21 = arith.constant 0 : index
    %c0_22 = arith.constant 0 : index
    %c0_23 = arith.constant 0 : index
    %20 = vector.load %arg1[%c2_20, %c0_21, %c0_22, %c0_23] : memref<4x9x9x32xbf16, #tpu.memory_space<vmem>>, vector<1x8x8x32xbf16>
    %21 = vector.shape_cast %20 : vector<1x8x8x32xbf16> to vector<8x8x32xbf16>
    %22 = vector.shape_cast %21 : vector<8x8x32xbf16> to vector<64x32xbf16>
    %c3 = arith.constant 3 : index
    %c0_24 = arith.constant 0 : index
    %c0_25 = arith.constant 0 : index
    %23 = vector.load %arg2[%c3, %c0_24, %c0_25] : memref<9x32x64xbf16, #tpu.memory_space<vmem>>, vector<1x32x64xbf16>
    %24 = vector.shape_cast %23 : vector<1x32x64xbf16> to vector<32x64xbf16>
    %cst_26 = arith.constant dense<0.000000e+00> : vector<64x64xf32>
    %25 = tpu.matmul %22, %24, %cst_26 {dimension_numbers = #tpu.dot_dimension_numbers<[1], [0], [0], [1], [0, 0, 1, 1], [], []>} : vector<64x32xbf16>, vector<32x64xbf16>, vector<64x64xf32> -> vector<64x64xf32>
    %26 = arith.addf %19, %25 : vector<64x64xf32>
    %c3_27 = arith.constant 3 : index
    %c0_28 = arith.constant 0 : index
    %c0_29 = arith.constant 0 : index
    %c0_30 = arith.constant 0 : index
    %27 = vector.load %arg1[%c3_27, %c0_28, %c0_29, %c0_30] : memref<4x9x9x32xbf16, #tpu.memory_space<vmem>>, vector<1x8x8x32xbf16>
    %28 = vector.shape_cast %27 : vector<1x8x8x32xbf16> to vector<8x8x32xbf16>
    %29 = vector.shape_cast %28 : vector<8x8x32xbf16> to vector<64x32xbf16>
    %c4 = arith.constant 4 : index
    %c0_31 = arith.constant 0 : index
    %c0_32 = arith.constant 0 : index
    %30 = vector.load %arg2[%c4, %c0_31, %c0_32] : memref<9x32x64xbf16, #tpu.memory_space<vmem>>, vector<1x32x64xbf16>
    %31 = vector.shape_cast %30 : vector<1x32x64xbf16> to vector<32x64xbf16>
    %cst_33 = arith.constant dense<0.000000e+00> : vector<64x64xf32>
    %32 = tpu.matmul %29, %31, %cst_33 {dimension_numbers = #tpu.dot_dimension_numbers<[1], [0], [0], [1], [0, 0, 1, 1], [], []>} : vector<64x32xbf16>, vector<32x64xbf16>, vector<64x64xf32> -> vector<64x64xf32>
    %33 = arith.addf %26, %32 : vector<64x64xf32>
    %c2_34 = arith.constant 2 : index
    %c0_35 = arith.constant 0 : index
    %c1_36 = arith.constant 1 : index
    %c0_37 = arith.constant 0 : index
    %34 = vector.load %arg1[%c2_34, %c0_35, %c1_36, %c0_37] : memref<4x9x9x32xbf16, #tpu.memory_space<vmem>>, vector<1x8x8x32xbf16>
    %35 = vector.shape_cast %34 : vector<1x8x8x32xbf16> to vector<8x8x32xbf16>
    %36 = vector.shape_cast %35 : vector<8x8x32xbf16> to vector<64x32xbf16>
    %c5 = arith.constant 5 : index
    %c0_38 = arith.constant 0 : index
    %c0_39 = arith.constant 0 : index
    %37 = vector.load %arg2[%c5, %c0_38, %c0_39] : memref<9x32x64xbf16, #tpu.memory_space<vmem>>, vector<1x32x64xbf16>
    %38 = vector.shape_cast %37 : vector<1x32x64xbf16> to vector<32x64xbf16>
    %cst_40 = arith.constant dense<0.000000e+00> : vector<64x64xf32>
    %39 = tpu.matmul %36, %38, %cst_40 {dimension_numbers = #tpu.dot_dimension_numbers<[1], [0], [0], [1], [0, 0, 1, 1], [], []>} : vector<64x32xbf16>, vector<32x64xbf16>, vector<64x64xf32> -> vector<64x64xf32>
    %40 = arith.addf %33, %39 : vector<64x64xf32>
    %c0_41 = arith.constant 0 : index
    %c1_42 = arith.constant 1 : index
    %c0_43 = arith.constant 0 : index
    %c0_44 = arith.constant 0 : index
    %41 = vector.load %arg1[%c0_41, %c1_42, %c0_43, %c0_44] : memref<4x9x9x32xbf16, #tpu.memory_space<vmem>>, vector<1x8x8x32xbf16>
    %42 = vector.shape_cast %41 : vector<1x8x8x32xbf16> to vector<8x8x32xbf16>
    %43 = vector.shape_cast %42 : vector<8x8x32xbf16> to vector<64x32xbf16>
    %c6 = arith.constant 6 : index
    %c0_45 = arith.constant 0 : index
    %c0_46 = arith.constant 0 : index
    %44 = vector.load %arg2[%c6, %c0_45, %c0_46] : memref<9x32x64xbf16, #tpu.memory_space<vmem>>, vector<1x32x64xbf16>
    %45 = vector.shape_cast %44 : vector<1x32x64xbf16> to vector<32x64xbf16>
    %cst_47 = arith.constant dense<0.000000e+00> : vector<64x64xf32>
    %46 = tpu.matmul %43, %45, %cst_47 {dimension_numbers = #tpu.dot_dimension_numbers<[1], [0], [0], [1], [0, 0, 1, 1], [], []>} : vector<64x32xbf16>, vector<32x64xbf16>, vector<64x64xf32> -> vector<64x64xf32>
    %47 = arith.addf %40, %46 : vector<64x64xf32>
    %c1_48 = arith.constant 1 : index
    %c1_49 = arith.constant 1 : index
    %c0_50 = arith.constant 0 : index
    %c0_51 = arith.constant 0 : index
    %48 = vector.load %arg1[%c1_48, %c1_49, %c0_50, %c0_51] : memref<4x9x9x32xbf16, #tpu.memory_space<vmem>>, vector<1x8x8x32xbf16>
    %49 = vector.shape_cast %48 : vector<1x8x8x32xbf16> to vector<8x8x32xbf16>
    %50 = vector.shape_cast %49 : vector<8x8x32xbf16> to vector<64x32xbf16>
    %c7 = arith.constant 7 : index
    %c0_52 = arith.constant 0 : index
    %c0_53 = arith.constant 0 : index
    %51 = vector.load %arg2[%c7, %c0_52, %c0_53] : memref<9x32x64xbf16, #tpu.memory_space<vmem>>, vector<1x32x64xbf16>
    %52 = vector.shape_cast %51 : vector<1x32x64xbf16> to vector<32x64xbf16>
    %cst_54 = arith.constant dense<0.000000e+00> : vector<64x64xf32>
    %53 = tpu.matmul %50, %52, %cst_54 {dimension_numbers = #tpu.dot_dimension_numbers<[1], [0], [0], [1], [0, 0, 1, 1], [], []>} : vector<64x32xbf16>, vector<32x64xbf16>, vector<64x64xf32> -> vector<64x64xf32>
    %54 = arith.addf %47, %53 : vector<64x64xf32>
    %c0_55 = arith.constant 0 : index
    %c1_56 = arith.constant 1 : index
    %c1_57 = arith.constant 1 : index
    %c0_58 = arith.constant 0 : index
    %55 = vector.load %arg1[%c0_55, %c1_56, %c1_57, %c0_58] : memref<4x9x9x32xbf16, #tpu.memory_space<vmem>>, vector<1x8x8x32xbf16>
    %56 = vector.shape_cast %55 : vector<1x8x8x32xbf16> to vector<8x8x32xbf16>
    %57 = vector.shape_cast %56 : vector<8x8x32xbf16> to vector<64x32xbf16>
    %c8 = arith.constant 8 : index
    %c0_59 = arith.constant 0 : index
    %c0_60 = arith.constant 0 : index
    %58 = vector.load %arg2[%c8, %c0_59, %c0_60] : memref<9x32x64xbf16, #tpu.memory_space<vmem>>, vector<1x32x64xbf16>
    %59 = vector.shape_cast %58 : vector<1x32x64xbf16> to vector<32x64xbf16>
    %cst_61 = arith.constant dense<0.000000e+00> : vector<64x64xf32>
    %60 = tpu.matmul %57, %59, %cst_61 {dimension_numbers = #tpu.dot_dimension_numbers<[1], [0], [0], [1], [0, 0, 1, 1], [], []>} : vector<64x32xbf16>, vector<32x64xbf16>, vector<64x64xf32> -> vector<64x64xf32>
    %61 = arith.addf %54, %60 : vector<64x64xf32>
    %c0_62 = arith.constant 0 : index
    %c0_63 = arith.constant 0 : index
    %62 = vector.load %arg3[%c0_62, %c0_63] : memref<1x64xf32, #tpu.memory_space<vmem>>, vector<1x64xf32>
    %63 = vector.broadcast %62 : vector<1x64xf32> to vector<64x64xf32>
    %64 = arith.addf %61, %63 : vector<64x64xf32>
    %cst_64 = arith.constant 0.000000e+00 : f32
    %65 = vector.broadcast %cst_64 : f32 to vector<64x64xf32>
    %66 = arith.maximumf %64, %65 : vector<64x64xf32>
    %c0_65 = arith.constant 0 : index
    %c0_66 = arith.constant 0 : index
    %c0_67 = arith.constant 0 : index
    %67 = vector.load %arg6[%c0_65, %c0_66, %c0_67] : memref<1x32x64xbf16, #tpu.memory_space<vmem>>, vector<1x32x64xbf16>
    %68 = vector.shape_cast %67 : vector<1x32x64xbf16> to vector<32x64xbf16>
    %cst_68 = arith.constant dense<0.000000e+00> : vector<64x64xf32>
    %69 = tpu.matmul %29, %68, %cst_68 {dimension_numbers = #tpu.dot_dimension_numbers<[1], [0], [0], [1], [0, 0, 1, 1], [], []>} : vector<64x32xbf16>, vector<32x64xbf16>, vector<64x64xf32> -> vector<64x64xf32>
    %c0_69 = arith.constant 0 : index
    %c0_70 = arith.constant 0 : index
    %70 = vector.load %arg7[%c0_69, %c0_70] : memref<1x64xf32, #tpu.memory_space<vmem>>, vector<1x64xf32>
    %71 = vector.broadcast %70 : vector<1x64xf32> to vector<64x64xf32>
    %72 = arith.addf %69, %71 : vector<64x64xf32>
    %cst_71 = arith.constant 0.000000e+00 : bf16
    %73 = vector.broadcast %cst_71 : bf16 to vector<10x10x64xbf16>
    %c0_72 = arith.constant 0 : index
    %c0_73 = arith.constant 0 : index
    %c0_74 = arith.constant 0 : index
    %74 = vector.load %arg9[%c0_72, %c0_73, %c0_74] : memref<10x10x64xbf16, #tpu.memory_space<vmem>>, vector<10x10x64xbf16>
    tpu.vector_store %arg9[%c0_72, %c0_73, %c0_74], %73 {strides = array<i32>} : memref<10x10x64xbf16, #tpu.memory_space<vmem>>, vector<10x10x64xbf16>,
    %75 = vector.shape_cast %66 : vector<64x64xf32> to vector<8x8x64xf32>
    %76 = arith.truncf %75 : vector<8x8x64xf32> to vector<8x8x64xbf16>
    %c1_75 = arith.constant 1 : index
    %c1_76 = arith.constant 1 : index
    %c0_77 = arith.constant 0 : index
    %77 = vector.load %arg9[%c1_75, %c1_76, %c0_77] : memref<10x10x64xbf16, #tpu.memory_space<vmem>>, vector<8x8x64xbf16>
    tpu.vector_store %arg9[%c1_75, %c1_76, %c0_77], %76 {strides = array<i32>} : memref<10x10x64xbf16, #tpu.memory_space<vmem>>, vector<8x8x64xbf16>,
    %c0_78 = arith.constant 0 : index
    %c0_79 = arith.constant 0 : index
    %c0_80 = arith.constant 0 : index
    %78 = vector.load %arg9[%c0_78, %c0_79, %c0_80] : memref<10x10x64xbf16, #tpu.memory_space<vmem>>, vector<8x8x64xbf16>
    %79 = vector.shape_cast %78 : vector<8x8x64xbf16> to vector<64x64xbf16>
    %c0_81 = arith.constant 0 : index
    %c0_82 = arith.constant 0 : index
    %c0_83 = arith.constant 0 : index
    %80 = vector.load %arg4[%c0_81, %c0_82, %c0_83] : memref<9x64x64xbf16, #tpu.memory_space<vmem>>, vector<1x64x64xbf16>
    %81 = vector.shape_cast %80 : vector<1x64x64xbf16> to vector<64x64xbf16>
    %cst_84 = arith.constant dense<0.000000e+00> : vector<64x64xf32>
    %82 = tpu.matmul %79, %81, %cst_84 {dimension_numbers = #tpu.dot_dimension_numbers<[1], [0], [0], [1], [0, 0, 1, 1], [], []>} : vector<64x64xbf16>, vector<64x64xbf16>, vector<64x64xf32> -> vector<64x64xf32>
    %c0_85 = arith.constant 0 : index
    %c1_86 = arith.constant 1 : index
    %c0_87 = arith.constant 0 : index
    %83 = vector.load %arg9[%c0_85, %c1_86, %c0_87] : memref<10x10x64xbf16, #tpu.memory_space<vmem>>, vector<8x8x64xbf16>
    %84 = vector.shape_cast %83 : vector<8x8x64xbf16> to vector<64x64xbf16>
    %c1_88 = arith.constant 1 : index
    %c0_89 = arith.constant 0 : index
    %c0_90 = arith.constant 0 : index
    %85 = vector.load %arg4[%c1_88, %c0_89, %c0_90] : memref<9x64x64xbf16, #tpu.memory_space<vmem>>, vector<1x64x64xbf16>
    %86 = vector.shape_cast %85 : vector<1x64x64xbf16> to vector<64x64xbf16>
    %cst_91 = arith.constant dense<0.000000e+00> : vector<64x64xf32>
    %87 = tpu.matmul %84, %86, %cst_91 {dimension_numbers = #tpu.dot_dimension_numbers<[1], [0], [0], [1], [0, 0, 1, 1], [], []>} : vector<64x64xbf16>, vector<64x64xbf16>, vector<64x64xf32> -> vector<64x64xf32>
    %88 = arith.addf %82, %87 : vector<64x64xf32>
    %c0_92 = arith.constant 0 : index
    %c2_93 = arith.constant 2 : index
    %c0_94 = arith.constant 0 : index
    %89 = vector.load %arg9[%c0_92, %c2_93, %c0_94] : memref<10x10x64xbf16, #tpu.memory_space<vmem>>, vector<8x8x64xbf16>
    %90 = vector.shape_cast %89 : vector<8x8x64xbf16> to vector<64x64xbf16>
    %c2_95 = arith.constant 2 : index
    %c0_96 = arith.constant 0 : index
    %c0_97 = arith.constant 0 : index
    %91 = vector.load %arg4[%c2_95, %c0_96, %c0_97] : memref<9x64x64xbf16, #tpu.memory_space<vmem>>, vector<1x64x64xbf16>
    %92 = vector.shape_cast %91 : vector<1x64x64xbf16> to vector<64x64xbf16>
    %cst_98 = arith.constant dense<0.000000e+00> : vector<64x64xf32>
    %93 = tpu.matmul %90, %92, %cst_98 {dimension_numbers = #tpu.dot_dimension_numbers<[1], [0], [0], [1], [0, 0, 1, 1], [], []>} : vector<64x64xbf16>, vector<64x64xbf16>, vector<64x64xf32> -> vector<64x64xf32>
    %94 = arith.addf %88, %93 : vector<64x64xf32>
    %c1_99 = arith.constant 1 : index
    %c0_100 = arith.constant 0 : index
    %c0_101 = arith.constant 0 : index
    %95 = vector.load %arg9[%c1_99, %c0_100, %c0_101] : memref<10x10x64xbf16, #tpu.memory_space<vmem>>, vector<8x8x64xbf16>
    %96 = vector.shape_cast %95 : vector<8x8x64xbf16> to vector<64x64xbf16>
    %c3_102 = arith.constant 3 : index
    %c0_103 = arith.constant 0 : index
    %c0_104 = arith.constant 0 : index
    %97 = vector.load %arg4[%c3_102, %c0_103, %c0_104] : memref<9x64x64xbf16, #tpu.memory_space<vmem>>, vector<1x64x64xbf16>
    %98 = vector.shape_cast %97 : vector<1x64x64xbf16> to vector<64x64xbf16>
    %cst_105 = arith.constant dense<0.000000e+00> : vector<64x64xf32>
    %99 = tpu.matmul %96, %98, %cst_105 {dimension_numbers = #tpu.dot_dimension_numbers<[1], [0], [0], [1], [0, 0, 1, 1], [], []>} : vector<64x64xbf16>, vector<64x64xbf16>, vector<64x64xf32> -> vector<64x64xf32>
    %100 = arith.addf %94, %99 : vector<64x64xf32>
    %c1_106 = arith.constant 1 : index
    %c1_107 = arith.constant 1 : index
    %c0_108 = arith.constant 0 : index
    %101 = vector.load %arg9[%c1_106, %c1_107, %c0_108] : memref<10x10x64xbf16, #tpu.memory_space<vmem>>, vector<8x8x64xbf16>
    %102 = vector.shape_cast %101 : vector<8x8x64xbf16> to vector<64x64xbf16>
    %c4_109 = arith.constant 4 : index
    %c0_110 = arith.constant 0 : index
    %c0_111 = arith.constant 0 : index
    %103 = vector.load %arg4[%c4_109, %c0_110, %c0_111] : memref<9x64x64xbf16, #tpu.memory_space<vmem>>, vector<1x64x64xbf16>
    %104 = vector.shape_cast %103 : vector<1x64x64xbf16> to vector<64x64xbf16>
    %cst_112 = arith.constant dense<0.000000e+00> : vector<64x64xf32>
    %105 = tpu.matmul %102, %104, %cst_112 {dimension_numbers = #tpu.dot_dimension_numbers<[1], [0], [0], [1], [0, 0, 1, 1], [], []>} : vector<64x64xbf16>, vector<64x64xbf16>, vector<64x64xf32> -> vector<64x64xf32>
    %106 = arith.addf %100, %105 : vector<64x64xf32>
    %c1_113 = arith.constant 1 : index
    %c2_114 = arith.constant 2 : index
    %c0_115 = arith.constant 0 : index
    %107 = vector.load %arg9[%c1_113, %c2_114, %c0_115] : memref<10x10x64xbf16, #tpu.memory_space<vmem>>, vector<8x8x64xbf16>
    %108 = vector.shape_cast %107 : vector<8x8x64xbf16> to vector<64x64xbf16>
    %c5_116 = arith.constant 5 : index
    %c0_117 = arith.constant 0 : index
    %c0_118 = arith.constant 0 : index
    %109 = vector.load %arg4[%c5_116, %c0_117, %c0_118] : memref<9x64x64xbf16, #tpu.memory_space<vmem>>, vector<1x64x64xbf16>
    %110 = vector.shape_cast %109 : vector<1x64x64xbf16> to vector<64x64xbf16>
    %cst_119 = arith.constant dense<0.000000e+00> : vector<64x64xf32>
    %111 = tpu.matmul %108, %110, %cst_119 {dimension_numbers = #tpu.dot_dimension_numbers<[1], [0], [0], [1], [0, 0, 1, 1], [], []>} : vector<64x64xbf16>, vector<64x64xbf16>, vector<64x64xf32> -> vector<64x64xf32>
    %112 = arith.addf %106, %111 : vector<64x64xf32>
    %c2_120 = arith.constant 2 : index
    %c0_121 = arith.constant 0 : index
    %c0_122 = arith.constant 0 : index
    %113 = vector.load %arg9[%c2_120, %c0_121, %c0_122] : memref<10x10x64xbf16, #tpu.memory_space<vmem>>, vector<8x8x64xbf16>
    %114 = vector.shape_cast %113 : vector<8x8x64xbf16> to vector<64x64xbf16>
    %c6_123 = arith.constant 6 : index
    %c0_124 = arith.constant 0 : index
    %c0_125 = arith.constant 0 : index
    %115 = vector.load %arg4[%c6_123, %c0_124, %c0_125] : memref<9x64x64xbf16, #tpu.memory_space<vmem>>, vector<1x64x64xbf16>
    %116 = vector.shape_cast %115 : vector<1x64x64xbf16> to vector<64x64xbf16>
    %cst_126 = arith.constant dense<0.000000e+00> : vector<64x64xf32>
    %117 = tpu.matmul %114, %116, %cst_126 {dimension_numbers = #tpu.dot_dimension_numbers<[1], [0], [0], [1], [0, 0, 1, 1], [], []>} : vector<64x64xbf16>, vector<64x64xbf16>, vector<64x64xf32> -> vector<64x64xf32>
    %118 = arith.addf %112, %117 : vector<64x64xf32>
    %c2_127 = arith.constant 2 : index
    %c1_128 = arith.constant 1 : index
    %c0_129 = arith.constant 0 : index
    %119 = vector.load %arg9[%c2_127, %c1_128, %c0_129] : memref<10x10x64xbf16, #tpu.memory_space<vmem>>, vector<8x8x64xbf16>
    %120 = vector.shape_cast %119 : vector<8x8x64xbf16> to vector<64x64xbf16>
    %c7_130 = arith.constant 7 : index
    %c0_131 = arith.constant 0 : index
    %c0_132 = arith.constant 0 : index
    %121 = vector.load %arg4[%c7_130, %c0_131, %c0_132] : memref<9x64x64xbf16, #tpu.memory_space<vmem>>, vector<1x64x64xbf16>
    %122 = vector.shape_cast %121 : vector<1x64x64xbf16> to vector<64x64xbf16>
    %cst_133 = arith.constant dense<0.000000e+00> : vector<64x64xf32>
    %123 = tpu.matmul %120, %122, %cst_133 {dimension_numbers = #tpu.dot_dimension_numbers<[1], [0], [0], [1], [0, 0, 1, 1], [], []>} : vector<64x64xbf16>, vector<64x64xbf16>, vector<64x64xf32> -> vector<64x64xf32>
    %124 = arith.addf %118, %123 : vector<64x64xf32>
    %c2_134 = arith.constant 2 : index
    %c2_135 = arith.constant 2 : index
    %c0_136 = arith.constant 0 : index
    %125 = vector.load %arg9[%c2_134, %c2_135, %c0_136] : memref<10x10x64xbf16, #tpu.memory_space<vmem>>, vector<8x8x64xbf16>
    %126 = vector.shape_cast %125 : vector<8x8x64xbf16> to vector<64x64xbf16>
    %c8_137 = arith.constant 8 : index
    %c0_138 = arith.constant 0 : index
    %c0_139 = arith.constant 0 : index
    %127 = vector.load %arg4[%c8_137, %c0_138, %c0_139] : memref<9x64x64xbf16, #tpu.memory_space<vmem>>, vector<1x64x64xbf16>
    %128 = vector.shape_cast %127 : vector<1x64x64xbf16> to vector<64x64xbf16>
    %cst_140 = arith.constant dense<0.000000e+00> : vector<64x64xf32>
    %129 = tpu.matmul %126, %128, %cst_140 {dimension_numbers = #tpu.dot_dimension_numbers<[1], [0], [0], [1], [0, 0, 1, 1], [], []>} : vector<64x64xbf16>, vector<64x64xbf16>, vector<64x64xf32> -> vector<64x64xf32>
    %130 = arith.addf %124, %129 : vector<64x64xf32>
    %c0_141 = arith.constant 0 : index
    %c0_142 = arith.constant 0 : index
    %131 = vector.load %arg5[%c0_141, %c0_142] : memref<1x64xf32, #tpu.memory_space<vmem>>, vector<1x64xf32>
    %132 = vector.broadcast %131 : vector<1x64xf32> to vector<64x64xf32>
    %133 = arith.addf %130, %132 : vector<64x64xf32>
    %134 = arith.addf %133, %72 : vector<64x64xf32>
    %cst_143 = arith.constant 0.000000e+00 : f32
    %135 = vector.broadcast %cst_143 : f32 to vector<64x64xf32>
    %136 = arith.maximumf %134, %135 : vector<64x64xf32>
    %137 = arith.truncf %136 : vector<64x64xf32> to vector<64x64xbf16>
    %c0_144 = arith.constant 0 : index
    %c0_145 = arith.constant 0 : index
    %c0_146 = arith.constant 0 : index
    %138 = vector.load %arg8[%c0_144, %c0_145, %c0_146] : memref<1x64x64xbf16, #tpu.memory_space<vmem>>, vector<1x64x64xbf16>
    %139 = vector.shape_cast %138 : vector<1x64x64xbf16> to vector<64x64xbf16>
    %140 = vector.shape_cast %137 : vector<64x64xbf16> to vector<1x64x64xbf16>
    tpu.vector_store %arg8[%c0_144, %c0_145, %c0_146], %140 {strides = array<i32>} : memref<1x64x64xbf16, #tpu.memory_space<vmem>>, vector<1x64x64xbf16>,
    return
  }
  func.func @transform_0(%arg0: i32) -> (i32, i32, i32, i32) {
    %c0_i32 = arith.constant 0 : i32
    %c0_i32_0 = arith.constant 0 : i32
    %c0_i32_1 = arith.constant 0 : i32
    %c0_i32_2 = arith.constant 0 : i32
    return %arg0, %c0_i32, %c0_i32_0, %c0_i32_1 : i32, i32, i32, i32
  }
  func.func @transform_1(%arg0: i32) -> (i32, i32, i32) {
    %c0_i32 = arith.constant 0 : i32
    %c0_i32_0 = arith.constant 0 : i32
    %c0_i32_1 = arith.constant 0 : i32
    %c0_i32_2 = arith.constant 0 : i32
    return %c0_i32, %c0_i32_0, %c0_i32_1 : i32, i32, i32
  }
  func.func @transform_2(%arg0: i32) -> (i32, i32) {
    %c0_i32 = arith.constant 0 : i32
    %c0_i32_0 = arith.constant 0 : i32
    %c0_i32_1 = arith.constant 0 : i32
    return %c0_i32, %c0_i32_0 : i32, i32
  }
  func.func @transform_3(%arg0: i32) -> (i32, i32, i32) {
    %c0_i32 = arith.constant 0 : i32
    %c0_i32_0 = arith.constant 0 : i32
    %c0_i32_1 = arith.constant 0 : i32
    %c0_i32_2 = arith.constant 0 : i32
    return %c0_i32, %c0_i32_0, %c0_i32_1 : i32, i32, i32
  }
  func.func @transform_4(%arg0: i32) -> (i32, i32) {
    %c0_i32 = arith.constant 0 : i32
    %c0_i32_0 = arith.constant 0 : i32
    %c0_i32_1 = arith.constant 0 : i32
    return %c0_i32, %c0_i32_0 : i32, i32
  }
  func.func @transform_5(%arg0: i32) -> (i32, i32, i32) {
    %c0_i32 = arith.constant 0 : i32
    %c0_i32_0 = arith.constant 0 : i32
    %c0_i32_1 = arith.constant 0 : i32
    %c0_i32_2 = arith.constant 0 : i32
    return %c0_i32, %c0_i32_0, %c0_i32_1 : i32, i32, i32
  }
  func.func @transform_6(%arg0: i32) -> (i32, i32) {
    %c0_i32 = arith.constant 0 : i32
    %c0_i32_0 = arith.constant 0 : i32
    %c0_i32_1 = arith.constant 0 : i32
    return %c0_i32, %c0_i32_0 : i32, i32
  }
  func.func @transform_7(%arg0: i32) -> (i32, i32, i32) {
    %c0_i32 = arith.constant 0 : i32
    %c0_i32_0 = arith.constant 0 : i32
    %c0_i32_1 = arith.constant 0 : i32
    return %arg0, %c0_i32, %c0_i32_0 : i32, i32, i32
  }
}

module attributes {stable_mosaic.version = 11 : i64} {
  func.func @_basic_block_kernel(%arg0: i32, %arg1: memref<1x10x10x64xbf16, #tpu.memory_space<vmem>>, %arg2: memref<9x64x64xbf16, #tpu.memory_space<vmem>>, %arg3: memref<1x64xf32, #tpu.memory_space<vmem>>, %arg4: memref<9x64x64xbf16, #tpu.memory_space<vmem>>, %arg5: memref<1x64xf32, #tpu.memory_space<vmem>>, %arg6: memref<1x64x64xbf16, #tpu.memory_space<vmem>>, %arg7: memref<10x10x64xbf16, #tpu.memory_space<vmem>>) attributes {dimension_semantics = [#tpu.dimension_semantics<parallel>], iteration_bounds = array<i64: 2>, scalar_prefetch = 0 : i64, scratch_operands = 1 : i64, tpu.core_type = #tpu.core_type<tc>, window_params = [{transform_indices = @transform_0, window_bounds = array<i64: 1, 10, 10, 64>}, {pipeline_mode = #tpu.pipeline_mode<synchronous>, transform_indices = @transform_1, window_bounds = array<i64: 9, 64, 64>}, {pipeline_mode = #tpu.pipeline_mode<synchronous>, transform_indices = @transform_2, window_bounds = array<i64: 1, 64>}, {pipeline_mode = #tpu.pipeline_mode<synchronous>, transform_indices = @transform_3, window_bounds = array<i64: 9, 64, 64>}, {pipeline_mode = #tpu.pipeline_mode<synchronous>, transform_indices = @transform_4, window_bounds = array<i64: 1, 64>}, {transform_indices = @transform_5, window_bounds = array<i64: 1, 64, 64>}]} {
    %c0 = arith.constant 0 : index
    %c0_0 = arith.constant 0 : index
    %c0_1 = arith.constant 0 : index
    %c0_2 = arith.constant 0 : index
    %0 = vector.load %arg1[%c0, %c0_0, %c0_1, %c0_2] : memref<1x10x10x64xbf16, #tpu.memory_space<vmem>>, vector<1x8x8x64xbf16>
    %1 = vector.shape_cast %0 : vector<1x8x8x64xbf16> to vector<8x8x64xbf16>
    %2 = vector.shape_cast %1 : vector<8x8x64xbf16> to vector<64x64xbf16>
    %c0_3 = arith.constant 0 : index
    %c0_4 = arith.constant 0 : index
    %c0_5 = arith.constant 0 : index
    %3 = vector.load %arg2[%c0_3, %c0_4, %c0_5] : memref<9x64x64xbf16, #tpu.memory_space<vmem>>, vector<1x64x64xbf16>
    %4 = vector.shape_cast %3 : vector<1x64x64xbf16> to vector<64x64xbf16>
    %cst = arith.constant dense<0.000000e+00> : vector<64x64xf32>
    %5 = tpu.matmul %2, %4, %cst {dimension_numbers = #tpu.dot_dimension_numbers<[1], [0], [0], [1], [0, 0, 1, 1], [], []>} : vector<64x64xbf16>, vector<64x64xbf16>, vector<64x64xf32> -> vector<64x64xf32>
    %c0_6 = arith.constant 0 : index
    %c0_7 = arith.constant 0 : index
    %c1 = arith.constant 1 : index
    %c0_8 = arith.constant 0 : index
    %6 = vector.load %arg1[%c0_6, %c0_7, %c1, %c0_8] : memref<1x10x10x64xbf16, #tpu.memory_space<vmem>>, vector<1x8x8x64xbf16>
    %7 = vector.shape_cast %6 : vector<1x8x8x64xbf16> to vector<8x8x64xbf16>
    %8 = vector.shape_cast %7 : vector<8x8x64xbf16> to vector<64x64xbf16>
    %c1_9 = arith.constant 1 : index
    %c0_10 = arith.constant 0 : index
    %c0_11 = arith.constant 0 : index
    %9 = vector.load %arg2[%c1_9, %c0_10, %c0_11] : memref<9x64x64xbf16, #tpu.memory_space<vmem>>, vector<1x64x64xbf16>
    %10 = vector.shape_cast %9 : vector<1x64x64xbf16> to vector<64x64xbf16>
    %cst_12 = arith.constant dense<0.000000e+00> : vector<64x64xf32>
    %11 = tpu.matmul %8, %10, %cst_12 {dimension_numbers = #tpu.dot_dimension_numbers<[1], [0], [0], [1], [0, 0, 1, 1], [], []>} : vector<64x64xbf16>, vector<64x64xbf16>, vector<64x64xf32> -> vector<64x64xf32>
    %12 = arith.addf %5, %11 : vector<64x64xf32>
    %c0_13 = arith.constant 0 : index
    %c0_14 = arith.constant 0 : index
    %c2 = arith.constant 2 : index
    %c0_15 = arith.constant 0 : index
    %13 = vector.load %arg1[%c0_13, %c0_14, %c2, %c0_15] : memref<1x10x10x64xbf16, #tpu.memory_space<vmem>>, vector<1x8x8x64xbf16>
    %14 = vector.shape_cast %13 : vector<1x8x8x64xbf16> to vector<8x8x64xbf16>
    %15 = vector.shape_cast %14 : vector<8x8x64xbf16> to vector<64x64xbf16>
    %c2_16 = arith.constant 2 : index
    %c0_17 = arith.constant 0 : index
    %c0_18 = arith.constant 0 : index
    %16 = vector.load %arg2[%c2_16, %c0_17, %c0_18] : memref<9x64x64xbf16, #tpu.memory_space<vmem>>, vector<1x64x64xbf16>
    %17 = vector.shape_cast %16 : vector<1x64x64xbf16> to vector<64x64xbf16>
    %cst_19 = arith.constant dense<0.000000e+00> : vector<64x64xf32>
    %18 = tpu.matmul %15, %17, %cst_19 {dimension_numbers = #tpu.dot_dimension_numbers<[1], [0], [0], [1], [0, 0, 1, 1], [], []>} : vector<64x64xbf16>, vector<64x64xbf16>, vector<64x64xf32> -> vector<64x64xf32>
    %19 = arith.addf %12, %18 : vector<64x64xf32>
    %c0_20 = arith.constant 0 : index
    %c1_21 = arith.constant 1 : index
    %c0_22 = arith.constant 0 : index
    %c0_23 = arith.constant 0 : index
    %20 = vector.load %arg1[%c0_20, %c1_21, %c0_22, %c0_23] : memref<1x10x10x64xbf16, #tpu.memory_space<vmem>>, vector<1x8x8x64xbf16>
    %21 = vector.shape_cast %20 : vector<1x8x8x64xbf16> to vector<8x8x64xbf16>
    %22 = vector.shape_cast %21 : vector<8x8x64xbf16> to vector<64x64xbf16>
    %c3 = arith.constant 3 : index
    %c0_24 = arith.constant 0 : index
    %c0_25 = arith.constant 0 : index
    %23 = vector.load %arg2[%c3, %c0_24, %c0_25] : memref<9x64x64xbf16, #tpu.memory_space<vmem>>, vector<1x64x64xbf16>
    %24 = vector.shape_cast %23 : vector<1x64x64xbf16> to vector<64x64xbf16>
    %cst_26 = arith.constant dense<0.000000e+00> : vector<64x64xf32>
    %25 = tpu.matmul %22, %24, %cst_26 {dimension_numbers = #tpu.dot_dimension_numbers<[1], [0], [0], [1], [0, 0, 1, 1], [], []>} : vector<64x64xbf16>, vector<64x64xbf16>, vector<64x64xf32> -> vector<64x64xf32>
    %26 = arith.addf %19, %25 : vector<64x64xf32>
    %c0_27 = arith.constant 0 : index
    %c1_28 = arith.constant 1 : index
    %c1_29 = arith.constant 1 : index
    %c0_30 = arith.constant 0 : index
    %27 = vector.load %arg1[%c0_27, %c1_28, %c1_29, %c0_30] : memref<1x10x10x64xbf16, #tpu.memory_space<vmem>>, vector<1x8x8x64xbf16>
    %28 = vector.shape_cast %27 : vector<1x8x8x64xbf16> to vector<8x8x64xbf16>
    %29 = vector.shape_cast %28 : vector<8x8x64xbf16> to vector<64x64xbf16>
    %c4 = arith.constant 4 : index
    %c0_31 = arith.constant 0 : index
    %c0_32 = arith.constant 0 : index
    %30 = vector.load %arg2[%c4, %c0_31, %c0_32] : memref<9x64x64xbf16, #tpu.memory_space<vmem>>, vector<1x64x64xbf16>
    %31 = vector.shape_cast %30 : vector<1x64x64xbf16> to vector<64x64xbf16>
    %cst_33 = arith.constant dense<0.000000e+00> : vector<64x64xf32>
    %32 = tpu.matmul %29, %31, %cst_33 {dimension_numbers = #tpu.dot_dimension_numbers<[1], [0], [0], [1], [0, 0, 1, 1], [], []>} : vector<64x64xbf16>, vector<64x64xbf16>, vector<64x64xf32> -> vector<64x64xf32>
    %33 = arith.addf %26, %32 : vector<64x64xf32>
    %c0_34 = arith.constant 0 : index
    %c1_35 = arith.constant 1 : index
    %c2_36 = arith.constant 2 : index
    %c0_37 = arith.constant 0 : index
    %34 = vector.load %arg1[%c0_34, %c1_35, %c2_36, %c0_37] : memref<1x10x10x64xbf16, #tpu.memory_space<vmem>>, vector<1x8x8x64xbf16>
    %35 = vector.shape_cast %34 : vector<1x8x8x64xbf16> to vector<8x8x64xbf16>
    %36 = vector.shape_cast %35 : vector<8x8x64xbf16> to vector<64x64xbf16>
    %c5 = arith.constant 5 : index
    %c0_38 = arith.constant 0 : index
    %c0_39 = arith.constant 0 : index
    %37 = vector.load %arg2[%c5, %c0_38, %c0_39] : memref<9x64x64xbf16, #tpu.memory_space<vmem>>, vector<1x64x64xbf16>
    %38 = vector.shape_cast %37 : vector<1x64x64xbf16> to vector<64x64xbf16>
    %cst_40 = arith.constant dense<0.000000e+00> : vector<64x64xf32>
    %39 = tpu.matmul %36, %38, %cst_40 {dimension_numbers = #tpu.dot_dimension_numbers<[1], [0], [0], [1], [0, 0, 1, 1], [], []>} : vector<64x64xbf16>, vector<64x64xbf16>, vector<64x64xf32> -> vector<64x64xf32>
    %40 = arith.addf %33, %39 : vector<64x64xf32>
    %c0_41 = arith.constant 0 : index
    %c2_42 = arith.constant 2 : index
    %c0_43 = arith.constant 0 : index
    %c0_44 = arith.constant 0 : index
    %41 = vector.load %arg1[%c0_41, %c2_42, %c0_43, %c0_44] : memref<1x10x10x64xbf16, #tpu.memory_space<vmem>>, vector<1x8x8x64xbf16>
    %42 = vector.shape_cast %41 : vector<1x8x8x64xbf16> to vector<8x8x64xbf16>
    %43 = vector.shape_cast %42 : vector<8x8x64xbf16> to vector<64x64xbf16>
    %c6 = arith.constant 6 : index
    %c0_45 = arith.constant 0 : index
    %c0_46 = arith.constant 0 : index
    %44 = vector.load %arg2[%c6, %c0_45, %c0_46] : memref<9x64x64xbf16, #tpu.memory_space<vmem>>, vector<1x64x64xbf16>
    %45 = vector.shape_cast %44 : vector<1x64x64xbf16> to vector<64x64xbf16>
    %cst_47 = arith.constant dense<0.000000e+00> : vector<64x64xf32>
    %46 = tpu.matmul %43, %45, %cst_47 {dimension_numbers = #tpu.dot_dimension_numbers<[1], [0], [0], [1], [0, 0, 1, 1], [], []>} : vector<64x64xbf16>, vector<64x64xbf16>, vector<64x64xf32> -> vector<64x64xf32>
    %47 = arith.addf %40, %46 : vector<64x64xf32>
    %c0_48 = arith.constant 0 : index
    %c2_49 = arith.constant 2 : index
    %c1_50 = arith.constant 1 : index
    %c0_51 = arith.constant 0 : index
    %48 = vector.load %arg1[%c0_48, %c2_49, %c1_50, %c0_51] : memref<1x10x10x64xbf16, #tpu.memory_space<vmem>>, vector<1x8x8x64xbf16>
    %49 = vector.shape_cast %48 : vector<1x8x8x64xbf16> to vector<8x8x64xbf16>
    %50 = vector.shape_cast %49 : vector<8x8x64xbf16> to vector<64x64xbf16>
    %c7 = arith.constant 7 : index
    %c0_52 = arith.constant 0 : index
    %c0_53 = arith.constant 0 : index
    %51 = vector.load %arg2[%c7, %c0_52, %c0_53] : memref<9x64x64xbf16, #tpu.memory_space<vmem>>, vector<1x64x64xbf16>
    %52 = vector.shape_cast %51 : vector<1x64x64xbf16> to vector<64x64xbf16>
    %cst_54 = arith.constant dense<0.000000e+00> : vector<64x64xf32>
    %53 = tpu.matmul %50, %52, %cst_54 {dimension_numbers = #tpu.dot_dimension_numbers<[1], [0], [0], [1], [0, 0, 1, 1], [], []>} : vector<64x64xbf16>, vector<64x64xbf16>, vector<64x64xf32> -> vector<64x64xf32>
    %54 = arith.addf %47, %53 : vector<64x64xf32>
    %c0_55 = arith.constant 0 : index
    %c2_56 = arith.constant 2 : index
    %c2_57 = arith.constant 2 : index
    %c0_58 = arith.constant 0 : index
    %55 = vector.load %arg1[%c0_55, %c2_56, %c2_57, %c0_58] : memref<1x10x10x64xbf16, #tpu.memory_space<vmem>>, vector<1x8x8x64xbf16>
    %56 = vector.shape_cast %55 : vector<1x8x8x64xbf16> to vector<8x8x64xbf16>
    %57 = vector.shape_cast %56 : vector<8x8x64xbf16> to vector<64x64xbf16>
    %c8 = arith.constant 8 : index
    %c0_59 = arith.constant 0 : index
    %c0_60 = arith.constant 0 : index
    %58 = vector.load %arg2[%c8, %c0_59, %c0_60] : memref<9x64x64xbf16, #tpu.memory_space<vmem>>, vector<1x64x64xbf16>
    %59 = vector.shape_cast %58 : vector<1x64x64xbf16> to vector<64x64xbf16>
    %cst_61 = arith.constant dense<0.000000e+00> : vector<64x64xf32>
    %60 = tpu.matmul %57, %59, %cst_61 {dimension_numbers = #tpu.dot_dimension_numbers<[1], [0], [0], [1], [0, 0, 1, 1], [], []>} : vector<64x64xbf16>, vector<64x64xbf16>, vector<64x64xf32> -> vector<64x64xf32>
    %61 = arith.addf %54, %60 : vector<64x64xf32>
    %c0_62 = arith.constant 0 : index
    %c0_63 = arith.constant 0 : index
    %62 = vector.load %arg3[%c0_62, %c0_63] : memref<1x64xf32, #tpu.memory_space<vmem>>, vector<1x64xf32>
    %63 = vector.broadcast %62 : vector<1x64xf32> to vector<64x64xf32>
    %64 = arith.addf %61, %63 : vector<64x64xf32>
    %cst_64 = arith.constant 0.000000e+00 : f32
    %65 = vector.broadcast %cst_64 : f32 to vector<64x64xf32>
    %66 = arith.maximumf %64, %65 : vector<64x64xf32>
    %67 = arith.extf %29 : vector<64x64xbf16> to vector<64x64xf32>
    %cst_65 = arith.constant 0.000000e+00 : bf16
    %68 = vector.broadcast %cst_65 : bf16 to vector<10x10x64xbf16>
    %c0_66 = arith.constant 0 : index
    %c0_67 = arith.constant 0 : index
    %c0_68 = arith.constant 0 : index
    %69 = vector.load %arg7[%c0_66, %c0_67, %c0_68] : memref<10x10x64xbf16, #tpu.memory_space<vmem>>, vector<10x10x64xbf16>
    tpu.vector_store %arg7[%c0_66, %c0_67, %c0_68], %68 {strides = array<i32>} : memref<10x10x64xbf16, #tpu.memory_space<vmem>>, vector<10x10x64xbf16>,
    %70 = vector.shape_cast %66 : vector<64x64xf32> to vector<8x8x64xf32>
    %71 = arith.truncf %70 : vector<8x8x64xf32> to vector<8x8x64xbf16>
    %c1_69 = arith.constant 1 : index
    %c1_70 = arith.constant 1 : index
    %c0_71 = arith.constant 0 : index
    %72 = vector.load %arg7[%c1_69, %c1_70, %c0_71] : memref<10x10x64xbf16, #tpu.memory_space<vmem>>, vector<8x8x64xbf16>
    tpu.vector_store %arg7[%c1_69, %c1_70, %c0_71], %71 {strides = array<i32>} : memref<10x10x64xbf16, #tpu.memory_space<vmem>>, vector<8x8x64xbf16>,
    %c0_72 = arith.constant 0 : index
    %c0_73 = arith.constant 0 : index
    %c0_74 = arith.constant 0 : index
    %73 = vector.load %arg7[%c0_72, %c0_73, %c0_74] : memref<10x10x64xbf16, #tpu.memory_space<vmem>>, vector<8x8x64xbf16>
    %74 = vector.shape_cast %73 : vector<8x8x64xbf16> to vector<64x64xbf16>
    %c0_75 = arith.constant 0 : index
    %c0_76 = arith.constant 0 : index
    %c0_77 = arith.constant 0 : index
    %75 = vector.load %arg4[%c0_75, %c0_76, %c0_77] : memref<9x64x64xbf16, #tpu.memory_space<vmem>>, vector<1x64x64xbf16>
    %76 = vector.shape_cast %75 : vector<1x64x64xbf16> to vector<64x64xbf16>
    %cst_78 = arith.constant dense<0.000000e+00> : vector<64x64xf32>
    %77 = tpu.matmul %74, %76, %cst_78 {dimension_numbers = #tpu.dot_dimension_numbers<[1], [0], [0], [1], [0, 0, 1, 1], [], []>} : vector<64x64xbf16>, vector<64x64xbf16>, vector<64x64xf32> -> vector<64x64xf32>
    %c0_79 = arith.constant 0 : index
    %c1_80 = arith.constant 1 : index
    %c0_81 = arith.constant 0 : index
    %78 = vector.load %arg7[%c0_79, %c1_80, %c0_81] : memref<10x10x64xbf16, #tpu.memory_space<vmem>>, vector<8x8x64xbf16>
    %79 = vector.shape_cast %78 : vector<8x8x64xbf16> to vector<64x64xbf16>
    %c1_82 = arith.constant 1 : index
    %c0_83 = arith.constant 0 : index
    %c0_84 = arith.constant 0 : index
    %80 = vector.load %arg4[%c1_82, %c0_83, %c0_84] : memref<9x64x64xbf16, #tpu.memory_space<vmem>>, vector<1x64x64xbf16>
    %81 = vector.shape_cast %80 : vector<1x64x64xbf16> to vector<64x64xbf16>
    %cst_85 = arith.constant dense<0.000000e+00> : vector<64x64xf32>
    %82 = tpu.matmul %79, %81, %cst_85 {dimension_numbers = #tpu.dot_dimension_numbers<[1], [0], [0], [1], [0, 0, 1, 1], [], []>} : vector<64x64xbf16>, vector<64x64xbf16>, vector<64x64xf32> -> vector<64x64xf32>
    %83 = arith.addf %77, %82 : vector<64x64xf32>
    %c0_86 = arith.constant 0 : index
    %c2_87 = arith.constant 2 : index
    %c0_88 = arith.constant 0 : index
    %84 = vector.load %arg7[%c0_86, %c2_87, %c0_88] : memref<10x10x64xbf16, #tpu.memory_space<vmem>>, vector<8x8x64xbf16>
    %85 = vector.shape_cast %84 : vector<8x8x64xbf16> to vector<64x64xbf16>
    %c2_89 = arith.constant 2 : index
    %c0_90 = arith.constant 0 : index
    %c0_91 = arith.constant 0 : index
    %86 = vector.load %arg4[%c2_89, %c0_90, %c0_91] : memref<9x64x64xbf16, #tpu.memory_space<vmem>>, vector<1x64x64xbf16>
    %87 = vector.shape_cast %86 : vector<1x64x64xbf16> to vector<64x64xbf16>
    %cst_92 = arith.constant dense<0.000000e+00> : vector<64x64xf32>
    %88 = tpu.matmul %85, %87, %cst_92 {dimension_numbers = #tpu.dot_dimension_numbers<[1], [0], [0], [1], [0, 0, 1, 1], [], []>} : vector<64x64xbf16>, vector<64x64xbf16>, vector<64x64xf32> -> vector<64x64xf32>
    %89 = arith.addf %83, %88 : vector<64x64xf32>
    %c1_93 = arith.constant 1 : index
    %c0_94 = arith.constant 0 : index
    %c0_95 = arith.constant 0 : index
    %90 = vector.load %arg7[%c1_93, %c0_94, %c0_95] : memref<10x10x64xbf16, #tpu.memory_space<vmem>>, vector<8x8x64xbf16>
    %91 = vector.shape_cast %90 : vector<8x8x64xbf16> to vector<64x64xbf16>
    %c3_96 = arith.constant 3 : index
    %c0_97 = arith.constant 0 : index
    %c0_98 = arith.constant 0 : index
    %92 = vector.load %arg4[%c3_96, %c0_97, %c0_98] : memref<9x64x64xbf16, #tpu.memory_space<vmem>>, vector<1x64x64xbf16>
    %93 = vector.shape_cast %92 : vector<1x64x64xbf16> to vector<64x64xbf16>
    %cst_99 = arith.constant dense<0.000000e+00> : vector<64x64xf32>
    %94 = tpu.matmul %91, %93, %cst_99 {dimension_numbers = #tpu.dot_dimension_numbers<[1], [0], [0], [1], [0, 0, 1, 1], [], []>} : vector<64x64xbf16>, vector<64x64xbf16>, vector<64x64xf32> -> vector<64x64xf32>
    %95 = arith.addf %89, %94 : vector<64x64xf32>
    %c1_100 = arith.constant 1 : index
    %c1_101 = arith.constant 1 : index
    %c0_102 = arith.constant 0 : index
    %96 = vector.load %arg7[%c1_100, %c1_101, %c0_102] : memref<10x10x64xbf16, #tpu.memory_space<vmem>>, vector<8x8x64xbf16>
    %97 = vector.shape_cast %96 : vector<8x8x64xbf16> to vector<64x64xbf16>
    %c4_103 = arith.constant 4 : index
    %c0_104 = arith.constant 0 : index
    %c0_105 = arith.constant 0 : index
    %98 = vector.load %arg4[%c4_103, %c0_104, %c0_105] : memref<9x64x64xbf16, #tpu.memory_space<vmem>>, vector<1x64x64xbf16>
    %99 = vector.shape_cast %98 : vector<1x64x64xbf16> to vector<64x64xbf16>
    %cst_106 = arith.constant dense<0.000000e+00> : vector<64x64xf32>
    %100 = tpu.matmul %97, %99, %cst_106 {dimension_numbers = #tpu.dot_dimension_numbers<[1], [0], [0], [1], [0, 0, 1, 1], [], []>} : vector<64x64xbf16>, vector<64x64xbf16>, vector<64x64xf32> -> vector<64x64xf32>
    %101 = arith.addf %95, %100 : vector<64x64xf32>
    %c1_107 = arith.constant 1 : index
    %c2_108 = arith.constant 2 : index
    %c0_109 = arith.constant 0 : index
    %102 = vector.load %arg7[%c1_107, %c2_108, %c0_109] : memref<10x10x64xbf16, #tpu.memory_space<vmem>>, vector<8x8x64xbf16>
    %103 = vector.shape_cast %102 : vector<8x8x64xbf16> to vector<64x64xbf16>
    %c5_110 = arith.constant 5 : index
    %c0_111 = arith.constant 0 : index
    %c0_112 = arith.constant 0 : index
    %104 = vector.load %arg4[%c5_110, %c0_111, %c0_112] : memref<9x64x64xbf16, #tpu.memory_space<vmem>>, vector<1x64x64xbf16>
    %105 = vector.shape_cast %104 : vector<1x64x64xbf16> to vector<64x64xbf16>
    %cst_113 = arith.constant dense<0.000000e+00> : vector<64x64xf32>
    %106 = tpu.matmul %103, %105, %cst_113 {dimension_numbers = #tpu.dot_dimension_numbers<[1], [0], [0], [1], [0, 0, 1, 1], [], []>} : vector<64x64xbf16>, vector<64x64xbf16>, vector<64x64xf32> -> vector<64x64xf32>
    %107 = arith.addf %101, %106 : vector<64x64xf32>
    %c2_114 = arith.constant 2 : index
    %c0_115 = arith.constant 0 : index
    %c0_116 = arith.constant 0 : index
    %108 = vector.load %arg7[%c2_114, %c0_115, %c0_116] : memref<10x10x64xbf16, #tpu.memory_space<vmem>>, vector<8x8x64xbf16>
    %109 = vector.shape_cast %108 : vector<8x8x64xbf16> to vector<64x64xbf16>
    %c6_117 = arith.constant 6 : index
    %c0_118 = arith.constant 0 : index
    %c0_119 = arith.constant 0 : index
    %110 = vector.load %arg4[%c6_117, %c0_118, %c0_119] : memref<9x64x64xbf16, #tpu.memory_space<vmem>>, vector<1x64x64xbf16>
    %111 = vector.shape_cast %110 : vector<1x64x64xbf16> to vector<64x64xbf16>
    %cst_120 = arith.constant dense<0.000000e+00> : vector<64x64xf32>
    %112 = tpu.matmul %109, %111, %cst_120 {dimension_numbers = #tpu.dot_dimension_numbers<[1], [0], [0], [1], [0, 0, 1, 1], [], []>} : vector<64x64xbf16>, vector<64x64xbf16>, vector<64x64xf32> -> vector<64x64xf32>
    %113 = arith.addf %107, %112 : vector<64x64xf32>
    %c2_121 = arith.constant 2 : index
    %c1_122 = arith.constant 1 : index
    %c0_123 = arith.constant 0 : index
    %114 = vector.load %arg7[%c2_121, %c1_122, %c0_123] : memref<10x10x64xbf16, #tpu.memory_space<vmem>>, vector<8x8x64xbf16>
    %115 = vector.shape_cast %114 : vector<8x8x64xbf16> to vector<64x64xbf16>
    %c7_124 = arith.constant 7 : index
    %c0_125 = arith.constant 0 : index
    %c0_126 = arith.constant 0 : index
    %116 = vector.load %arg4[%c7_124, %c0_125, %c0_126] : memref<9x64x64xbf16, #tpu.memory_space<vmem>>, vector<1x64x64xbf16>
    %117 = vector.shape_cast %116 : vector<1x64x64xbf16> to vector<64x64xbf16>
    %cst_127 = arith.constant dense<0.000000e+00> : vector<64x64xf32>
    %118 = tpu.matmul %115, %117, %cst_127 {dimension_numbers = #tpu.dot_dimension_numbers<[1], [0], [0], [1], [0, 0, 1, 1], [], []>} : vector<64x64xbf16>, vector<64x64xbf16>, vector<64x64xf32> -> vector<64x64xf32>
    %119 = arith.addf %113, %118 : vector<64x64xf32>
    %c2_128 = arith.constant 2 : index
    %c2_129 = arith.constant 2 : index
    %c0_130 = arith.constant 0 : index
    %120 = vector.load %arg7[%c2_128, %c2_129, %c0_130] : memref<10x10x64xbf16, #tpu.memory_space<vmem>>, vector<8x8x64xbf16>
    %121 = vector.shape_cast %120 : vector<8x8x64xbf16> to vector<64x64xbf16>
    %c8_131 = arith.constant 8 : index
    %c0_132 = arith.constant 0 : index
    %c0_133 = arith.constant 0 : index
    %122 = vector.load %arg4[%c8_131, %c0_132, %c0_133] : memref<9x64x64xbf16, #tpu.memory_space<vmem>>, vector<1x64x64xbf16>
    %123 = vector.shape_cast %122 : vector<1x64x64xbf16> to vector<64x64xbf16>
    %cst_134 = arith.constant dense<0.000000e+00> : vector<64x64xf32>
    %124 = tpu.matmul %121, %123, %cst_134 {dimension_numbers = #tpu.dot_dimension_numbers<[1], [0], [0], [1], [0, 0, 1, 1], [], []>} : vector<64x64xbf16>, vector<64x64xbf16>, vector<64x64xf32> -> vector<64x64xf32>
    %125 = arith.addf %119, %124 : vector<64x64xf32>
    %c0_135 = arith.constant 0 : index
    %c0_136 = arith.constant 0 : index
    %126 = vector.load %arg5[%c0_135, %c0_136] : memref<1x64xf32, #tpu.memory_space<vmem>>, vector<1x64xf32>
    %127 = vector.broadcast %126 : vector<1x64xf32> to vector<64x64xf32>
    %128 = arith.addf %125, %127 : vector<64x64xf32>
    %129 = arith.addf %128, %67 : vector<64x64xf32>
    %cst_137 = arith.constant 0.000000e+00 : f32
    %130 = vector.broadcast %cst_137 : f32 to vector<64x64xf32>
    %131 = arith.maximumf %129, %130 : vector<64x64xf32>
    %132 = arith.truncf %131 : vector<64x64xf32> to vector<64x64xbf16>
    %c0_138 = arith.constant 0 : index
    %c0_139 = arith.constant 0 : index
    %c0_140 = arith.constant 0 : index
    %133 = vector.load %arg6[%c0_138, %c0_139, %c0_140] : memref<1x64x64xbf16, #tpu.memory_space<vmem>>, vector<1x64x64xbf16>
    %134 = vector.shape_cast %133 : vector<1x64x64xbf16> to vector<64x64xbf16>
    %135 = vector.shape_cast %132 : vector<64x64xbf16> to vector<1x64x64xbf16>
    tpu.vector_store %arg6[%c0_138, %c0_139, %c0_140], %135 {strides = array<i32>} : memref<1x64x64xbf16, #tpu.memory_space<vmem>>, vector<1x64x64xbf16>,
    return
  }
  func.func @transform_0(%arg0: i32) -> (i32, i32, i32, i32) {
    %c0_i32 = arith.constant 0 : i32
    %c0_i32_0 = arith.constant 0 : i32
    %c0_i32_1 = arith.constant 0 : i32
    %c0_i32_2 = arith.constant 0 : i32
    return %arg0, %c0_i32, %c0_i32_0, %c0_i32_1 : i32, i32, i32, i32
  }
  func.func @transform_1(%arg0: i32) -> (i32, i32, i32) {
    %c0_i32 = arith.constant 0 : i32
    %c0_i32_0 = arith.constant 0 : i32
    %c0_i32_1 = arith.constant 0 : i32
    %c0_i32_2 = arith.constant 0 : i32
    return %c0_i32, %c0_i32_0, %c0_i32_1 : i32, i32, i32
  }
  func.func @transform_2(%arg0: i32) -> (i32, i32) {
    %c0_i32 = arith.constant 0 : i32
    %c0_i32_0 = arith.constant 0 : i32
    %c0_i32_1 = arith.constant 0 : i32
    return %c0_i32, %c0_i32_0 : i32, i32
  }
  func.func @transform_3(%arg0: i32) -> (i32, i32, i32) {
    %c0_i32 = arith.constant 0 : i32
    %c0_i32_0 = arith.constant 0 : i32
    %c0_i32_1 = arith.constant 0 : i32
    %c0_i32_2 = arith.constant 0 : i32
    return %c0_i32, %c0_i32_0, %c0_i32_1 : i32, i32, i32
  }
  func.func @transform_4(%arg0: i32) -> (i32, i32) {
    %c0_i32 = arith.constant 0 : i32
    %c0_i32_0 = arith.constant 0 : i32
    %c0_i32_1 = arith.constant 0 : i32
    return %c0_i32, %c0_i32_0 : i32, i32
  }
  func.func @transform_5(%arg0: i32) -> (i32, i32, i32) {
    %c0_i32 = arith.constant 0 : i32
    %c0_i32_0 = arith.constant 0 : i32
    %c0_i32_1 = arith.constant 0 : i32
    return %arg0, %c0_i32, %c0_i32_0 : i32, i32, i32
  }
}

</mosaic_0001>

<bundles_post_ra>
// kernel: pallas_forward.2
= control target key start
LH: loop header
LB: loop body
LE: loop exit
PB: predicated region body
PF: predicated region fallthrough
CT: control target
= control target key end

     0   :  { %s5113_s24 = smov 0   ;;  %s5912_s0 = inlined_call_operand.vmem [shape: bf16[8,9,9,32], index: 0, kind: input, shape index: {}]   ;;  %s5913_s1 = inlined_call_operand.vmem [shape: bf16[9,32,64], index: 1, kind: input, shape index: {}]   ;;  %s5914_s2 = inlined_call_operand.vmem [shape: f32[1,64], index: 2, kind: input, shape index: {}]   ;;  %s5915_s3 = inlined_call_operand.vmem [shape: bf16[9,64,64], index: 3, kind: input, shape index: {}]   ;;  %s5916_s4 = inlined_call_operand.vmem [shape: f32[1,64], index: 4, kind: input, shape index: {}]   ;;  %s5917_s5 = inlined_call_operand.vmem [shape: bf16[1,32,64], index: 5, kind: input, shape index: {}]   ;;  %s5918_s6 = inlined_call_operand.vmem [shape: f32[1,64], index: 6, kind: input, shape index: {}]   ;;  %s5919_s7 = inlined_call_operand.vmem [shape: bf16[2,64,64], index: 7, kind: output, shape index: {}]  }
   0x1 LB: > { %s5119_s25 = sadd.s32 4294967295, %s5070_s24   ;;  %p3963_p0 = scmp.ge.s32.totalorder %s5070_s24, 1  ;;  %s5070_s24 = sphi %s5113_s24, %s17_s24  }
   0x2   : > { %p239_p1 = scmp.lt.s32.totalorder %s5070_s24, 3 }
   0x4   : > { %p240_p2 = pnand %p3963_p0, %p239_p1 }
   0x5   : > { %v4968_v0 = vld [vmem:[%s5913_s1 + $0x10] sm:$0xff] (!%p240_p2)   ;;  %s3964_s28 = sshll.u32 (!%p240_p2), %s5119_s25, 2  ;;  %v4969_v1 = vld [vmem:[%s5913_s1 + $0x18] sm:$0xff] (!%p240_p2)   ;;  %v4971_v2 = vld [vmem:[%s5913_s1] sm:$0xff] (!%p240_p2)   ;;  %vm343_vm0 = vcmask (!%p240_p2), 261120   ;;  %vm1894_vm4 = vcmask (!%p240_p2), 519168  }
   0x6   : > { %243 = sbr.rel (%p240_p2) target bundleno = 760 (0x2f8), region = 48  ;;  %p273_p3 = scmp.lt.s32.totalorder (!%p240_p2), %s3964_s28, 7  ;;  %4534 = vmatprep.subr.bf16.mxu0 (!%p240_p2), %v4968_v0  ;;  %v4974_v3 = vld [vmem:[%s5913_s1 + $0x8] sm:$0xff] (!%p240_p2)   ;;  %v5150_v7 = vld [vmem:[%s5913_s1 + $0x20] sm:$0xff] (!%p240_p2)   ;;  %vm546_vm1 = vsmask.f32 (!%p240_p2), 3328 }
   0x7   : > { %4535 = vmatpush3.bf16.msra.mxu0 (!%p240_p2), %v4968_v0  ;;  %vm547_vm2 = vsmask.f32 (!%p240_p2), 7440  ;;  %v4980_v42 = vld [vmem:[%s5913_s1 + $0x28] sm:$0xff] (!%p240_p2)   ;;  %v4982_v62 = vld [vmem:[%s5913_s1 + $0x30] sm:$0xff] (!%p240_p2)   ;;  %vm1896_vm5 = vcmask (!%p240_p2), 516096   ;;  %vm2487_vm10 = vcmask (!%p240_p2), 1042432  }
   0x8   : > { %4536 = vmatprep.subr.bf16.mxu0 (!%p240_p2), %v4969_v1  ;;  %vm5174_vm3 = vmor (!%p240_p2), %vm546_vm1, %vm547_vm2  ;;  %vm2030_vm6 = vsmask.f32 (!%p240_p2), 7938  ;;  %vm2036_vm7 = vsmask.f32 (!%p240_p2), 256  ;;  %vm2488_vm11 = vcmask (!%p240_p2), 1046532   ;;  %vm2264_vm12 = vcmask (!%p240_p2), 523264  }
   0x9   : > { %vm5448_vm8 = vmand (!%p240_p2), %vm1894_vm4, %vm2030_vm6  ;;  %v5063_v48 = vld [vmem:[%s5915_s3 + $0x118] sm:$0xff] (!%p240_p2)   ;;  %p279_p4 = scmp.lt.s32.totalorder (!%p240_p2), %s5119_s25, 1 }
   0xa   : > { %vm5455_vm9 = vmand (!%p240_p2), %vm1896_vm5, %vm2036_vm7 }
   0xb   : > { %4537 = vmatpush3.bf16.msra.mxu0 (!%p240_p2), %v4969_v1  ;;  %vm5501_vm13 = vmor (!%p240_p2), %vm2487_vm10, %vm2488_vm11 }
   0xc   : > { %4546 = vmatprep.subr.bf16.mxu0 (!%p240_p2), %v4971_v2 }
   0xd   : > { %s5929_s28 = smov (!%p273_p3, %s3964_s28), 7  ;;  %s5931_s25 = smov (!%p279_p4, %s5119_s25), 1 }
   0xe   : > { %s4958_s10 = smul.u32 72, %s5929_s28  ;;  %s4385_s8 = sshll.u32 %s5931_s25, 5 }
   0xf   : > { %s5891_s11 = scalar_lea.vmem %s5919_s7, %s4385_s8 }
  0x10   : > { %s5136_s13 = scalar_lea.vmem %s5912_s0, %s4958_s10 }
  0x11   : > { %v4970_v4 = vld [vmem:[%s5136_s13 + $0x48] ss:$8 sps:$4 sm:$0xff]   ;;  %v4972_v5 = vld [vmem:[%s5136_s13 + $0x58] ss:$8 sps:$4 sm:$0xff]   ;;  %v531_v11 = vld [vmem:[%s5136_s13 + $0x4] sm:$0x1] }
  0x12   : > { %4538 = vmatprep.mubr.msk.bf16.mxu0 %vm343_vm0, %v4970_v4  ;;  %v4973_v6 = vld [vmem:[%s5136_s13 + $0x68] ss:$8 sps:$4 sm:$0xff]   ;;  %v4975_v8 = vld [vmem:[%s5136_s13 + $0x78] ss:$8 sps:$4 sm:$0xff]   ;;  %v533_v13 = vld [vmem:[%s5136_s13 + $0xc] sm:$0x1] }
  0x13   : > { %4539 = vmatmul.mubr.msk.bf16.vlgmr.msra.gmra.mrb[0].mxu0 %vm343_vm0, %v4972_v5  ;;  %v4976_v9 = vld [vmem:[%s5136_s13] ss:$8 sps:$4 sm:$0xff]   ;;  %v559_v16 = vshll.u32 %v531_v11, 16  ;;  %v573_v19 = vshll.u32 %v533_v13, 16  ;;  %v534_v20 = vld [vmem:[%s5136_s13 + $0x10] sm:$0xf] }
  0x14   : > { %4547 = vmatpush3.bf16.msra.mxu0 %v4971_v2  ;;  %4542 = vmatprep.mubr.msk.bf16.mxu0 %vm343_vm0, %v4973_v6  ;;  %v530_v10 = vld [vmem:[%s5136_s13] sm:$0xf]  ;;  %v532_v12 = vld [vmem:[%s5136_s13 + $0x8] sm:$0xf]  ;;  %v535_v21 = vld [vmem:[%s5136_s13 + $0x14] sm:$0x1] }
  0x15   : > { %4548 = vmatprep.subr.bf16.mxu0 %v4974_v3  ;;  %v550_v14 = vshrl.u32 %v530_v10, 16  ;;  %v553_v15 = vshll.u32 %v530_v10, 16  ;;  %v564_v17 = vshrl.u32 %v532_v12, 16  ;;  %v567_v18 = vshll.u32 %v532_v12, 16  ;;  %v536_v25 = vld [vmem:[%s5136_s13 + $0x18] sm:$0xf] }
  0x16   : > { %v561_v26 = vrot.slane %v559_v16, 5  ;;  %v537_v28 = vld [vmem:[%s5136_s13 + $0x1c] sm:$0x1]  ;;  %v578_v29 = vshrl.u32 %v534_v20, 16  ;;  %v581_v30 = vshll.u32 %v534_v20, 16  ;;  %v587_v33 = vshll.u32 %v535_v21, 16 }
  0x17   : > { %v552_v22 = vrot.slane %v550_v14, 4  ;;  %v555_v23 = vrot.slane %v553_v15, 5  ;;  %v566_v24 = vrot.slane %v564_v17, 4  ;;  %v569_v27 = vrot.slane %v567_v18, 5  ;;  %v4978_v31 = vld [vmem:[%s5136_s13 + $0x10] ss:$8 sps:$4 sm:$0xff]  }
  0x18   : > { %4549 = vmatpush3.bf16.msra.mxu0 %v4974_v3  ;;  %v592_v34 = vshrl.u32 %v536_v25, 16  ;;  %v595_v35 = vshll.u32 %v536_v25, 16  ;;  %v538_v36 = vld [vmem:[%s5136_s13 + $0x20] sm:$0xf]  ;;  %v575_v39 = vrot.slane %v573_v19, 5  ;;  %v580_v40 = vrot.slane %v578_v29, 4 }
  0x19   : > { %4558 = vmatprep.subr.bf16.mxu0 %v5150_v7  ;;  %v556_v32 = vor.u32 %v555_v23, %v552_v22  ;;  %v4979_v37 = vld [vmem:[%s5136_s13 + $0x20] ss:$8 sps:$4 sm:$0xff]   ;;  %v570_v38 = vor.u32 %v569_v27, %v566_v24  ;;  %v583_v41 = vrot.slane %v581_v30, 5  ;;  %v601_v46 = vshll.u32 %v537_v28, 16  ;;  %v539_v50 = vld [vmem:[%s5136_s13 + $0x24] sm:$0x1] }
  0x1a   : > { %v594_v44 = vrot.slane %v592_v34, 4  ;;  %v597_v45 = vrot.slane %v595_v35, 5  ;;  %v540_v47 = vld [vmem:[%s5136_s13 + $0x28] sm:$0xf]  ;;  %v541_v51 = vld [vmem:[%s5136_s13 + $0x2c] sm:$0x1] }
  0x1b   : > { %4543 = vmatmul.mubr.msk.bf16.gmra.mrb[4].mxu0 %vm343_vm0, %v4975_v8  ;;  %v557_v43 = vrot.slane %v556_v32, 4  ;;  %v571_v49 = vrot.slane %v570_v38, 4  ;;  %v606_v52 = vshrl.u32 %v538_v36, 16  ;;  %v589_v53 = vrot.slane %v587_v33, 5  ;;  %v542_v59 = vld [vmem:[%s5136_s13 + $0x30] sm:$0xf] }
  0x1c   : > { %4550 = vmatprep.mubr.msk.bf16.mxu0 %vm343_vm0, %v4976_v9  ;;  %v609_v54 = vshll.u32 %v538_v36, 16  ;;  %v584_v55 = vor.u32 %v583_v41, %v580_v40  ;;  %v598_v56 = vor.u32 %v597_v45, %v594_v44  ;;  %v620_v58 = vshrl.u32 %v540_v47, 16  ;;  %v544_v5 = vld [vmem:[%s5136_s13 + $0x38] sm:$0xf]  ;;  %v543_v9 = vld [vmem:[%s5136_s13 + $0x34] sm:$0x1] }
  0x1d   : > { %v608_v57 = vrot.slane %v606_v52, 4  ;;  %v562_v60 = vsel %vm5174_vm3, %v557_v43, %v561_v26  ;;  %v576_v61 = vsel %vm5174_vm3, %v571_v49, %v575_v39  ;;  %v615_v0 = vshll.u32 %v539_v50, 16  ;;  %v4981_v6 = vld [vmem:[%s5136_s13 + $0x30] ss:$8 sps:$4 sm:$0xff]   ;;  %v4985_v45 = vld [vmem:[%s5913_s1 + $0x40] sm:$0xff]  }
  0x1e   : > { %v611_v63 = vrot.slane %v609_v54, 5  ;;  %v603_v1 = vrot.slane %v601_v46, 5  ;;  %v622_v2 = vrot.slane %v620_v58, 4  ;;  %v623_v3 = vshll.u32 %v540_v47, 16  ;;  %v4990_v40 = vld [vmem:[%s5136_s13 + $0xd8] ss:$8 sps:$4 sm:$0xff]  }
  0x1f   : > { %v629_v4 = vshll.u32 %v541_v51, 16  ;;  %v634_v10 = vshrl.u32 %v542_v59, 16  ;;  %v637_v11 = vshll.u32 %v542_v59, 16  ;;  %v4004_v12 = vcombine.low %v562_v60, %v576_v61  ;;  %4646 = vmatprep.mubr.msk.bf16.mxu1 %vm343_vm0, %v4990_v40  ;;  %v4984_v47 = vld [vmem:[%s5136_s13 + $0x90] ss:$8 sps:$4 sm:$0xff]  }
  0x20   : > { %v612_v8 = vor.u32 %v611_v63, %v608_v57  ;;  %v585_v13 = vrot.slane %v584_v55, 4  ;;  %v599_v14 = vrot.slane %v598_v56, 4  ;;  %v625_v15 = vrot.slane %v623_v3, 5  ;;  %v4058_v49 = vld [vmem:[%s5136_s13 + $0x90] sm:$0xf]  ;;  %v4988_v57 = vld [vmem:[%s5913_s1 + $0x48] sm:$0xff]  }
  0x21   : > { %v617_v16 = vrot.slane %v615_v0, 5  ;;  %v636_v17 = vrot.slane %v634_v10, 4  ;;  %v639_v18 = vrot.slane %v637_v11, 5  ;;  %v648_v19 = vshrl.u32 %v544_v5, 16  ;;  %v4986_v50 = vld [vmem:[%s5136_s13 + $0xa0] ss:$8 sps:$4 sm:$0xff]  }
  0x22   : > { %v626_v20 = vor.u32 %v625_v15, %v622_v2  ;;  %v631_v21 = vrot.slane %v629_v4, 5  ;;  %v643_v22 = vshll.u32 %v543_v9, 16  ;;  %v651_v23 = vshll.u32 %v544_v5, 16  ;;  %v4059_v51 = vld [vmem:[%s5136_s13 + $0x94] sm:$0x1] }
  0x23   : > { %4551 = vmatmul.mubr.msk.bf16.vlgmr.msra.gmra.mrb[0].mxu0 %vm343_vm0, %v4978_v31  ;;  %v613_v24 = vrot.slane %v612_v8, 4  ;;  %v650_v25 = vrot.slane %v648_v19, 4  ;;  %v640_v27 = vor.u32 %v639_v18, %v636_v17  ;;  %v590_v30 = vsel %vm5174_vm3, %v585_v13, %v589_v53  ;;  %v4060_v52 = vld [vmem:[%s5136_s13 + $0x98] sm:$0xf]  ;;  %v4061_v53 = vld [vmem:[%s5136_s13 + $0x9c] sm:$0x1] }
  0x24   : > { %4559 = vmatpush3.bf16.msra.mxu0 %v5150_v7  ;;  %4554 = vmatprep.mubr.msk.bf16.mxu0 %vm343_vm0, %v4979_v37  ;;  %v545_v7 = vld [vmem:[%s5136_s13 + $0x3c] sm:$0x1]  ;;  %v627_v26 = vrot.slane %v626_v20, 4  ;;  %v653_v28 = vrot.slane %v651_v23, 5  ;;  %v604_v31 = vsel %vm5174_vm3, %v599_v14, %v603_v1  ;;  %v645_v36 = vrot.slane %v643_v22, 5  ;;  %v4991_v0 = vld [vmem:[%s5913_s1 + $0x50] sm:$0xff]  }
  0x25   : > { %4560 = vmatprep.subr.bf16.mxu0 %v4980_v42  ;;  %v657_v29 = vshll.u32 %v545_v7, 16  ;;  %v618_v33 = vsel %vm5174_vm3, %v613_v24, %v617_v16  ;;  %v641_v35 = vrot.slane %v640_v27, 4  ;;  %v4005_v39 = vcombine.low %v590_v30, %v604_v31  ;;  %v4987_v56 = vld [vmem:[%s5136_s13 + $0xb0] ss:$8 sps:$4 sm:$0xff]   ;;  %v4062_v1 = vld [vmem:[%s5136_s13 + $0xa0] sm:$0xf] }
  0x26   : > { %v654_v32 = vor.u32 %v653_v28, %v650_v25  ;;  %v632_v34 = vsel %vm5174_vm3, %v627_v26, %v631_v21  ;;  %v1054_v54 = vshrl.u32 %v4058_v49, 16  ;;  %v1057_v55 = vshll.u32 %v4058_v49, 16  ;;  %v4989_v2 = vld [vmem:[%s5136_s13 + $0xc0] ss:$8 sps:$4 sm:$0xff]   ;;  %v4066_v14 = vld [vmem:[%s5136_s13 + $0xb0] sm:$0xf] }
  0x27   : > { %v659_v38 = vrot.slane %v657_v29, 5  ;;  %v4006_v41 = vcombine.low %v618_v33, %v632_v34  ;;  %v646_v43 = vsel %vm5174_vm3, %v641_v35, %v645_v36  ;;  %v1063_v58 = vshll.u32 %v4059_v51, 16  ;;  %v4064_v3 = vld [vmem:[%s5136_s13 + $0xa8] sm:$0xf]  ;;  %v4068_v16 = vld [vmem:[%s5136_s13 + $0xb8] sm:$0xf] }
  0x28   : > { %4561 = vmatpush3.bf16.msra.mxu0 %v4980_v42  ;;  %v655_v37 = vrot.slane %v654_v32, 4  ;;  %v4983_v42 = vld [vmem:[%s5913_s1 + $0x38] sm:$0xff]   ;;  %v1068_v59 = vshrl.u32 %v4060_v52, 16  ;;  %v1071_v60 = vshll.u32 %v4060_v52, 16  ;;  %v1077_v61 = vshll.u32 %v4061_v53, 16  ;;  %v4996_v51 = vld [vmem:[%s5913_s1 + $0x60] sm:$0xff]  }
  0x29   : > { %4570 = vmatprep.subr.bf16.mxu0 %v4982_v62  ;;  %v1059_v63 = vrot.slane %v1057_v55, 5  ;;  %v5239_v4 = vrot.slane %v1063_v58, 5  ;;  %v1082_v10 = vshrl.u32 %v4062_v1, 16  ;;  %v1085_v11 = vshll.u32 %v4062_v1, 16  ;;  %v5246_v20 = vld [vmem:[%s5136_s13 + $0xe8] ss:$8 sps:$4 sm:$0xff]  }
  0x2a   : > { %v660_v44 = vsel %vm5174_vm3, %v655_v37, %v659_v38  ;;  %v1070_v5 = vrot.slane %v1068_v59, 4  ;;  %v1079_v8 = vrot.slane %v1077_v61, 5  ;;  %v1099_v13 = vshll.u32 %v4064_v3, 16  ;;  %v4063_v21 = vld [vmem:[%s5136_s13 + $0xa4] sm:$0x1]  ;;  %v4994_v27 = vld [vmem:[%s5913_s1 + $0x58] sm:$0xff]  }
  0x2b   : > { %4555 = vmatmul.mubr.msk.bf16.gmra.mrb[4].mxu0 %vm343_vm0, %v4981_v6  ;;  %v4007_v46 = vcombine.low %v646_v43, %v660_v44  ;;  %v1073_v6 = vrot.slane %v1071_v60, 5  ;;  %v1084_v17 = vrot.slane %v1082_v10, 4  ;;  %v1110_v18 = vshrl.u32 %v4066_v14, 16  ;;  %v4065_v22 = vld [vmem:[%s5136_s13 + $0xac] sm:$0x1] }
  0x2c   : > { %4562 = vmatprep.mubr.msk.bf16.mxu0 %vm343_vm0, %v4004_v12  ;;  %v1096_v12 = vshrl.u32 %v4064_v3, 16  ;;  %v1113_v19 = vshll.u32 %v4066_v14, 16  ;;  %v1124_v23 = vshrl.u32 %v4068_v16, 16  ;;  %v1127_v24 = vshll.u32 %v4068_v16, 16  ;;  %v5254_v30 = vld [vmem:[%s5136_s13 + $0xf8] ss:$8 sps:$4 sm:$0xff]  }
  0x2d   : > { %v1074_v15 = vor.u32 %v1073_v6, %v1070_v5  ;;  %v1087_v26 = vrot.slane %v1085_v11, 5  ;;  %v1101_v29 = vrot.slane %v1099_v13, 5  ;;  %v4067_v31 = vld [vmem:[%s5136_s13 + $0xb4] sm:$0x1]  ;;  %v4070_v32 = vld [vmem:[%s5136_s13 + $0xc0] sm:$0xf] }
  0x2e   : > { %v1098_v28 = vrot.slane %v1096_v12, 4  ;;  %v1112_v33 = vrot.slane %v1110_v18, 4  ;;  %v1115_v34 = vrot.slane %v1113_v19, 5  ;;  %v1126_v35 = vrot.slane %v1124_v23, 4  ;;  %v4072_v37 = vld [vmem:[%s5136_s13 + $0xc8] sm:$0xf] }
  0x2f   : > { %v1075_v25 = vrot.slane %v1074_v15, 4  ;;  %v1129_v36 = vrot.slane %v1127_v24, 5  ;;  %v1088_v43 = vor.u32 %v1087_v26, %v1084_v17  ;;  %v1152_v49 = vshrl.u32 %v4072_v37, 16  ;;  %v5274_v58 = vld [vmem:[%s5136_s13 + $0x108] ss:$8 sps:$4 sm:$0xff]  }
  0x30   : > { %v1102_v44 = vor.u32 %v1101_v29, %v1098_v28  ;;  %v1116_v52 = vor.u32 %v1115_v34, %v1112_v33  ;;  %v4073_v6 = vld [vmem:[%s5136_s13 + $0xcc] sm:$0x1]  ;;  %v4132_v14 = vld [vmem:[%s5136_s13 + $0x8] sm:$0xf]  ;;  %v4134_v18 = vld [vmem:[%s5136_s13 + $0x10] sm:$0xf] }
  0x31   : > { %v1130_v53 = vor.u32 %v1129_v36, %v1126_v35  ;;  %v1089_v60 = vrot.slane %v1088_v43, 4  ;;  %v1154_v1 = vrot.slane %v1152_v49, 4  ;;  %v1161_v13 = vshll.u32 %v4073_v6, 16  ;;  %v4133_v17 = vld [vmem:[%s5136_s13 + $0xc] sm:$0x1]  ;;  %v4999_v34 = vld [vmem:[%s5913_s1 + $0x70] sm:$0xff]  }
  0x32   : > { %v1103_v61 = vrot.slane %v1102_v44, 4  ;;  %v1117_v3 = vrot.slane %v1116_v52, 4  ;;  %v1561_v23 = vshll.u32 %v4132_v14, 16  ;;  %v4997_v28 = vld [vmem:[%s5913_s1 + $0x68] sm:$0xff]   ;;  %v1567_v29 = vshll.u32 %v4133_v17, 16 }
  0x33   : > { %4563 = vmatmul.mubr.msk.bf16.vlgmr.msra.gmra.mrb[0].mxu0 %vm343_vm0, %v4005_v39  ;;  %v1091_v39 = vshll.u32 %v4063_v21, 16  ;;  %v4135_v21 = vld [vmem:[%s5136_s13 + $0x14] sm:$0x1]  ;;  %v5000_v43 = vld [vmem:[%s5136_s13 + $0x18] ss:$8 sps:$4 sm:$0xff]  }
  0x34   : > { %4571 = vmatpush3.bf16.msra.mxu0 %v4982_v62  ;;  %4566 = vmatprep.mubr.msk.bf16.mxu0 %vm343_vm0, %v4006_v41  ;;  %v1056_v62 = vrot.slane %v1054_v54, 4  ;;  %v4069_v41 = vld [vmem:[%s5136_s13 + $0xbc] sm:$0x1]  ;;  %v1581_v33 = vshll.u32 %v4135_v21, 16  ;;  %v1563_v36 = vrot.slane %v1561_v23, 5 }
  0x35   : > { %4572 = vmatprep.subr.bf16.mxu0 %v4983_v42  ;;  %v1133_v54 = vshll.u32 %v4069_v41, 16  ;;  %v1093_v55 = vrot.slane %v1091_v39, 5  ;;  %v4998_v39 = vld [vmem:[%s5136_s13 + $0x8] ss:$8 sps:$4 sm:$0xff]   ;;  %v4136_v49 = vld [vmem:[%s5136_s13 + $0x18] sm:$0xf] }
  0x36   : > { %v1060_v9 = vor.u32 %v1059_v63, %v1056_v62  ;;  %v5001_v44 = vld [vmem:[%s5136_s13 + $0x28] ss:$8 sps:$4 sm:$0xff]   ;;  %v1586_v52 = vshrl.u32 %v4136_v49, 16  ;;  %v4141_v23 = vld [vmem:[%s5136_s13 + $0x2c] sm:$0x1] }
  0x37   : > { %v1135_v5 = vrot.slane %v1133_v54, 5  ;;  %v4140_v54 = vld [vmem:[%s5136_s13 + $0x28] sm:$0xf] }
  0x38   : > { %4573 = vmatpush3.bf16.msra.mxu0 %v4983_v42  ;;  %v1061_v7 = vrot.slane %v1060_v9, 4  ;;  %v1080_v42 = vsel %vm5174_vm3, %v1075_v25, %v1079_v8  ;;  %v1094_v9 = vsel %vm5174_vm3, %v1089_v60, %v1093_v55  ;;  %v4142_v55 = vld [vmem:[%s5136_s13 + $0x30] sm:$0xf] }
  0x39   : > { %4582 = vmatprep.subr.bf16.mxu0 %v4985_v45 }
  0x3a   : > { %v1066_v38 = vsel %vm5174_vm3, %v1061_v7, %v5239_v4  ;;  %v1131_v4 = vrot.slane %v1130_v53, 4  ;;  %v1589_v53 = vshll.u32 %v4136_v49, 16 }
  0x3b   : > { %4567 = vmatmul.mubr.msk.bf16.gmra.mrb[4].mxu0 %vm343_vm0, %v4007_v46  ;;  %v1138_v46 = vshrl.u32 %v4070_v32, 16  ;;  %v4078_v59 = vcombine.low %v1066_v38, %v1080_v42 }
  0x3c   : > { %4574 = vmatprep.mubr.msk.bf16.mxu0 %vm343_vm0, %v4984_v47  ;;  %v1141_v47 = vshll.u32 %v4070_v32, 16  ;;  %v1136_v16 = vsel %vm5174_vm3, %v1131_v4, %v1135_v5  ;;  %v1575_v32 = vshll.u32 %v4134_v18, 16  ;;  %v4137_v4 = vld [vmem:[%s5136_s13 + $0x1c] sm:$0x1]  ;;  %v1588_v5 = vrot.slane %v1586_v52, 4 }
  0x3d   : > { %v1140_v63 = vrot.slane %v1138_v46, 4  ;;  %v5005_v46 = vld [vmem:[%s5913_s1 + $0x80] sm:$0xff]   ;;  %v1591_v6 = vrot.slane %v1589_v53, 5  ;;  %v1595_v21 = vshll.u32 %v4137_v4, 16 }
  0x3e   : > { %v1577_v41 = vrot.slane %v1575_v32, 5 }
  0x43   : > { %4575 = vmatmul.mubr.msk.bf16.vlgmr.msra.gmra.mrb[0].mxu0 %vm343_vm0, %v4986_v50  ;;  %v1155_v50 = vshll.u32 %v4072_v37, 16 }
  0x44   : > { %4583 = vmatpush3.bf16.msra.mxu0 %v4985_v45  ;;  %4578 = vmatprep.mubr.msk.bf16.mxu0 %vm343_vm0, %v4987_v56  ;;  %v1119_v45 = vshll.u32 %v4067_v31, 16  ;;  %v1572_v31 = vshrl.u32 %v4134_v18, 16 }
  0x45   : > { %4584 = vmatprep.subr.bf16.mxu0 %v4988_v57 }
  0x46   : > { %v1121_v62 = vrot.slane %v1119_v45, 5  ;;  %v5002_v45 = vld [vmem:[%s5913_s1 + $0x78] sm:$0xff]  }
  0x48   : > { %4585 = vmatpush3.bf16.msra.mxu0 %v4988_v57  ;;  %v4071_v57 = vld [vmem:[%s5136_s13 + $0xc4] sm:$0x1]  ;;  %v1122_v15 = vsel %vm5174_vm3, %v1117_v3, %v1121_v62  ;;  %v1614_v62 = vshrl.u32 %v4140_v54, 16  ;;  %v1583_v3 = vrot.slane %v1581_v33, 5 }
  0x49   : > { %4594 = vmatprep.subr.bf16.mxu0 %v4991_v0  ;;  %v1147_v8 = vshll.u32 %v4071_v57, 16  ;;  %v4080_v24 = vcombine.low %v1122_v15, %v1136_v16  ;;  %v4144_v15 = vld [vmem:[%s5136_s13 + $0x38] sm:$0xf] }
  0x4a   : > { %v1616_v16 = vrot.slane %v1614_v62, 4 }
  0x4b   : > { %4579 = vmatmul.mubr.msk.bf16.gmra.mrb[4].mxu0 %vm343_vm0, %v4989_v2  ;;  %v1157_v2 = vrot.slane %v1155_v50, 5  ;;  %v1149_v7 = vrot.slane %v1147_v8, 5  ;;  %v5004_v50 = vld [vmem:[%s5136_s13 + $0x50] ss:$8 sps:$4 sm:$0xff]  }
  0x4c   : > { %4586 = vmatprep.mubr.msk.bf16.mxu0 %vm343_vm0, %v4990_v40  ;;  %v1105_v40 = vshll.u32 %v4065_v22, 16  ;;  %v1558_v22 = vshrl.u32 %v4132_v14, 16  ;;  %v5008_v14 = vld [vmem:[%s5913_s1 + $0x88] sm:$0xff]  }
  0x4d   : > { %v1158_v12 = vor.u32 %v1157_v2, %v1154_v1  ;;  %v1631_v1 = vshll.u32 %v4142_v55, 16  ;;  %v1569_v2 = vrot.slane %v1567_v29, 5  ;;  %v1642_v29 = vshrl.u32 %v4144_v15, 16 }
  0x4e   : > { %v1107_v56 = vrot.slane %v1105_v40, 5  ;;  %v1560_v35 = vrot.slane %v1558_v22, 4  ;;  %v1574_v40 = vrot.slane %v1572_v31, 4  ;;  %v1645_v31 = vshll.u32 %v4144_v15, 16  ;;  %v5014_v15 = vld [vmem:[%s5915_s3 + $0x28] sm:$0xff]  }
  0x4f   : > { %v1159_v26 = vrot.slane %v1158_v12, 4  ;;  %v1633_v18 = vrot.slane %v1631_v1, 5 }
  0x50   : > { %v1108_v10 = vsel %vm5174_vm3, %v1103_v61, %v1107_v56  ;;  %v1564_v56 = vor.u32 %v1563_v36, %v1560_v35  ;;  %v1578_v57 = vor.u32 %v1577_v41, %v1574_v40  ;;  %v5006_v61 = vld [vmem:[%s5136_s13 + $0x60] ss:$8 sps:$4 sm:$0xff]   ;;  %v1623_v35 = vshll.u32 %v4141_v23, 16 }
  0x51   : > { %v4079_v19 = vcombine.low %v1094_v9, %v1108_v10  ;;  %v4139_v10 = vld [vmem:[%s5136_s13 + $0x24] sm:$0x1] }
  0x52   : > { %v1565_v8 = vrot.slane %v1564_v56, 4  ;;  %v1579_v9 = vrot.slane %v1578_v57, 4  ;;  %v1609_v22 = vshll.u32 %v4139_v10, 16  ;;  %v5072_v10 = vmov 0  }
  0x53   : > { %4587 = vmatmul.mubr.msk.bf16.vlgmr.msra.gmra.mrb[0].mxu0 %vm343_vm0, %v5246_v20  ;;  %1902 = vst.msk [vmem:[#allocation2 + $0x18] sm:$0xf] %vm1894_vm4, %v5072_v10  ;;  %1895 = vst.msk [vmem:[#allocation2] sm:$0xf] %vm1894_vm4, %v5072_v10 }
  0x54   : > { %4595 = vmatpush3.bf16.msra.mxu0 %v4991_v0  ;;  %4590 = vmatprep.mubr.msk.bf16.mxu0 %vm343_vm0, %v5254_v30  ;;  %v1143_v0 = vrot.slane %v1141_v47, 5  ;;  %v5003_v47 = vld [vmem:[%s5136_s13 + $0x38] ss:$8 sps:$4 sm:$0xff]   ;;  %1903 = vst.msk [vmem:[#allocation2 + $0x1c] sm:$0x1] %vm1896_vm5, %v5072_v10 }
  0x55   : > { %4596 = vmatprep.subr.bf16.mxu0 %v4994_v27  ;;  %1897 = vst.msk [vmem:[#allocation2 + $0x4] sm:$0x1] %vm1896_vm5, %v5072_v10  ;;  %1899 = vst.msk [vmem:[#allocation2 + $0xc] sm:$0x1] %vm1896_vm5, %v5072_v10 }
  0x56   : > { %v1144_v11 = vor.u32 %v1143_v0, %v1140_v63  ;;  %v1617_v63 = vshll.u32 %v4140_v54, 16  ;;  %v1628_v0 = vshrl.u32 %v4142_v55, 16  ;;  %v4147_v54 = vld [vmem:[%s5136_s13 + $0x44] sm:$0x1]  ;;  %1898 = vst.msk [vmem:[#allocation2 + $0x8] sm:$0xf] %vm1894_vm4, %v5072_v10 }
  0x57   : > { %1900 = vst.msk [vmem:[#allocation2 + $0x10] sm:$0xf] %vm1894_vm4, %v5072_v10  ;;  %1904 = vst.msk [vmem:[#allocation2 + $0x20] sm:$0xf] %vm1894_vm4, %v5072_v10 }
  0x58   : > { %4597 = vmatpush3.bf16.msra.mxu0 %v4994_v27  ;;  %v1145_v25 = vrot.slane %v1144_v11, 4  ;;  %v1163_v27 = vrot.slane %v1161_v13, 5  ;;  %v5007_v13 = vld [vmem:[%s5136_s13 + $0x70] ss:$8 sps:$4 sm:$0xff]   ;;  %v1630_v17 = vrot.slane %v1628_v0, 4 }
  0x59   : > { %4606 = vmatprep.subr.bf16.mxu0 %v4996_v51  ;;  %1901 = vst.msk [vmem:[#allocation2 + $0x14] sm:$0x1] %vm1896_vm5, %v5072_v10  ;;  %1905 = vst.msk [vmem:[#allocation2 + $0x24] sm:$0x1] %vm1896_vm5, %v5072_v10 }
  0x5a   : > { %v1150_v37 = vsel %vm5174_vm3, %v1145_v25, %v1149_v7  ;;  %v1164_v38 = vsel %vm5174_vm3, %v1159_v26, %v1163_v27  ;;  %v1619_v7 = vrot.slane %v1617_v63, 5  ;;  %v1570_v25 = vsel %vm5174_vm3, %v1565_v8, %v1569_v2  ;;  %1906 = vst.msk [vmem:[#allocation2 + $0x28] sm:$0xf] %vm1894_vm4, %v5072_v10  ;;  %1908 = vst.msk [vmem:[#allocation2 + $0x30] sm:$0xf] %vm1894_vm4, %v5072_v10 }
  0x5b   : > { %4591 = vmatmul.mubr.msk.bf16.gmra.mrb[4].mxu0 %vm343_vm0, %v5274_v58  ;;  %v4081_v42 = vcombine.low %v1150_v37, %v1164_v38  ;;  %v1584_v26 = vsel %vm5174_vm3, %v1579_v9, %v1583_v3  ;;  %v1592_v27 = vor.u32 %v1591_v6, %v1588_v5  ;;  %v1634_v36 = vor.u32 %v1633_v18, %v1630_v17  ;;  %v5018_v17 = vld [vmem:[%s5915_s3 + $0x38] sm:$0xff]   ;;  %v5421_v18 = vld [vmem:[%s5915_s3] sm:$0xff]  }
  0x5c   : > { %4598 = vmatprep.mubr.msk.bf16.mxu0 %vm343_vm0, %v4078_v59  ;;  %v1597_v38 = vrot.slane %v1595_v21, 5  ;;  %v4152_v40 = vcombine.low %v1570_v25, %v1584_v26  ;;  %1907 = vst.msk [vmem:[#allocation2 + $0x2c] sm:$0x1] %vm1896_vm5, %v5072_v10  ;;  %1909 = vst.msk [vmem:[#allocation2 + $0x34] sm:$0x1] %vm1896_vm5, %v5072_v10 }
  0x5d   : > { %v1593_v41 = vrot.slane %v1592_v27, 4  ;;  %v1635_v52 = vrot.slane %v1634_v36, 4  ;;  %1910 = vst.msk [vmem:[#allocation2 + $0x38] sm:$0xf] %vm1894_vm4, %v5072_v10  ;;  %1912 = vst.msk [vmem:[#allocation2 + $0x40] sm:$0xf] %vm1894_vm4, %v5072_v10 }
  0x5e   : > { %1911 = vst.msk [vmem:[#allocation2 + $0x3c] sm:$0x1] %vm1896_vm5, %v5072_v10  ;;  %1913 = vst.msk [vmem:[#allocation2 + $0x44] sm:$0x1] %vm1896_vm5, %v5072_v10  ;;  %v5429_v21 = vld [vmem:[%s5914_s2] ss:$0 sm:$0xff] }
  0x5f   : > { %v1598_v55 = vsel %vm5174_vm3, %v1593_v41, %v1597_v38  ;;  %1914 = vst.msk [vmem:[#allocation2 + $0x48] sm:$0xf] %vm1894_vm4, %v5072_v10 }
  0x60   : > { %1915 = vst.msk [vmem:[#allocation2 + $0x4c] sm:$0x1] %vm1896_vm5, %v5072_v10 }
  0x63   : > { %4599 = vmatmul.mubr.msk.bf16.vlgmr.msra.gmra.mrb[0].mxu0 %vm343_vm0, %v4079_v19  ;;  %v4146_v19 = vld [vmem:[%s5136_s13 + $0x40] sm:$0xf] }
  0x64   : > { %4607 = vmatpush3.bf16.msra.mxu0 %v4996_v51  ;;  %4602 = vmatprep.mubr.msk.bf16.mxu0 %vm343_vm0, %v4080_v24  ;;  %v4138_v51 = vld [vmem:[%s5136_s13 + $0x20] sm:$0xf]  ;;  %v4143_v24 = vld [vmem:[%s5136_s13 + $0x34] sm:$0x1]  ;;  %v1656_v32 = vshrl.u32 %v4146_v19, 16  ;;  %v1659_v33 = vshll.u32 %v4146_v19, 16 }
  0x65   : > { %4608 = vmatprep.subr.bf16.mxu0 %v4997_v28  ;;  %v1600_v59 = vshrl.u32 %v4138_v51, 16  ;;  %v1603_v60 = vshll.u32 %v4138_v51, 16  ;;  %v1637_v37 = vshll.u32 %v4143_v24, 16  ;;  %v1625_v51 = vrot.slane %v1623_v35, 5  ;;  %v5424_v19 = vld [vmem:[#allocation2] sm:$0xf] }
  0x66   : > { %v1661_v49 = vrot.slane %v1659_v33, 5 }
  0x67   : > { %v1602_v11 = vrot.slane %v1600_v59, 4  ;;  %v1605_v12 = vrot.slane %v1603_v60, 5  ;;  %v1639_v53 = vrot.slane %v1637_v37, 5 }
  0x68   : > { %4609 = vmatpush3.bf16.msra.mxu0 %v4997_v28 }
  0x69   : > { %4618 = vmatprep.subr.bf16.mxu0 %v4999_v34  ;;  %v1606_v28 = vor.u32 %v1605_v12, %v1602_v11  ;;  %v1640_v63 = vsel %vm5174_vm3, %v1635_v52, %v1639_v53  ;;  %v5010_v11 = vld [vmem:[%s5917_s5] sm:$0xff]   ;;  %v5011_v12 = vld [vmem:[%s5917_s5 + $0x8] sm:$0xff]  }
  0x6a   : > { %4642 = vmatprep.subr.bf16.mxu1 %v5010_v11 }
  0x6b   : > { %4603 = vmatmul.mubr.msk.bf16.gmra.mrb[4].mxu0 %vm343_vm0, %v4081_v42  ;;  %v1607_v42 = vrot.slane %v1606_v28, 4  ;;  %4643 = vmatpush3.bf16.msra.mxu1 %v5010_v11 }
  0x6c   : > { %4610 = vmatprep.mubr.msk.bf16.mxu0 %vm343_vm0, %v4998_v39  ;;  %v5009_v39 = vld [vmem:[%s5136_s13 + $0x80] ss:$8 sps:$4 sm:$0xff]   ;;  %4644 = vmatprep.subr.bf16.mxu1 %v5011_v12 }
  0x6f   : > { %4645 = vmatpush3.bf16.msra.mxu1 %v5011_v12 }
  0x72   : > { %4647 = vmatmul.mubr.msk.bf16.vlgmr.msra.gmra.mrb[0].mxu1 %vm343_vm0, %v5246_v20  ;;  %v5016_v20 = vld [vmem:[%s5915_s3 + $0x30] sm:$0xff]  }
  0x73   : > { %4611 = vmatmul.mubr.msk.bf16.vlgmr.msra.gmra.mrb[0].mxu0 %vm343_vm0, %v5000_v43  ;;  %v1611_v43 = vrot.slane %v1609_v22, 5  ;;  %4650 = vmatprep.mubr.msk.bf16.mxu1 %vm343_vm0, %v5254_v30  ;;  %v5019_v30 = vld [vmem:[%s5915_s3 + $0x118] sm:$0xff]   ;;  %v2111_v22 = vshll.u32 %v5424_v19, 16 }
  0x74   : > { %4619 = vmatpush3.bf16.msra.mxu0 %v4999_v34  ;;  %4614 = vmatprep.mubr.msk.bf16.mxu0 %vm343_vm0, %v5001_v44  ;;  %v1620_v34 = vor.u32 %v1619_v7, %v1616_v16  ;;  %v4145_v44 = vld [vmem:[%s5136_s13 + $0x3c] sm:$0x1]  ;;  %v5015_v16 = vld [vmem:[%s5915_s3 + $0x108] sm:$0xff]   ;;  %v5017_v7 = vld [vmem:[%s5915_s3 + $0x110] sm:$0xff]  }
  0x75   : > { %4620 = vmatprep.subr.bf16.mxu0 %v5002_v45  ;;  %v1651_v56 = vshll.u32 %v4145_v44, 16  ;;  %v1612_v57 = vsel %vm5174_vm3, %v1607_v42, %v1611_v43  ;;  %v5438_v33 = vrot.slane %v2111_v22, 5 }
  0x76   : > { %v4153_v0 = vcombine.low %v1598_v55, %v1612_v57  ;;  %v2032_v55 = vld [vmem:[#allocation2 + $0x8] sm:$0xf] }
  0x77   : > { %v1653_v1 = vrot.slane %v1651_v56, 5 }
  0x78   : > { %4621 = vmatpush3.bf16.msra.mxu0 %v5002_v45  ;;  %v1644_v45 = vrot.slane %v1642_v29, 4 }
  0x79   : > { %4630 = vmatprep.subr.bf16.mxu0 %v5005_v46 }
  0x7a   : > { %4651 = vmatmul.mubr.msk.bf16.gmra.mrb[4].mxu1 %vm343_vm0, %v5274_v58  ;;  %v2108_v58 = vshrl.u32 %v5424_v19, 16 }
  0x7b   : > { %4615 = vmatmul.mubr.msk.bf16.gmra.mrb[4].mxu0 %vm343_vm0, %v5003_v47  ;;  %v1658_v47 = vrot.slane %v1656_v32, 4 }
  0x7c   : > { %4622 = vmatprep.mubr.msk.bf16.mxu0 %vm343_vm0, %v5004_v50  ;;  %v1621_v50 = vrot.slane %v1620_v34, 4  ;;  %v5436_v32 = vrot.slane %v2108_v58, 4  ;;  %v2044_v58 = vld [vmem:[#allocation2 + $0x14] sm:$0x1] }
  0x7d   : > { %v1662_v60 = vor.u32 %v1661_v49, %v1658_v47  ;;  %v2050_v47 = vld [vmem:[#allocation2 + $0x1c] sm:$0x1] }
  0x7e   : > { %v1626_v62 = vsel %vm5174_vm3, %v1621_v50, %v1625_v51  ;;  %v2114_v43 = vor.u32 %v5438_v33, %v5436_v32 }
  0x7f   : > { %v4154_v2 = vcombine.low %v1626_v62, %v1640_v63  ;;  %v1663_v4 = vrot.slane %v1662_v60, 4  ;;  %v2038_v63 = vld [vmem:[#allocation2 + $0xc] sm:$0x1] }
  0x83   : > { %4623 = vmatmul.mubr.msk.bf16.vlgmr.msra.gmra.mrb[0].mxu0 %vm343_vm0, %v5006_v61  ;;  %v1665_v61 = vshll.u32 %v4147_v54, 16 }
  0x84   : > { %4631 = vmatpush3.bf16.msra.mxu0 %v5005_v46  ;;  %4626 = vmatprep.mubr.msk.bf16.mxu0 %vm343_vm0, %v5007_v13  ;;  %v1647_v46 = vrot.slane %v1645_v31, 5  ;;  %v5012_v13 = vld [vmem:[%s5915_s3 + $0x20] sm:$0xff]  }
  0x85   : > { %4632 = vmatprep.subr.bf16.mxu0 %v5008_v14  ;;  %v1667_v5 = vrot.slane %v1665_v61, 5  ;;  %4654 = vmatprep.subr.bf16.mxu1 %v5012_v13 }
  0x86   : > { %v1648_v59 = vor.u32 %v1647_v46, %v1644_v45  ;;  %4655 = vmatpush3.bf16.msra.mxu1 %v5012_v13  ;;  %v2047_v46 = vld [vmem:[#allocation2 + $0x18] sm:$0xf]  ;;  %v2056_v13 = vld [vmem:[#allocation2 + $0x24] sm:$0x1] }
  0x87   : > { %v1668_v8 = vsel %vm5174_vm3, %v1663_v4, %v1667_v5  ;;  %4656 = vmatprep.subr.bf16.mxu1 %v5014_v15 }
  0x88   : > { %4633 = vmatpush3.bf16.msra.mxu0 %v5008_v14  ;;  %v1649_v3 = vrot.slane %v1648_v59, 4  ;;  %v5013_v14 = vld [vmem:[%s5915_s3 + $0x100] sm:$0xff]  }
  0x89   : > { %4782 = vmatprep.subr.bf16.mxu0 %v5013_v14 }
  0x8a   : > { %v1654_v6 = vsel %vm5174_vm3, %v1649_v3, %v1653_v1  ;;  %4657 = vmatpush3.bf16.msra.mxu1 %v5014_v15 }
  0x8b   : > { %4627 = vmatmul.mubr.msk.bf16.gmra.mrb[4].mxu0 %vm343_vm0, %v5009_v39  ;;  %v4155_v9 = vcombine.low %v1654_v6, %v1668_v8  ;;  %4658 = vmatprep.subr.bf16.mxu1 %v5016_v20  ;;  %v2053_v8 = vld [vmem:[#allocation2 + $0x20] sm:$0xf] }
  0x8c   : > { %4634 = vmatprep.mubr.msk.bf16.mxu0 %vm343_vm0, %v4152_v40  ;;  %v5441_v40 = vld [vmem:[#allocation2 + $0x4] sm:$0x1] }
  0x8d   : > { %v2117_v44 = vshll.u32 %v5441_v40, 16 }
  0x8e   : > { %4659 = vmatpush3.bf16.msra.mxu1 %v5016_v20 }
  0x8f   : > { %4660 = vmatprep.subr.bf16.mxu1 %v5018_v17 }
  0x92   : > { %4661 = vmatpush3.bf16.msra.mxu1 %v5018_v17 }
  0x93   : > { %4635 = vmatmul.mubr.msk.bf16.vlgmr.msra.gmra.mrb[0].mxu0 %vm343_vm0, %v4153_v0  ;;  %4670 = vmatprep.subr.bf16.mxu1 %v5421_v18 }
  0x94   : > { %4638 = vmatprep.mubr.msk.bf16.mxu0 %vm343_vm0, %v4154_v2  ;;  %4783 = vmatpush3.bf16.msra.mxu0 %v5013_v14 }
  0x95   : > { %4784 = vmatprep.subr.bf16.mxu0 %v5015_v16 }
  0x98   : > { %4785 = vmatpush3.bf16.msra.mxu0 %v5015_v16 }
  0x99   : > { %4786 = vmatprep.subr.bf16.mxu0 %v5017_v7 }
  0x9b   : > { %4639 = vmatmul.mubr.msk.bf16.gmra.mrb[4].mxu0 %vm343_vm0, %v4155_v9 }
  0x9c   : > { %4787 = vmatpush3.bf16.msra.mxu0 %v5017_v7 }
  0x9d   : > { %4788 = vmatprep.subr.bf16.mxu0 %v5019_v30 }
  0xa0   : > { %4789 = vmatpush3.bf16.msra.mxu0 %v5019_v30  ;;  %v2041_v30 = vld [vmem:[#allocation2 + $0x10] sm:$0xf] }
 0x166   : > { %v4636_v23 = vpop.f32.mrb[0].mxu0 }
 0x167   : > { %v1792_v24 = vadd.f32 %v4636_v23, %v5429_v21  ;;  %v1744_v25 = vpop.f32.mrb[1].mxu0 }
 0x168   : > { %v1790_v26 = vadd.f32 %v5429_v21, %v1744_v25  ;;  %v4637_v27 = vpop.f32.mrb[2].mxu0 }
 0x169   : > { %v1800_v28 = vmax.f32 %v1792_v24, 0.0  ;;  %v1793_v29 = vadd.f32 %v4637_v27, %v5429_v21  ;;  %v1747_v31 = vpop.f32.mrb[3].mxu0 }
 0x16a   : > { %v1798_v34 = vmax.f32 %v1790_v26, 0.0  ;;  %v1791_v35 = vadd.f32 %v5429_v21, %v1747_v31 }
 0x16b   : > { %v4388_v36 = vpack.c.bf16 %v1800_v28, %v1800_v28  ;;  %v1801_v37 = vmax.f32 %v1793_v29, 0.0 }
 0x16c   : > { %v4386_v38 = vpack.c.bf16 %v1798_v34, %v1798_v34  ;;  %v1799_v39 = vmax.f32 %v1791_v35, 0.0 }
 0x16d   : > { %v1965_v41 = vshrl.u32 %v4388_v36, 16  ;;  %v4389_v42 = vpack.c.bf16 %v1801_v37, %v1801_v37  ;;  %v1968_v45 = vshll.u32 %v4388_v36, 16 }
 0x16e   : > { %v1949_v49 = vshrl.u32 %v4386_v38, 16  ;;  %v1952_v50 = vshll.u32 %v4386_v38, 16  ;;  %v4387_v51 = vpack.c.bf16 %v1799_v39, %v1799_v39  ;;  %v4640_v52 = vpop.f32.mrb[4].mxu0  ;;  %v2071_v39 = vld [vmem:[#allocation2 + $0x38] sm:$0xf] }
 0x16f   : > { %v1967_v53 = vrot.slane %v1965_v41, 7  ;;  %v1973_v56 = vshrl.u32 %v4389_v42, 16  ;;  %v1976_v57 = vshll.u32 %v4389_v42, 16  ;;  %v1796_v59 = vadd.f32 %v4640_v52, %v5429_v21  ;;  %v1760_v60 = vpop.f32.mrb[5].mxu0  ;;  %v2062_v52 = vld [vmem:[#allocation2 + $0x2c] sm:$0x1] }
 0x170   : > { %v1951_v62 = vrot.slane %v1949_v49, 7  ;;  %v1957_v0 = vshrl.u32 %v4387_v51, 16  ;;  %v1960_v1 = vshll.u32 %v4387_v51, 16  ;;  %v1794_v2 = vadd.f32 %v5429_v21, %v1760_v60  ;;  %v4641_v3 = vpop.f32.mrb[6].mxu0  ;;  %v2059_v51 = vld [vmem:[#allocation2 + $0x28] sm:$0xf] }
 0x171   : > { %v1970_v4 = vor.u32 %v1968_v45, %v1967_v53  ;;  %v1971_v5 = vrot.slane %v1967_v53, 4  ;;  %v1975_v6 = vrot.slane %v1973_v56, 7  ;;  %v1804_v9 = vmax.f32 %v1796_v59, 0.0  ;;  %v1763_v10 = vpop.f32.mrb[7].mxu0 }
 0x172   : > { %v1954_v11 = vor.u32 %v1952_v50, %v1951_v62  ;;  %v1955_v12 = vrot.slane %v1951_v62, 4  ;;  %v1959_v14 = vrot.slane %v1957_v0, 7  ;;  %v1802_v15 = vmax.f32 %v1794_v2, 0.0 }
 0x173   : > { %v2048_v16 = vsel %vm5448_vm8, %v1970_v4, %v2047_v46  ;;  %v2051_v20 = vsel %vm5455_vm9, %v1971_v5, %v2050_v47  ;;  %v1978_v7 = vor.u32 %v1976_v57, %v1975_v6  ;;  %v1979_v17 = vrot.slane %v1975_v6, 4  ;;  %v2074_v47 = vld [vmem:[#allocation2 + $0x3c] sm:$0x1]  ;;  %v2077_v5 = vld [vmem:[#allocation2 + $0x40] sm:$0xf] }
 0x174   : > { %2049 = vst [vmem:[#allocation2 + $0x18] sm:$0xf] %v2048_v16  ;;  %2052 = vst [vmem:[#allocation2 + $0x1c] sm:$0x1] %v2051_v20  ;;  %v2033_v22 = vsel %vm5448_vm8, %v1954_v11, %v2032_v55  ;;  %v2039_v23 = vsel %vm5455_vm9, %v1955_v12, %v2038_v63  ;;  %v1962_v24 = vor.u32 %v1960_v1, %v1959_v14  ;;  %v1963_v25 = vrot.slane %v1959_v14, 4 }
 0x175   : > { %2034 = vst [vmem:[#allocation2 + $0x8] sm:$0xf] %v2033_v22  ;;  %2040 = vst [vmem:[#allocation2 + $0xc] sm:$0x1] %v2039_v23  ;;  %v2054_v26 = vsel %vm5448_vm8, %v1978_v7, %v2053_v8  ;;  %v2057_v27 = vsel %vm5455_vm9, %v1979_v17, %v2056_v13  ;;  %v4392_v28 = vpack.c.bf16 %v1804_v9, %v1804_v9  ;;  %v5485_v56 = vrot.slane %v2117_v44, 5 }
 0x176   : > { %v4390_v29 = vpack.c.bf16 %v1802_v15, %v1802_v15  ;;  %2055 = vst [vmem:[#allocation2 + $0x20] sm:$0xf] %v2054_v26  ;;  %2058 = vst [vmem:[#allocation2 + $0x24] sm:$0x1] %v2057_v27  ;;  %v2042_v31 = vsel %vm5448_vm8, %v1962_v24, %v2041_v30  ;;  %v2045_v34 = vsel %vm5455_vm9, %v1963_v25, %v2044_v58  ;;  %v2080_v6 = vld [vmem:[#allocation2 + $0x44] sm:$0x1] }
 0x177   : > { %v1797_v35 = vadd.f32 %v4641_v3, %v5429_v21  ;;  %v1795_v36 = vadd.f32 %v5429_v21, %v1763_v10  ;;  %2043 = vst [vmem:[#allocation2 + $0x10] sm:$0xf] %v2042_v31  ;;  %2046 = vst [vmem:[#allocation2 + $0x14] sm:$0x1] %v2045_v34  ;;  %v1997_v37 = vshrl.u32 %v4392_v28, 16  ;;  %v2000_v46 = vshll.u32 %v4392_v28, 16 }
 0x178   : > { %v1981_v38 = vshrl.u32 %v4390_v29, 16  ;;  %v1984_v50 = vshll.u32 %v4390_v29, 16  ;;  %v5481_v21 = vrot.slane %v2114_v43, 4  ;;  %v2065_v8 = vld [vmem:[#allocation2 + $0x30] sm:$0xf] }
 0x179   : > { %v1805_v41 = vmax.f32 %v1797_v35, 0.0  ;;  %v1803_v42 = vmax.f32 %v1795_v36, 0.0  ;;  %v1999_v45 = vrot.slane %v1997_v37, 7  ;;  %v2068_v16 = vld [vmem:[#allocation2 + $0x34] sm:$0x1] }
 0x17a   : > { %v1983_v49 = vrot.slane %v1981_v38, 7  ;;  %v2120_v15 = vsel %vm5174_vm3, %v5481_v21, %v5485_v56  ;;  %v5021_v56 = vld [vmem:[%s5915_s3 + $0x8] sm:$0xff]   ;;  %v4374_v12 = vld [vmem:[%s5916_s4] ss:$0 sm:$0xff] }
 0x17b   : > { %v4393_v53 = vpack.c.bf16 %v1805_v41, %v1805_v41  ;;  %v4391_v55 = vpack.c.bf16 %v1803_v42, %v1803_v42  ;;  %v2002_v57 = vor.u32 %v2000_v46, %v1999_v45  ;;  %v2003_v59 = vrot.slane %v1999_v45, 4  ;;  %v5487_v63 = vld [vmem:[#allocation2 + $0x1c] sm:$0x1]  ;;  %v3648_v4 = vld [vmem:[#allocation2 + $0x18] sm:$0xe] }
 0x17c   : > { %v1986_v60 = vor.u32 %v1984_v50, %v1983_v49  ;;  %v1987_v62 = vrot.slane %v1983_v49, 4  ;;  %v5497_v9 = vld [vmem:[#allocation2 + $0x8] sm:$0xf]  ;;  %v4347_v17 = vrot.slane %v3648_v4, 9  ;;  %v3677_v30 = vrot.slane %v5487_v63, 5 }
 0x17d   : > { %v2005_v0 = vshrl.u32 %v4393_v53, 16  ;;  %v2008_v1 = vshll.u32 %v4393_v53, 16  ;;  %v1989_v2 = vshrl.u32 %v4391_v55, 16  ;;  %v1992_v3 = vshll.u32 %v4391_v55, 16  ;;  %v5513_v25 = vld [vmem:[#allocation2 + $0xc] sm:$0x1] }
 0x17e   : > { %v2072_v32 = vsel %vm5448_vm8, %v2002_v57, %v2071_v39  ;;  %v2075_v33 = vsel %vm5455_vm9, %v2003_v59, %v2074_v47  ;;  %v2060_v43 = vsel %vm5448_vm8, %v1986_v60, %v2059_v51  ;;  %v2063_v44 = vsel %vm5455_vm9, %v1987_v62, %v2062_v52  ;;  %v5505_v13 = vld [vmem:[#allocation2 + $0x14] sm:$0x1]  ;;  %v3647_v14 = vld [vmem:[#allocation2 + $0x10] sm:$0xe]  ;;  %v5515_v26 = vld [vmem:[#allocation2 + $0x18] sm:$0xf] }
 0x17f   : > { %2073 = vst [vmem:[#allocation2 + $0x38] sm:$0xf] %v2072_v32  ;;  %2076 = vst [vmem:[#allocation2 + $0x3c] sm:$0x1] %v2075_v33  ;;  %v2007_v10 = vrot.slane %v2005_v0, 7  ;;  %v1991_v11 = vrot.slane %v1989_v2, 7  ;;  %v3678_v28 = vsel %vm5501_vm13, %v4347_v17, %v3677_v30 }
 0x180   : > { %2061 = vst [vmem:[#allocation2 + $0x28] sm:$0xf] %v2060_v43  ;;  %2064 = vst [vmem:[#allocation2 + $0x2c] sm:$0x1] %v2063_v44  ;;  %v4346_v20 = vrot.slane %v3647_v14, 9  ;;  %v3673_v7 = vrot.slane %v5505_v13, 5 }
 0x181   : > { %v2010_v58 = vor.u32 %v2008_v1, %v2007_v10  ;;  %v2011_v22 = vrot.slane %v2007_v10, 4  ;;  %v1994_v23 = vor.u32 %v1992_v3, %v1991_v11  ;;  %v1995_v24 = vrot.slane %v1991_v11, 4  ;;  %v5523_v34 = vld [vmem:[#allocation2 + $0x10] sm:$0xf]  ;;  %v5525_v35 = vld [vmem:[#allocation2 + $0x14] sm:$0x1] }
 0x182   : > { %v3674_v27 = vsel %vm5501_vm13, %v4346_v20, %v3673_v7  ;;  %v2122_v29 = vshrl.u32 %v5497_v9, 16  ;;  %v2125_v31 = vshll.u32 %v5497_v9, 16  ;;  %v5535_v41 = vld [vmem:[#allocation2 + $0x1c] sm:$0x1]  ;;  %v2131_v47 = vshll.u32 %v5513_v25, 16 }
 0x183   : > { %v2078_v36 = vsel %vm5448_vm8, %v2010_v58, %v2077_v5  ;;  %v2081_v37 = vsel %vm5455_vm9, %v2011_v22, %v2080_v6  ;;  %v2066_v38 = vsel %vm5448_vm8, %v1994_v23, %v2065_v8  ;;  %v2069_v39 = vsel %vm5455_vm9, %v1995_v24, %v2068_v16  ;;  %v5538_v49 = vld [vmem:[#allocation2 + $0x24] sm:$0x1]  ;;  %v3649_v50 = vld [vmem:[#allocation2 + $0x20] sm:$0xe] }
 0x184   : > { %2079 = vst [vmem:[#allocation2 + $0x40] sm:$0xf] %v2078_v36  ;;  %2082 = vst [vmem:[#allocation2 + $0x44] sm:$0x1] %v2081_v37  ;;  %v4362_v42 = vcombine.low %v3674_v27, %v3678_v28  ;;  %v2124_v45 = vrot.slane %v2122_v29, 4  ;;  %v2127_v46 = vrot.slane %v2125_v31, 5 }
 0x185   : > { %2067 = vst [vmem:[#allocation2 + $0x30] sm:$0xf] %v2066_v38  ;;  %2070 = vst [vmem:[#allocation2 + $0x34] sm:$0x1] %v2069_v39  ;;  %v2136_v54 = vshrl.u32 %v5523_v34, 16  ;;  %v2139_v51 = vshll.u32 %v5523_v34, 16 }
 0x186   : > { %v2145_v61 = vshll.u32 %v5525_v35, 16  ;;  %v2150_v52 = vshrl.u32 %v5515_v26, 16  ;;  %v5544_v53 = vld [vmem:[#allocation2 + $0x20] sm:$0xf]  ;;  %4790 = vmatprep.mubr.msk.bf16.mxu0 %vm2264_vm12, %v4362_v42  ;;  %v2128_v55 = vor.u32 %v2127_v46, %v2124_v45  ;;  %v2133_v57 = vrot.slane %v2131_v47, 5 }
 0x187   : > { %v2153_v59 = vshll.u32 %v5515_v26, 16  ;;  %v2159_v60 = vshll.u32 %v5535_v41, 16  ;;  %v5549_v62 = vld [vmem:[#allocation2 + $0x2c] sm:$0x1]  ;;  %v2138_v0 = vrot.slane %v2136_v54, 4  ;;  %v2141_v1 = vrot.slane %v2139_v51, 5 }
 0x188   : > { %v2147_v2 = vrot.slane %v2145_v61, 5  ;;  %v2152_v3 = vrot.slane %v2150_v52, 4  ;;  %v3650_v4 = vld [vmem:[#allocation2 + $0x28] sm:$0xe]  ;;  %v2129_v32 = vrot.slane %v2128_v55, 4  ;;  %v4348_v44 = vrot.slane %v3649_v50, 9 }
 0x189   : > { %v2155_v33 = vrot.slane %v2153_v59, 5  ;;  %v2161_v43 = vrot.slane %v2159_v60, 5  ;;  %v2142_v5 = vor.u32 %v2141_v1, %v2138_v0  ;;  %v3681_v6 = vrot.slane %v5538_v49, 5  ;;  %v5555_v16 = vld [vmem:[#allocation2 + $0x28] sm:$0xf]  ;;  %v5022_v0 = vld [vmem:[%s5915_s3 + $0x10] sm:$0xff]  }
 0x18a   : > { %v4349_v8 = vrot.slane %v3650_v4, 9  ;;  %v3685_v10 = vrot.slane %v5549_v62, 5  ;;  %v2134_v11 = vsel %vm5174_vm3, %v2129_v32, %v2133_v57  ;;  %v5557_v20 = vld [vmem:[#allocation2 + $0x24] sm:$0x1]  ;;  %v2164_v7 = vshrl.u32 %v5544_v53, 16 }
 0x18b   : > { %v2156_v14 = vor.u32 %v2155_v33, %v2152_v3  ;;  %v2167_v17 = vshll.u32 %v5544_v53, 16  ;;  %v4186_v30 = vcombine.low %v2120_v15, %v2134_v11  ;;  %v2143_v58 = vrot.slane %v2142_v5, 4  ;;  %v5570_v24 = vld [vmem:[#allocation2 + $0x2c] sm:$0x1]  ;;  %v5587_v46 = vld [vmem:[#allocation2 + $0x38] sm:$0xf] }
 0x18c   : > { %v3682_v22 = vsel %vm5501_vm13, %v4348_v44, %v3681_v6  ;;  %v3686_v23 = vsel %vm5501_vm13, %v4349_v8, %v3685_v10  ;;  %v5572_v27 = vld [vmem:[#allocation2 + $0x30] sm:$0xf]  ;;  %v2166_v31 = vrot.slane %v2164_v7, 4  ;;  %v2173_v15 = vshll.u32 %v5557_v20, 16  ;;  %v5590_v61 = vld [vmem:[#allocation2 + $0x34] sm:$0x1] }
 0x18d   : > { %v2157_v28 = vrot.slane %v2156_v14, 4  ;;  %v4363_v29 = vcombine.low %v3682_v22, %v3686_v23  ;;  %v2169_v36 = vrot.slane %v2167_v17, 5  ;;  %4662 = vmatprep.mubr.msk.bf16.mxu1 %vm2264_vm12, %v4186_v30  ;;  %v2148_v21 = vsel %vm5174_vm3, %v2143_v58, %v2147_v2  ;;  %v5592_v52 = vld [vmem:[#allocation2 + $0x3c] sm:$0x1] }
 0x18e   : > { %v2178_v37 = vshrl.u32 %v5555_v16, 16  ;;  %v2181_v38 = vshll.u32 %v5555_v16, 16  ;;  %v2187_v45 = vshll.u32 %v5570_v24, 16  ;;  %v2192_v47 = vshrl.u32 %v5572_v27, 16  ;;  %v5024_v22 = vld [vmem:[%s5915_s3 + $0x18] sm:$0xff]  }
 0x18f   : > { %v2162_v39 = vsel %vm5174_vm3, %v2157_v28, %v2161_v43  ;;  %4791 = vmatmul.mubr.msk.bf16.vlgmr.msra.gmra.mrb[8].mxu0 %vm2264_vm12, %v4363_v29  ;;  %v2170_v42 = vor.u32 %v2169_v36, %v2166_v31  ;;  %v2195_v57 = vshll.u32 %v5572_v27, 16  ;;  %v2206_v1 = vshrl.u32 %v5587_v46, 16  ;;  %v5025_v36 = vld [vmem:[%s5915_s3 + $0x40] sm:$0xff]  }
 0x190   : > { %v4187_v50 = vcombine.low %v2148_v21, %v2162_v39  ;;  %v2180_v54 = vrot.slane %v2178_v37, 4  ;;  %v2183_v51 = vrot.slane %v2181_v38, 5  ;;  %v2194_v55 = vrot.slane %v2192_v47, 4  ;;  %v2463_v21 = vld [vmem:[#allocation2] sm:$0xe] }
 0x191   : > { %v2171_v59 = vrot.slane %v2170_v42, 4  ;;  %v2209_v2 = vshll.u32 %v5587_v46, 16  ;;  %v2175_v3 = vrot.slane %v2173_v15, 5  ;;  %v2189_v4 = vrot.slane %v2187_v45, 5  ;;  %v5031_v45 = vld [vmem:[%s5915_s3 + $0x58] sm:$0xff]  }
 0x192   : > { %4663 = vmatmul.mubr.msk.bf16.vlgmr.msra.gmra.mrb[0].mxu1 %vm2264_vm12, %v4187_v50  ;;  %v2184_v60 = vor.u32 %v2183_v51, %v2180_v54  ;;  %v2197_v32 = vrot.slane %v2195_v57, 5  ;;  %v2201_v33 = vshll.u32 %v5590_v61, 16  ;;  %v2208_v44 = vrot.slane %v2206_v1, 4  ;;  %v2466_v47 = vld [vmem:[#allocation2 + $0x18] sm:$0xe] }
 0x193   : > { %4671 = vmatpush3.bf16.msra.mxu1 %v5421_v18  ;;  %v2211_v5 = vrot.slane %v2209_v2, 5  ;;  %v2215_v6 = vshll.u32 %v5592_v52, 16  ;;  %v2176_v10 = vsel %vm5174_vm3, %v2171_v59, %v2175_v3  ;;  %v4198_v31 = vcombine.low %v5424_v19, %v5497_v9  ;;  %v5028_v19 = vld [vmem:[%s5915_s3 + $0x48] sm:$0xff]   ;;  %v2470_v2 = vld [vmem:[#allocation2 + $0x38] sm:$0xe] }
 0x194   : > { %4672 = vmatprep.subr.bf16.mxu1 %v5021_v56  ;;  %v2185_v43 = vrot.slane %v2184_v60, 4  ;;  %v2198_v8 = vor.u32 %v2197_v32, %v2194_v55  ;;  %v2203_v17 = vrot.slane %v2201_v33, 5  ;;  %v4199_v15 = vcombine.low %v5523_v34, %v5515_v26  ;;  %v5029_v26 = vld [vmem:[%s5915_s3 + $0x50] sm:$0xff]   ;;  %v2467_v55 = vld [vmem:[#allocation2 + $0x20] sm:$0xe] }
 0x195   : > { %v2212_v14 = vor.u32 %v2211_v5, %v2208_v44  ;;  %v2217_v58 = vrot.slane %v2215_v6, 5  ;;  %v4200_v9 = vcombine.low %v5544_v53, %v5555_v16  ;;  %v4210_v37 = vrot.slane %v2463_v21, 9  ;;  %v2465_v16 = vld [vmem:[#allocation2 + $0x10] sm:$0xe]  ;;  %v2798_v3 = vld [vmem:[#allocation2 + $0x8] sm:$0xf] }
 0x196   : > { %v2190_v11 = vsel %vm5174_vm3, %v2185_v43, %v2189_v4  ;;  %v2199_v7 = vrot.slane %v2198_v8, 4  ;;  %v2492_v38 = vrot.slane %v5441_v40, 5  ;;  %v2496_v42 = vrot.slane %v5513_v25, 5  ;;  %v2468_v40 = vld [vmem:[#allocation2 + $0x28] sm:$0xe] }
 0x197   : > { %4673 = vmatpush3.bf16.msra.mxu1 %v5021_v56  ;;  %v4188_v18 = vcombine.low %v2176_v10, %v2190_v11  ;;  %v2213_v30 = vrot.slane %v2212_v14, 4  ;;  %v2464_v56 = vld [vmem:[#allocation2 + $0x8] sm:$0xe]  ;;  %v4201_v25 = vcombine.low %v5572_v27, %v5587_v46  ;;  %v4212_v54 = vrot.slane %v2465_v16, 9  ;;  %v2469_v60 = vld [vmem:[#allocation2 + $0x30] sm:$0xe] }
 0x198   : > { %4674 = vmatprep.subr.bf16.mxu1 %v5022_v0  ;;  %v2204_v23 = vsel %vm5174_vm3, %v2199_v7, %v2203_v17  ;;  %v4211_v39 = vrot.slane %v2464_v56, 9  ;;  %v2493_v34 = vsel %vm5501_vm13, %v4210_v37, %v2492_v38  ;;  %v2500_v51 = vrot.slane %v5525_v35, 5  ;;  %v5032_v27 = vld [vmem:[%s5915_s3 + $0x60] sm:$0xff]   ;;  %v2800_v43 = vld [vmem:[#allocation2 + $0x10] sm:$0xf] }
 0x199   : > { %4666 = vmatprep.mubr.msk.bf16.mxu1 %vm2264_vm12, %v4188_v18  ;;  %v2218_v28 = vsel %vm5174_vm3, %v2213_v30, %v2217_v58  ;;  %v4215_v57 = vrot.slane %v2468_v40, 9  ;;  %v2512_v59 = vrot.slane %v5570_v24, 5  ;;  %v4213_v46 = vrot.slane %v2466_v47, 9  ;;  %v5668_v8 = vld [vmem:[#allocation2 + $0xc] sm:$0x1]  ;;  %v5036_v47 = vld [vmem:[%s5915_s3 + $0x78] sm:$0xff]  }
 0x19a   : > { %v4189_v29 = vcombine.low %v2204_v23, %v2218_v28  ;;  %v2497_v53 = vsel %vm5501_vm13, %v4211_v39, %v2496_v42  ;;  %v4214_v1 = vrot.slane %v2467_v55, 9  ;;  %v2508_v35 = vrot.slane %v5557_v20, 5  ;;  %v3389_v17 = vld [vmem:[#allocation2 + $0x10] sm:$0xf]  ;;  %v5676_v58 = vld [vmem:[#allocation2 + $0x14] sm:$0x1] }
 0x19b   : > { %4675 = vmatpush3.bf16.msra.mxu1 %v5022_v0  ;;  %v4226_v50 = vcombine.low %v2493_v34, %v2497_v53  ;;  %v2504_v0 = vrot.slane %v5535_v41, 5  ;;  %v2501_v24 = vsel %vm5501_vm13, %v4212_v54, %v2500_v51  ;;  %v4216_v4 = vrot.slane %v2469_v60, 9  ;;  %v5679_v23 = vld [vmem:[#allocation2 + $0x18] sm:$0xf]  ;;  %v5034_v28 = vld [vmem:[%s5915_s3 + $0x70] sm:$0xff]  }
 0x19c   : > { %4676 = vmatprep.subr.bf16.mxu1 %v5024_v22  ;;  %4667 = vmatmul.mubr.msk.bf16.gmra.mrb[4].mxu1 %vm2264_vm12, %v4189_v29  ;;  %v2516_v32 = vrot.slane %v5590_v61, 5  ;;  %v2513_v33 = vsel %vm5501_vm13, %v4215_v57, %v2512_v59  ;;  %v4217_v44 = vrot.slane %v2470_v2, 9  ;;  %v2520_v5 = vrot.slane %v5592_v52, 5  ;;  %v5033_v61 = vld [vmem:[%s5915_s3 + $0x68] sm:$0xff]   ;;  %v3391_v52 = vld [vmem:[#allocation2 + $0x18] sm:$0xf] }
 0x19d   : > { %4678 = vmatprep.mubr.msk.bf16.mxu1 %vm2264_vm12, %v4198_v31  ;;  %v2505_v41 = vsel %vm5501_vm13, %v4213_v46, %v2504_v0  ;;  %v2509_v6 = vsel %vm5501_vm13, %v4214_v1, %v2508_v35  ;;  %v2815_v10 = vshrl.u32 %v2798_v3, 16  ;;  %v2818_v18 = vshll.u32 %v2798_v3, 16  ;;  %v3393_v56 = vld [vmem:[#allocation2 + $0x20] sm:$0xf]  ;;  %v3395_v38 = vld [vmem:[#allocation2 + $0x28] sm:$0xf] }
 0x19e   : > { %v4227_v20 = vcombine.low %v2501_v24, %v2505_v41  ;;  %v4228_v11 = vcombine.low %v2509_v6, %v2513_v33  ;;  %v2517_v14 = vsel %vm5501_vm13, %v4216_v4, %v2516_v32  ;;  %v2829_v7 = vshrl.u32 %v2800_v43, 16  ;;  %v2804_v57 = vld [vmem:[#allocation2 + $0x20] sm:$0xf]  ;;  %v2808_v2 = vld [vmem:[#allocation2 + $0x30] sm:$0xf] }
 0x19f   : > { %4677 = vmatpush3.bf16.msra.mxu1 %v5024_v22  ;;  %v2521_v30 = vsel %vm5501_vm13, %v4217_v44, %v2520_v5  ;;  %v2824_v22 = vshll.u32 %v5668_v8, 16  ;;  %v2832_v31 = vshll.u32 %v2800_v43, 16  ;;  %v3409_v21 = vshll.u32 %v3389_v17, 16  ;;  %v2806_v5 = vld [vmem:[#allocation2 + $0x28] sm:$0xf] }
 0x1a0   : > { %4686 = vmatprep.subr.bf16.mxu1 %v5025_v36  ;;  %v4229_v29 = vcombine.low %v2517_v14, %v2521_v30  ;;  %v3420_v37 = vshrl.u32 %v3391_v52, 16  ;;  %v2838_v39 = vshll.u32 %v5676_v58, 16  ;;  %v3415_v34 = vshll.u32 %v5505_v13, 16  ;;  %v5038_v30 = vld [vmem:[#allocation2 + $0x18] ss:$8 sps:$4 sm:$0xff]  }
 0x1a1   : > { %v2843_v53 = vshrl.u32 %v5679_v23, 16  ;;  %v3423_v40 = vshll.u32 %v3391_v52, 16  ;;  %v3437_v51 = vshll.u32 %v3393_v56, 16  ;;  %v3448_v55 = vshrl.u32 %v3395_v38, 16 }
 0x1a2   : > { %v3422_v16 = vrot.slane %v3420_v37, 4  ;;  %v3429_v13 = vshll.u32 %v5487_v63, 16  ;;  %v3417_v0 = vrot.slane %v3415_v34, 5  ;;  %v3443_v24 = vshll.u32 %v5538_v49, 16  ;;  %v5037_v63 = vld [vmem:[%s5915_s3 + $0x80] sm:$0xff]  }
 0x1a3   : > { %v3425_v59 = vrot.slane %v3423_v40, 5  ;;  %v3439_v1 = vrot.slane %v3437_v51, 5  ;;  %v3450_v35 = vrot.slane %v3448_v55, 4  ;;  %v3457_v32 = vshll.u32 %v5549_v62, 16  ;;  %v2812_v40 = vld [vmem:[#allocation2 + $0x40] sm:$0xf] }
 0x1a4   : > { %4679 = vmatmul.mubr.msk.bf16.vlgmr.msra.gmra.mrb[0].mxu1 %vm2264_vm12, %v4199_v15  ;;  %v5684_v15 = vrot.slane %v2815_v10, 4  ;;  %v2846_v33 = vshll.u32 %v5679_v23, 16  ;;  %v2857_v43 = vshrl.u32 %v2804_v57, 16  ;;  %v2860_v41 = vshll.u32 %v2804_v57, 16  ;;  %v2810_v57 = vld [vmem:[#allocation2 + $0x38] sm:$0xf] }
 0x1a5   : > { %4687 = vmatpush3.bf16.msra.mxu1 %v5025_v36  ;;  %4682 = vmatprep.mubr.msk.bf16.mxu1 %vm2264_vm12, %v4200_v9  ;;  %v3406_v36 = vshrl.u32 %v3389_v17, 16  ;;  %v5688_v9 = vrot.slane %v2829_v7, 4  ;;  %v3426_v3 = vor.u32 %v3425_v59, %v3422_v16  ;;  %v2885_v62 = vshrl.u32 %v2808_v2, 16  ;;  %v5734_v59 = vld [vmem:[#allocation2 + $0x1c] sm:$0x1] }
 0x1a6   : > { %4688 = vmatprep.subr.bf16.mxu1 %v5028_v19  ;;  %v3445_v7 = vrot.slane %v3443_v24, 5  ;;  %v3459_v52 = vrot.slane %v3457_v32, 5  ;;  %v2862_v37 = vrot.slane %v2860_v41, 5  ;;  %v2826_v23 = vrot.slane %v2824_v22, 5  ;;  %v5042_v24 = vld [vmem:[#allocation2 + $0x38] ss:$8 sps:$4 sm:$0xff]  }
 0x1a7   : > { %v3408_v42 = vrot.slane %v3406_v36, 4  ;;  %v3427_v6 = vrot.slane %v3426_v3, 4  ;;  %v2874_v36 = vshll.u32 %v2806_v5, 16  ;;  %v2887_v34 = vrot.slane %v2885_v62, 4  ;;  %v5043_v22 = vld [vmem:[%s5915_s3 + $0x98] sm:$0xff]  }
 0x1a8   : > { %v2902_v3 = vshll.u32 %v2810_v57, 16  ;;  %v2852_v32 = vshll.u32 %v5734_v59, 16 }
 0x1a9   : > { %4689 = vmatpush3.bf16.msra.mxu1 %v5028_v19  ;;  %v5686_v19 = vrot.slane %v2818_v18, 5  ;;  %v2876_v55 = vrot.slane %v2874_v36, 5 }
 0x1aa   : > { %4690 = vmatprep.subr.bf16.mxu1 %v5029_v26  ;;  %v2904_v62 = vrot.slane %v2902_v3, 5 }
 0x1ac   : > { %4683 = vmatmul.mubr.msk.bf16.gmra.mrb[4].mxu1 %vm2264_vm12, %v4201_v25  ;;  %v3434_v25 = vshrl.u32 %v3393_v56, 16  ;;  %v5039_v56 = vld [vmem:[#allocation2 + $0x28] ss:$8 sps:$4 sm:$0xff]  }
 0x1ad   : > { %4691 = vmatpush3.bf16.msra.mxu1 %v5029_v26  ;;  %4694 = vmatprep.mubr.msk.bf16.mxu1 %vm2264_vm12, %v4226_v50  ;;  %v3411_v26 = vrot.slane %v3409_v21, 5  ;;  %v2834_v50 = vrot.slane %v2832_v31, 5  ;;  %v2871_v31 = vshrl.u32 %v2806_v5, 16 }
 0x1ae   : > { %4692 = vmatprep.subr.bf16.mxu1 %v5031_v45  ;;  %v3436_v60 = vrot.slane %v3434_v25, 4  ;;  %v5728_v25 = vld [vmem:[#allocation2 + $0x24] sm:$0x1] }
 0x1af   : > { %v3412_v54 = vor.u32 %v3411_v26, %v3408_v42  ;;  %v2835_v10 = vor.u32 %v2834_v50, %v5688_v9  ;;  %v2859_v9 = vrot.slane %v2857_v43, 4  ;;  %v2873_v51 = vrot.slane %v2871_v31, 4  ;;  %v5764_v31 = vld [vmem:[#allocation2 + $0x3c] sm:$0x1] }
 0x1b0   : > { %v3440_v44 = vor.u32 %v3439_v1, %v3436_v60  ;;  %v5736_v60 = vld [vmem:[#allocation2 + $0x34] sm:$0x1] }
 0x1b1   : > { %4693 = vmatpush3.bf16.msra.mxu1 %v5031_v45  ;;  %v5035_v45 = vld [vmem:[#allocation2 + $0x8] ss:$8 sps:$4 sm:$0xff]   ;;  %v3413_v46 = vrot.slane %v3412_v54, 4  ;;  %v2836_v26 = vrot.slane %v2835_v10, 4  ;;  %v2840_v54 = vrot.slane %v2838_v39, 5  ;;  %v2866_v39 = vshll.u32 %v5728_v25, 16 }
 0x1b2   : > { %4702 = vmatprep.subr.bf16.mxu1 %v5032_v27  ;;  %v3441_v14 = vrot.slane %v3440_v44, 4 }
 0x1b4   : > { %4695 = vmatmul.mubr.msk.bf16.vlgmr.msra.gmra.mrb[0].mxu1 %vm2264_vm12, %v4227_v20  ;;  %v3418_v20 = vsel %vm5174_vm3, %v3413_v46, %v3417_v0  ;;  %v2916_v46 = vshll.u32 %v2812_v40, 16 }
 0x1b5   : > { %4703 = vmatpush3.bf16.msra.mxu1 %v5032_v27  ;;  %4698 = vmatprep.mubr.msk.bf16.mxu1 %vm2264_vm12, %v4228_v11  ;;  %v3451_v27 = vshll.u32 %v3395_v38, 16  ;;  %v2888_v11 = vshll.u32 %v2808_v2, 16  ;;  %v3446_v38 = vsel %vm5174_vm3, %v3441_v14, %v3445_v7  ;;  %v2899_v2 = vshrl.u32 %v2810_v57, 16  ;;  %v5758_v7 = vld [vmem:[#allocation2 + $0x44] sm:$0x1] }
 0x1b6   : > { %4704 = vmatprep.subr.bf16.mxu1 %v5033_v61  ;;  %v2918_v5 = vrot.slane %v2916_v46, 5  ;;  %v3082_v57 = vrot.slane %v5668_v8, 5  ;;  %v3059_v46 = vld [vmem:[#allocation2 + $0x20] sm:$0xe]  ;;  %v5047_v8 = vld [vmem:[%s5915_s3 + $0xb8] sm:$0xff]  }
 0x1b7   : > { %v3453_v4 = vrot.slane %v3451_v27, 5  ;;  %v2890_v16 = vrot.slane %v2888_v11, 5  ;;  %v2913_v27 = vshrl.u32 %v2812_v40, 16  ;;  %v2901_v10 = vrot.slane %v2899_v2, 4  ;;  %v5044_v11 = vld [vmem:[%s5915_s3 + $0xa0] sm:$0xff]  }
 0x1b8   : > { %v4281_v3 = vrot.slane %v3059_v46, 9  ;;  %v3400_v46 = vld [vmem:[#allocation2 + $0x3c] sm:$0x1] }
 0x1b9   : > { %4705 = vmatpush3.bf16.msra.mxu1 %v5033_v61  ;;  %v3431_v61 = vrot.slane %v3429_v13, 5  ;;  %v3454_v49 = vor.u32 %v3453_v4, %v3450_v35  ;;  %v2863_v13 = vor.u32 %v2862_v37, %v2859_v9  ;;  %v2891_v0 = vor.u32 %v2890_v16, %v2887_v34  ;;  %v5743_v35 = vld [vmem:[#allocation2 + $0x2c] sm:$0x1]  ;;  %v3057_v37 = vld [vmem:[#allocation2 + $0x10] sm:$0xe] }
 0x1ba   : > { %4706 = vmatprep.subr.bf16.mxu1 %v5034_v28  ;;  %v2915_v44 = vrot.slane %v2913_v27, 4  ;;  %v2922_v9 = vshll.u32 %v5758_v7, 16  ;;  %v2908_v16 = vshll.u32 %v5764_v31, 16 }
 0x1bb   : > { %v3432_v18 = vsel %vm5174_vm3, %v3427_v6, %v3431_v61  ;;  %v3455_v17 = vrot.slane %v3454_v49, 4  ;;  %v2864_v41 = vrot.slane %v2863_v13, 4  ;;  %v2892_v6 = vrot.slane %v2891_v0, 4 }
 0x1bc   : > { %4699 = vmatmul.mubr.msk.bf16.gmra.mrb[4].mxu1 %vm2264_vm12, %v4229_v29  ;;  %v2821_v29 = vor.u32 %v5686_v19, %v5684_v15  ;;  %v5715_v21 = vcombine.low %v3418_v20, %v3432_v18  ;;  %v5041_v19 = vld [vmem:[%s5915_s3 + $0x90] sm:$0xff]   ;;  %v2880_v20 = vshll.u32 %v5743_v35, 16  ;;  %v2868_v49 = vrot.slane %v2866_v39, 5  ;;  %v3058_v39 = vld [vmem:[#allocation2 + $0x18] sm:$0xe] }
 0x1bd   : > { %4707 = vmatpush3.bf16.msra.mxu1 %v5034_v28  ;;  %4710 = vmatprep.mubr.msk.bf16.mxu1 %vm2264_vm12, %v5035_v45  ;;  %v5040_v28 = vld [vmem:[%s5915_s3 + $0x88] sm:$0xff]   ;;  %v3460_v42 = vsel %vm5174_vm3, %v3455_v17, %v3459_v52  ;;  %v2845_v45 = vrot.slane %v2843_v53, 4  ;;  %v2841_v53 = vsel %vm5174_vm3, %v2836_v26, %v2840_v54  ;;  %v2854_v17 = vrot.slane %v2852_v32, 5 }
 0x1be   : > { %4708 = vmatprep.subr.bf16.mxu1 %v5036_v47  ;;  %v5722_v15 = vcombine.low %v3446_v38, %v3460_v42  ;;  %v2822_v50 = vrot.slane %v2821_v29, 4  ;;  %v2869_v52 = vsel %vm5174_vm3, %v2864_v41, %v2868_v49  ;;  %v5045_v26 = vld [vmem:[%s5915_s3 + $0xa8] sm:$0xff]   ;;  %v2924_v54 = vrot.slane %v2922_v9, 5 }
 0x1bf   : > { %v2910_v13 = vrot.slane %v2908_v16, 5  ;;  %v3102_v32 = vrot.slane %v5736_v60, 5 }
 0x1c0   : > { %v2827_v4 = vsel %vm5174_vm3, %v2822_v50, %v2826_v23 }
 0x1c1   : > { %4709 = vmatpush3.bf16.msra.mxu1 %v5036_v47  ;;  %v2848_v47 = vrot.slane %v2846_v33, 5  ;;  %v2894_v33 = vshll.u32 %v5736_v60, 16  ;;  %v4266_v43 = vcombine.low %v2827_v4, %v2841_v53  ;;  %v3061_v53 = vld [vmem:[#allocation2 + $0x30] sm:$0xe]  ;;  %v3060_v4 = vld [vmem:[#allocation2 + $0x28] sm:$0xe] }
 0x1c2   : > { %4718 = vmatprep.subr.bf16.mxu1 %v5037_v63  ;;  %v4282_v41 = vrot.slane %v3060_v4, 9  ;;  %v3485_v4 = vshll.u32 %v3400_v46, 16 }
 0x1c3   : > { %v2849_v1 = vor.u32 %v2848_v47, %v2845_v45  ;;  %v2896_v18 = vrot.slane %v2894_v33, 5  ;;  %v4279_v45 = vrot.slane %v3057_v37, 9  ;;  %v3086_v47 = vrot.slane %v5676_v58, 5  ;;  %v5054_v37 = vld [vmem:[#allocation2 + $0x20] ss:$8 sps:$4 sm:$0xff]  }
 0x1c4   : > { %4711 = vmatmul.mubr.msk.bf16.vlgmr.msra.gmra.mrb[0].mxu1 %vm2264_vm12, %v5038_v30  ;;  %v2919_v30 = vor.u32 %v2918_v5, %v2915_v44  ;;  %v3090_v33 = vrot.slane %v5734_v59, 5  ;;  %v3063_v5 = vld [vmem:[#allocation2 + $0x40] sm:$0xe] }
 0x1c5   : > { %4719 = vmatpush3.bf16.msra.mxu1 %v5037_v63  ;;  %4714 = vmatprep.mubr.msk.bf16.mxu1 %vm2264_vm12, %v5039_v56  ;;  %v2877_v63 = vor.u32 %v2876_v55, %v2873_v51  ;;  %v2850_v61 = vrot.slane %v2849_v1, 4  ;;  %v2897_v29 = vsel %vm5174_vm3, %v2892_v6, %v2896_v18  ;;  %v2905_v56 = vor.u32 %v2904_v62, %v2901_v10  ;;  %v5046_v51 = vld [vmem:[%s5915_s3 + $0xb0] sm:$0xff]  }
 0x1c6   : > { %4720 = vmatprep.subr.bf16.mxu1 %v5040_v28  ;;  %v2920_v40 = vrot.slane %v2919_v30, 4  ;;  %v3087_v58 = vsel %vm5501_vm13, %v4279_v45, %v3086_v47  ;;  %v4285_v10 = vrot.slane %v3063_v5, 9  ;;  %v3110_v62 = vrot.slane %v5758_v7, 5  ;;  %v5050_v18 = vld [vmem:[%s5915_s3 + $0xd0] sm:$0xff]   ;;  %v5052_v30 = vld [vmem:[%s5915_s3 + $0xd8] sm:$0xff]  }
 0x1c7   : > { %v2878_v14 = vrot.slane %v2877_v63, 4  ;;  %v2855_v36 = vsel %vm5174_vm3, %v2850_v61, %v2854_v17  ;;  %v2906_v50 = vrot.slane %v2905_v56, 4  ;;  %v4280_v63 = vrot.slane %v3058_v39, 9  ;;  %v3062_v61 = vld [vmem:[#allocation2 + $0x38] sm:$0xe]  ;;  %v5057_v47 = vld [vmem:[%s5915_s3 + $0xf0] sm:$0xff]  }
 0x1c8   : > { %v4267_v38 = vcombine.low %v2855_v36, %v2869_v52  ;;  %v2925_v27 = vsel %vm5174_vm3, %v2920_v40, %v2924_v54  ;;  %v3111_v17 = vsel %vm5501_vm13, %v4285_v10, %v3110_v62  ;;  %v3399_v36 = vld [vmem:[#allocation2 + $0x38] sm:$0xf]  ;;  %v3403_v45 = vld [vmem:[#allocation2 + $0x48] sm:$0xf] }
 0x1c9   : > { %4721 = vmatpush3.bf16.msra.mxu1 %v5040_v28  ;;  %v2882_v28 = vrot.slane %v2880_v20, 5  ;;  %v2911_v23 = vsel %vm5174_vm3, %v2906_v50, %v2910_v13  ;;  %v3091_v20 = vsel %vm5501_vm13, %v4280_v63, %v3090_v33  ;;  %v3504_v13 = vshrl.u32 %v3403_v45, 16  ;;  %v3402_v63 = vld [vmem:[#allocation2 + $0x44] sm:$0x1]  ;;  %v3404_v33 = vld [vmem:[#allocation2 + $0x4c] sm:$0x1] }
 0x1ca   : > { %4722 = vmatprep.subr.bf16.mxu1 %v5041_v19  ;;  %v4269_v0 = vcombine.low %v2911_v23, %v2925_v27  ;;  %v3507_v27 = vshll.u32 %v3403_v45, 16  ;;  %v5058_v23 = vld [vmem:[#allocation2 + $0x40] ss:$8 sps:$4 sm:$0xff]   ;;  %v3499_v5 = vshll.u32 %v3402_v63, 16  ;;  %v3652_v10 = vld [vmem:[#allocation2 + $0x38] sm:$0xe] }
 0x1cb   : > { %v2883_v42 = vsel %vm5174_vm3, %v2878_v14, %v2882_v28  ;;  %v3106_v14 = vrot.slane %v5764_v31, 5  ;;  %v5051_v28 = vld [vmem:[#allocation2 + $0x10] ss:$8 sps:$4 sm:$0xff]   ;;  %v5053_v31 = vld [vmem:[%s5915_s3 + $0xe0] sm:$0xff]  }
 0x1cc   : > { %4715 = vmatmul.mubr.msk.bf16.gmra.mrb[4].mxu1 %vm2264_vm12, %v5042_v24  ;;  %v4268_v34 = vcombine.low %v2883_v42, %v2897_v29  ;;  %v3094_v24 = vrot.slane %v5728_v25, 5  ;;  %v3098_v25 = vrot.slane %v5743_v35, 5  ;;  %v5049_v35 = vld [vmem:[%s5915_s3 + $0xc8] sm:$0xff]   ;;  %v3397_v29 = vld [vmem:[#allocation2 + $0x30] sm:$0xf]  ;;  %v3476_v42 = vshrl.u32 %v3399_v36, 16 }
 0x1cd   : > { %4723 = vmatpush3.bf16.msra.mxu1 %v5041_v19  ;;  %4726 = vmatprep.mubr.msk.bf16.mxu1 %vm2264_vm12, %v4266_v43  ;;  %v3056_v19 = vld [vmem:[#allocation2 + $0x8] sm:$0xe]  ;;  %v5048_v43 = vld [vmem:[%s5915_s3 + $0xc0] sm:$0xff]   ;;  %v3462_v56 = vshrl.u32 %v3397_v29, 16  ;;  %v3465_v9 = vshll.u32 %v3397_v29, 16  ;;  %v5062_v29 = vld [vmem:[%s5915_s3 + $0x110] sm:$0xff]  }
 0x1ce   : > { %4724 = vmatprep.subr.bf16.mxu1 %v5043_v22  ;;  %v4278_v55 = vrot.slane %v3056_v19, 9  ;;  %v3095_v44 = vsel %vm5501_vm13, %v4281_v3, %v3094_v24  ;;  %v3099_v6 = vsel %vm5501_vm13, %v4282_v41, %v3098_v25  ;;  %v3401_v19 = vld [vmem:[#allocation2 + $0x40] sm:$0xf]  ;;  %v3478_v50 = vrot.slane %v3476_v42, 4 }
 0x1cf   : > { %v4295_v59 = vcombine.low %v3091_v20, %v3095_v44  ;;  %v3464_v16 = vrot.slane %v3462_v56, 4  ;;  %v3467_v40 = vrot.slane %v3465_v9, 5  ;;  %v3509_v3 = vrot.slane %v3507_v27, 5  ;;  %v3651_v20 = vld [vmem:[#allocation2 + $0x30] sm:$0xe] }
 0x1d0   : > { %v3083_v1 = vsel %vm5501_vm13, %v4278_v55, %v3082_v57  ;;  %v3490_v55 = vshrl.u32 %v3401_v19, 16  ;;  %v3493_v57 = vshll.u32 %v3401_v19, 16  ;;  %v3513_v25 = vshll.u32 %v3404_v33, 16  ;;  %v3653_v56 = vld [vmem:[#allocation2 + $0x40] sm:$0xe] }
 0x1d1   : > { %4725 = vmatpush3.bf16.msra.mxu1 %v5043_v22  ;;  %v4294_v2 = vcombine.low %v3083_v1, %v3087_v58  ;;  %v4283_v22 = vrot.slane %v3061_v53, 9  ;;  %v3468_v58 = vor.u32 %v3467_v40, %v3464_v16  ;;  %v5059_v53 = vld [vmem:[%s5915_s3 + $0xf8] sm:$0xff]   ;;  %v4350_v62 = vrot.slane %v3651_v20, 9  ;;  %v3654_v9 = vld [vmem:[#allocation2 + $0x48] sm:$0xe] }
 0x1d2   : > { %4734 = vmatprep.subr.bf16.mxu1 %v5044_v11  ;;  %v3495_v39 = vrot.slane %v3493_v57, 5  ;;  %v4352_v42 = vrot.slane %v3653_v56, 9 }
 0x1d3   : > { %v3103_v60 = vsel %vm5501_vm13, %v4283_v22, %v3102_v32  ;;  %v3469_v24 = vrot.slane %v3468_v58, 4 }
 0x1d4   : > { %4727 = vmatmul.mubr.msk.bf16.vlgmr.msra.gmra.mrb[0].mxu1 %vm2264_vm12, %v4267_v38  ;;  %v4296_v49 = vcombine.low %v3099_v6, %v3103_v60  ;;  %v5056_v38 = vld [vmem:[%s5915_s3 + $0xe8] sm:$0xff]   ;;  %v3487_v60 = vrot.slane %v3485_v4, 5 }
 0x1d5   : > { %4735 = vmatpush3.bf16.msra.mxu1 %v5044_v11  ;;  %4730 = vmatprep.mubr.msk.bf16.mxu1 %vm2264_vm12, %v4268_v34  ;;  %v4284_v11 = vrot.slane %v3062_v61, 9  ;;  %v5055_v34 = vld [vmem:[#allocation2 + $0x30] ss:$8 sps:$4 sm:$0xff]  }
 0x1d6   : > { %4736 = vmatprep.subr.bf16.mxu1 %v5045_v26 }
 0x1d7   : > { %v3107_v7 = vsel %vm5501_vm13, %v4284_v11, %v3106_v14  ;;  %v3501_v14 = vrot.slane %v3499_v5, 5 }
 0x1d8   : > { %v4297_v52 = vcombine.low %v3107_v7, %v3111_v17  ;;  %v4351_v17 = vrot.slane %v3652_v10, 9  ;;  %v3693_v7 = vrot.slane %v3400_v46, 5 }
 0x1d9   : > { %4737 = vmatpush3.bf16.msra.mxu1 %v5045_v26  ;;  %v3479_v26 = vshll.u32 %v3399_v36, 16 }
 0x1da   : > { %4738 = vmatprep.subr.bf16.mxu1 %v5046_v51 }
 0x1db   : > { %v3481_v54 = vrot.slane %v3479_v26, 5  ;;  %v4353_v26 = vrot.slane %v3654_v9, 9 }
 0x1dc   : > { %4731 = vmatmul.mubr.msk.bf16.gmra.mrb[4].mxu1 %vm2264_vm12, %v4269_v0 }
 0x1dd   : > { %4739 = vmatpush3.bf16.msra.mxu1 %v5046_v51  ;;  %4742 = vmatprep.mubr.msk.bf16.mxu1 %vm2264_vm12, %v4294_v2  ;;  %v3398_v51 = vld [vmem:[#allocation2 + $0x34] sm:$0x1]  ;;  %v3482_v1 = vor.u32 %v3481_v54, %v3478_v50  ;;  %v3506_v2 = vrot.slane %v3504_v13, 4  ;;  %v4163_v54 = vld [vmem:[%s5918_s6] ss:$0 sm:$0xff] }
 0x1de   : > { %4740 = vmatprep.subr.bf16.mxu1 %v5047_v8  ;;  %v3471_v0 = vshll.u32 %v3398_v51, 16  ;;  %v3689_v11 = vrot.slane %v3398_v51, 5 }
 0x1df   : > { %v3483_v32 = vrot.slane %v3482_v1, 4  ;;  %v3510_v41 = vor.u32 %v3509_v3, %v3506_v2 }
 0x1e0   : > { %v3473_v22 = vrot.slane %v3471_v0, 5 }
 0x1e1   : > { %4741 = vmatpush3.bf16.msra.mxu1 %v5047_v8  ;;  %v3492_v8 = vrot.slane %v3490_v55, 4  ;;  %v3511_v61 = vrot.slane %v3510_v41, 4 }
 0x1e2   : > { %4750 = vmatprep.subr.bf16.mxu1 %v5048_v43  ;;  %v3474_v44 = vsel %vm5174_vm3, %v3469_v24, %v3473_v22 }
 0x1e4   : > { %4743 = vmatmul.mubr.msk.bf16.vlgmr.msra.gmra.mrb[0].mxu1 %vm2264_vm12, %v4295_v59  ;;  %v5060_v59 = vld [vmem:[%s5915_s3 + $0x100] sm:$0xff]  }
 0x1e5   : > { %4751 = vmatpush3.bf16.msra.mxu1 %v5048_v43  ;;  %4746 = vmatprep.mubr.msk.bf16.mxu1 %vm2264_vm12, %v4296_v49  ;;  %v3496_v43 = vor.u32 %v3495_v39, %v3492_v8  ;;  %v3515_v49 = vrot.slane %v3513_v25, 5 }
 0x1e6   : > { %4752 = vmatprep.subr.bf16.mxu1 %v5049_v35 }
 0x1e9   : > { %4753 = vmatpush3.bf16.msra.mxu1 %v5049_v35  ;;  %v3497_v35 = vrot.slane %v3496_v43, 4 }
 0x1ea   : > { %4754 = vmatprep.subr.bf16.mxu1 %v5050_v18 }
 0x1ec   : > { %4747 = vmatmul.mubr.msk.bf16.gmra.mrb[4].mxu1 %vm2264_vm12, %v4297_v52  ;;  %v3502_v52 = vsel %vm5174_vm3, %v3497_v35, %v3501_v14 }
 0x1ed   : > { %4755 = vmatpush3.bf16.msra.mxu1 %v5050_v18  ;;  %4758 = vmatprep.mubr.msk.bf16.mxu1 %vm2264_vm12, %v5051_v28  ;;  %v5061_v18 = vld [vmem:[%s5915_s3 + $0x108] sm:$0xff]  }
 0x1ee   : > { %4756 = vmatprep.subr.bf16.mxu1 %v5052_v30 }
 0x1f1   : > { %4757 = vmatpush3.bf16.msra.mxu1 %v5052_v30  ;;  %v3516_v30 = vsel %vm5174_vm3, %v3511_v61, %v3515_v49 }
 0x1f2   : > { %4766 = vmatprep.subr.bf16.mxu1 %v5053_v31  ;;  %v4337_v28 = vcombine.low %v3502_v52, %v3516_v30 }
 0x1f4   : > { %4759 = vmatmul.mubr.msk.bf16.vlgmr.msra.gmra.mrb[0].mxu1 %vm2264_vm12, %v5054_v37  ;;  %v3697_v37 = vrot.slane %v3402_v63, 5 }
 0x1f5   : > { %4767 = vmatpush3.bf16.msra.mxu1 %v5053_v31  ;;  %4762 = vmatprep.mubr.msk.bf16.mxu1 %vm2264_vm12, %v5055_v34  ;;  %v3694_v31 = vsel %vm5501_vm13, %v4351_v17, %v3693_v7 }
 0x1f6   : > { %4768 = vmatprep.subr.bf16.mxu1 %v5056_v38  ;;  %v3698_v34 = vsel %vm5501_vm13, %v4352_v42, %v3697_v37 }
 0x1f9   : > { %4769 = vmatpush3.bf16.msra.mxu1 %v5056_v38  ;;  %v3701_v38 = vrot.slane %v3404_v33, 5 }
 0x1fa   : > { %4770 = vmatprep.subr.bf16.mxu1 %v5057_v47 }
 0x1fb   : > { %v3702_v16 = vsel %vm5501_vm13, %v4353_v26, %v3701_v38 }
 0x1fc   : > { %4763 = vmatmul.mubr.msk.bf16.gmra.mrb[4].mxu1 %vm2264_vm12, %v5058_v23  ;;  %v4365_v40 = vcombine.low %v3698_v34, %v3702_v16 }
 0x1fd   : > { %4771 = vmatpush3.bf16.msra.mxu1 %v5057_v47  ;;  %4774 = vmatprep.mubr.msk.bf16.mxu1 %vm2264_vm12, %v5715_v21  ;;  %v3488_v21 = vsel %vm5174_vm3, %v3483_v32, %v3487_v60 }
 0x1fe   : > { %4772 = vmatprep.subr.bf16.mxu1 %v5059_v53  ;;  %v4336_v6 = vcombine.low %v3474_v44, %v3488_v21 }
 0x201   : > { %4773 = vmatpush3.bf16.msra.mxu1 %v5059_v53 }
 0x202   : > { %4798 = vmatprep.subr.bf16.mxu1 %v5060_v59 }
 0x204   : > { %4775 = vmatmul.mubr.msk.bf16.vlgmr.msra.gmra.mrb[0].mxu1 %vm2264_vm12, %v5722_v15  ;;  %v3690_v15 = vsel %vm5501_vm13, %v4350_v62, %v3689_v11 }
 0x205   : > { %4802 = vmatpush3.bf16.msra.mxu1 %v5060_v59  ;;  %4778 = vmatprep.mubr.msk.bf16.mxu1 %vm2264_vm12, %v4336_v6  ;;  %v4364_v36 = vcombine.low %v3690_v15, %v3694_v31 }
 0x206   : > { %4799 = vmatprep.subr.bf16.mxu1 %v5061_v18 }
 0x209   : > { %4803 = vmatpush3.bf16.msra.mxu1 %v5061_v18 }
 0x20a   : > { %4800 = vmatprep.subr.bf16.mxu1 %v5062_v29 }
 0x20c   : > { %4779 = vmatmul.mubr.msk.bf16.gmra.mrb[4].mxu1 %vm2264_vm12, %v4337_v28 }
 0x20d   : > { %4794 = vmatprep.mubr.msk.bf16.mxu1 %vm2264_vm12, %v4364_v36  ;;  %4804 = vmatpush3.bf16.msra.mxu1 %v5062_v29 }
 0x20e   : > { %4801 = vmatprep.subr.bf16.mxu1 %v5063_v48 }
 0x211   : > { %4805 = vmatpush3.bf16.msra.mxu1 %v5063_v48 }
 0x218   : > { %4795 = vmatmul.mubr.msk.bf16.vlgmr.msra.gmra.mrb[4].mxu1 %vm2264_vm12, %v4365_v40 }
 0x262   : > { %v4792_v19 = vpop.f32.mrb[8].mxu0 }
 0x263   : > { %v3794_v45 = vpop.f32.mrb[9].mxu0 }
 0x264   : > { %v4793_v47 = vpop.f32.mrb[10].mxu0 }
 0x265   : > { %v3797_v50 = vpop.f32.mrb[11].mxu0 }
 0x2d7   : > { %v4776_v51 = vpop.f32.mrb[0].mxu1 }
 0x2d8   : > { %v4806_v55 = vadd.f32 %v4776_v51, %v4163_v54  ;;  %v3608_v57 = vpop.f32.mrb[1].mxu1 }
 0x2d9   : > { %v4809_v13 = vadd.f32 %v4163_v54, %v3608_v57  ;;  %v4777_v27 = vpop.f32.mrb[2].mxu1 }
 0x2da   : > { %v4807_v58 = vadd.f32 %v4806_v55, %v4792_v19  ;;  %v4812_v46 = vadd.f32 %v4777_v27, %v4163_v54  ;;  %v3611_v23 = vpop.f32.mrb[3].mxu1 }
 0x2db   : > { %v4810_v53 = vadd.f32 %v4809_v13, %v3794_v45  ;;  %v4815_v0 = vadd.f32 %v4163_v54, %v3611_v23 }
 0x2dc   : > { %v4808_v1 = vadd.f32 %v4807_v58, %v4374_v12  ;;  %v4813_v8 = vadd.f32 %v4812_v46, %v4793_v47 }
 0x2dd   : > { %v4811_v39 = vadd.f32 %v4810_v53, %v4374_v12  ;;  %v4816_v2 = vadd.f32 %v4815_v0, %v3797_v50 }
 0x2de   : > { %v3858_v3 = vmax.f32 %v4808_v1, 0.0  ;;  %v4814_v24 = vadd.f32 %v4813_v8, %v4374_v12 }
 0x2df   : > { %v3856_v4 = vmax.f32 %v4811_v39, 0.0  ;;  %v4817_v22 = vadd.f32 %v4816_v2, %v4374_v12 }
 0x2e0   : > { %v4396_v32 = vpack.c.bf16 %v3858_v3, %v3858_v3  ;;  %v3859_v63 = vmax.f32 %v4814_v24, 0.0 }
 0x2e1   : > { %v4394_v33 = vpack.c.bf16 %v3856_v4, %v3856_v4  ;;  %v3857_v43 = vmax.f32 %v4817_v22, 0.0 }
 0x2e2   : > { %3898 = vst.msk [vmem:[%s5891_s11 + $0x8] sm:$0xf] %vm1894_vm4, %v4396_v32  ;;  %v4397_v41 = vpack.c.bf16 %v3859_v63, %v3859_v63 }
 0x2e3   : > { %3896 = vst.msk [vmem:[%s5891_s11] sm:$0xf] %vm1894_vm4, %v4394_v33  ;;  %v4395_v25 = vpack.c.bf16 %v3857_v43, %v3857_v43 }
 0x2e4   : > { %3899 = vst.msk [vmem:[%s5891_s11 + $0xc] sm:$0xf] %vm1894_vm4, %v4397_v41 }
 0x2e5   : > { %3897 = vst.msk [vmem:[%s5891_s11 + $0x4] sm:$0xf] %vm1894_vm4, %v4395_v25 }
 0x2eb   : > { %v4796_v44 = vpop.f32.mrb[4].mxu1 }
 0x2ec   : > { %v4818_v60 = vadd.f32 %v4796_v44, %v4163_v54  ;;  %v3810_v5 = vpop.f32.mrb[5].mxu1 }
 0x2ed   : > { %v4820_v20 = vadd.f32 %v4163_v54, %v3810_v5  ;;  %v4797_v59 = vpop.f32.mrb[6].mxu1 }
 0x2ee   : > { %v4819_v21 = vadd.f32 %v4818_v60, %v4374_v12  ;;  %v4822_v6 = vadd.f32 %v4797_v59, %v4163_v54  ;;  %v3813_v35 = vpop.f32.mrb[7].mxu1 }
 0x2ef   : > { %v4821_v61 = vadd.f32 %v4820_v20, %v4374_v12  ;;  %v4824_v49 = vadd.f32 %v4163_v54, %v3813_v35 }
 0x2f0   : > { %v3862_v10 = vmax.f32 %v4819_v21, 0.0  ;;  %v4823_v62 = vadd.f32 %v4822_v6, %v4374_v12 }
 0x2f1   : > { %v3860_v11 = vmax.f32 %v4821_v61, 0.0  ;;  %v4825_v14 = vadd.f32 %v4824_v49, %v4374_v12 }
 0x2f2   : > { %v4400_v18 = vpack.c.bf16 %v3862_v10, %v3862_v10  ;;  %v3863_v17 = vmax.f32 %v4823_v62, 0.0 }
 0x2f3   : > { %v4398_v7 = vpack.c.bf16 %v3860_v11, %v3860_v11  ;;  %v3861_v52 = vmax.f32 %v4825_v14, 0.0 }
 0x2f4   : > { %3902 = vst.msk [vmem:[%s5891_s11 + $0x18] sm:$0xf] %vm1894_vm4, %v4400_v18  ;;  %v4401_v30 = vpack.c.bf16 %v3863_v17, %v3863_v17 }
 0x2f5   : > { %3900 = vst.msk [vmem:[%s5891_s11 + $0x10] sm:$0xf] %vm1894_vm4, %v4398_v7  ;;  %v4399_v15 = vpack.c.bf16 %v3861_v52, %v3861_v52 }
 0x2f6   : > { %3903 = vst.msk [vmem:[%s5891_s11 + $0x1c] sm:$0xf] %vm1894_vm4, %v4401_v30 }
 0x2f7   : > { %3901 = vst.msk [vmem:[%s5891_s11 + $0x14] sm:$0xf] %vm1894_vm4, %v4399_v15 }
 0x2f8 PF: > { %s17_s24 = sadd.s32 1, %s5070_s24  }
 0x2f9   : > { %p14_p5 = scmp.ge.s32.totalorder %s17_s24, 4  }
 0x2fb   :  { %16 = sbr.rel (!%p14_p5) target bundleno = 1 (0x1), region = 101 }

// kernel: pallas_forward.3
= control target key start
LH: loop header
LB: loop body
LE: loop exit
PB: predicated region body
PF: predicated region fallthrough
CT: control target
= control target key end

     0   :  { %10 = vsyncpa [#allocation4], 0  ;;  %s6579_s0 = inlined_call_operand.vmem [shape: bf16[2,10,10,64], index: 0, kind: input, shape index: {}]   ;;  %s6580_s1 = inlined_call_operand.vmem [shape: bf16[9,64,64], index: 1, kind: input, shape index: {}]   ;;  %s6581_s2 = inlined_call_operand.vmem [shape: f32[1,64], index: 2, kind: input, shape index: {}]   ;;  %s6582_s3 = inlined_call_operand.vmem [shape: bf16[9,64,64], index: 3, kind: input, shape index: {}]   ;;  %s6583_s4 = inlined_call_operand.vmem [shape: f32[1,64], index: 4, kind: input, shape index: {}]   ;;  %s6584_s5 = inlined_call_operand.hbm [shape: bf16[2,64,64], index: 5, kind: output, shape index: {}]  }
   0x1   :  { %12 = vsyncpa [#allocation4 + $0x1], 0  ;;  %s5398_s18 = smov 0   ;;  %s5400_s19 = smov 0  }
   0x2   :  { %s5402_s20 = smov 0   ;;  %s5404_s21 = smov 0  }
   0x3 LB: > { %s5419_s22 = sadd.s32 4294967295, %s5362_s21   ;;  %s4099_s23 = sadd.s32 4294967294, %s5362_s21   ;;  %s5362_s21 = sphi %s5404_s21, %s6598_s21   ;;  %s5358_s20 = sphi %s5402_s20, %s6597_s20   ;;  %s5354_s19 = sphi %s5400_s19, %s6596_s19   ;;  %s5350_s18 = sphi %s5398_s18, %s6595_s18  }
   0x4   : > { %s5423_s24 = sadd.s32 1, %s5362_s21   ;;  %s135_s25 = sadd.s32 1, %s5358_s20 }
   0x5   : > { %s132_s26 = ssub.s32 %s5362_s21, %s5423_s24  ;;  %p145_p0 = scmp.ne.s32.totalorder %s5358_s20, %s5354_s19 }
   0x6   : > { %p133_p1 = scmp.eq.s32.totalorder %s132_s26, 0  ;;  %p146_p2 = scmp.eq.s32.totalorder %s5419_s22, 1 }
   0x7   : > { %p151_p3 = scmp.ne.s32.totalorder %s5354_s19, %s5350_s18  ;;  %p152_p4 = scmp.eq.s32.totalorder %s4099_s23, 1 }
   0x8   : > { %s5434_s27 = scalar_select %p133_p1, %s5358_s20, %s135_s25  }
   0x9   : > { %p5436_p5 = por %p146_p2, %p145_p0  ;;  %p5440_p6 = por %p152_p4, %p151_p3 }
   0xa   : > { %p4102_p7 = scmp.ge.s32.totalorder %s5362_s21, 1  ;;  %p190_p8 = scmp.lt.s32.totalorder %s5362_s21, 3 }
   0xc   : > { %p191_p9 = pnand %p4102_p7, %p190_p8 }
   0xd   : > { %v5204_v0 = vld [vmem:[%s6580_s1 + $0x20] sm:$0xff] (!%p191_p9)   ;;  %p218_p10 = scmp.lt.s32.totalorder (!%p191_p9), %s5419_s22, 1  ;;  %v5205_v1 = vld [vmem:[%s6580_s1 + $0x28] sm:$0xff] (!%p191_p9)   ;;  %v5206_v2 = vld [vmem:[%s6580_s1 + $0x30] sm:$0xff] (!%p191_p9)   ;;  %vm248_vm0 = vsmask.f32 (!%p191_p9), 3328 }
   0xe   : > { %194 = sbr.rel (%p191_p9) target bundleno = 801 (0x321), region = 40  ;;  %4745 = vmatprep.subr.bf16.mxu0 (!%p191_p9), %v5204_v0  ;;  %v5207_v3 = vld [vmem:[%s6580_s1 + $0x38] sm:$0xff] (!%p191_p9)   ;;  %vm249_vm1 = vsmask.f32 (!%p191_p9), 7440  ;;  %v5498_v25 = vld [vmem:[%s6580_s1] sm:$0xff] (!%p191_p9)   ;;  %vm408_vm3 = vcmask (!%p191_p9), 523264  }
   0xf   : > { %4746 = vmatpush3.bf16.msra.mxu0 (!%p191_p9), %v5204_v0  ;;  %vm5505_vm2 = vmor (!%p191_p9), %vm248_vm0, %vm249_vm1  ;;  %vm631_vm4 = vcmask (!%p191_p9), 1042432   ;;  %vm632_vm5 = vcmask (!%p191_p9), 1046532   ;;  %vm2017_vm7 = vcmask (!%p191_p9), 519168   ;;  %vm2019_vm8 = vcmask (!%p191_p9), 516096   ;;  %s215_s23 = sand.u32 (!%p191_p9), 1, %s5354_s19   ;;  %s4600_s30 = sshll.u32 (!%p191_p9), %s5419_s22, 9 }
  0x10   : > { %4747 = vmatprep.subr.bf16.mxu0 (!%p191_p9), %v5205_v1  ;;  %vm5596_vm6 = vmor (!%p191_p9), %vm631_vm4, %vm632_vm5  ;;  %vm2153_vm9 = vsmask.f32 (!%p191_p9), 7938  ;;  %vm2159_vm10 = vsmask.f32 (!%p191_p9), 256  ;;  %s4103_s25 = sshll.u32 (!%p191_p9), %s215_s23, 5  ;;  %s6526_s8 = scalar_lea.hbm (!%p191_p9), %s6584_s5, %s4600_s30 }
  0x11   : > { %vm6087_vm11 = vmand (!%p191_p9), %vm2017_vm7, %vm2153_vm9  ;;  %s6507_s26 = scalar_lea.vmem (!%p191_p9), [#allocation3], %s4103_s25  ;;  %s5365_s10 = smov (!%p191_p9), [#allocation3]  }
  0x12   : > { %vm6094_vm12 = vmand (!%p191_p9), %vm2019_vm8, %vm2159_vm10  ;;  %s5304_s11 = sshll.u32 (!%p191_p9), %s5365_s10, 4  ;;  %s5305_s11 = int_to_ptr.vmem [resolvable:$false] %s5304_s11 }
  0x13   : > { %4748 = vmatpush3.bf16.msra.mxu0 (!%p191_p9), %v5205_v1 }
  0x14   : > { %4749 = vmatprep.subr.bf16.mxu0 (!%p191_p9), %v5206_v2 }
  0x15   : > { %s219_s9 = scalar_select %p218_p10, %s5419_s22, 1 }
  0x16   : > { %s6538_s22 = scalar_lea.sflag [#allocation4], %s215_s23 }
  0x17   : > { %s5161_s12 = smul.u32 80, %s219_s9  ;;  %4750 = vmatpush3.bf16.msra.mxu0 %v5206_v2 }
  0x18   : > { %4751 = vmatprep.subr.bf16.mxu0 %v5207_v3 }
  0x19   : > { %s5463_s17 = scalar_lea.vmem %s6579_s0, %s5161_s12  ;;  %s5306_s12 = scalar_lea.vmem %s5305_s11, 1024 }
  0x1a   : > { %v5466_v4 = vld [vmem:[%s5463_s17] sm:$0xf]  ;;  %v5469_v5 = vld [vmem:[%s5463_s17 + $0x8] sm:$0xf]  ;;  %v5472_v6 = vld [vmem:[%s5463_s17 + $0x4] sm:$0x1] }
  0x1b   : > { %v5475_v7 = vld [vmem:[%s5463_s17 + $0xc] sm:$0x1]  ;;  %v252_v8 = vshrl.u32 %v5466_v4, 16  ;;  %v255_v9 = vshll.u32 %v5466_v4, 16  ;;  %v261_v10 = vshll.u32 %v5472_v6, 16  ;;  %v266_v11 = vshrl.u32 %v5469_v5, 16  ;;  %4752 = vmatpush3.bf16.msra.mxu0 %v5207_v3 }
  0x1c   : > { %v269_v12 = vshll.u32 %v5469_v5, 16  ;;  %v275_v13 = vshll.u32 %v5475_v7, 16  ;;  %v5484_v14 = vld [vmem:[%s5463_s17 + $0x10] sm:$0xf]  ;;  %v5487_v19 = vld [vmem:[%s5463_s17 + $0x18] sm:$0xf]  ;;  %4761 = vmatprep.subr.bf16.mxu0 %v5498_v25 }
  0x1d   : > { %v254_v15 = vrot.slane %v252_v8, 4  ;;  %v257_v16 = vrot.slane %v255_v9, 5  ;;  %v263_v17 = vrot.slane %v261_v10, 5  ;;  %v268_v18 = vrot.slane %v266_v11, 4  ;;  %v5490_v22 = vld [vmem:[%s5463_s17 + $0x14] sm:$0x1] }
  0x1e   : > { %v271_v20 = vrot.slane %v269_v12, 5  ;;  %v277_v21 = vrot.slane %v275_v13, 5  ;;  %v5493_v23 = vld [vmem:[%s5463_s17 + $0x1c] sm:$0x1]  ;;  %v280_v26 = vshrl.u32 %v5484_v14, 16  ;;  %v283_v27 = vshll.u32 %v5484_v14, 16 }
  0x1f   : > { %v258_v24 = vor.u32 %v257_v16, %v254_v15  ;;  %v289_v28 = vshll.u32 %v5490_v22, 16  ;;  %v294_v31 = vshrl.u32 %v5487_v19, 16  ;;  %v297_v32 = vshll.u32 %v5487_v19, 16  ;;  %v5513_v34 = vld [vmem:[%s5463_s17 + $0x20] sm:$0xf]  ;;  %v5209_v13 = vld [vmem:[%s6580_s1 + $0x8] sm:$0xff]  }
  0x20   : > { %v272_v30 = vor.u32 %v271_v20, %v268_v18  ;;  %v303_v33 = vshll.u32 %v5493_v23, 16  ;;  %v282_v36 = vrot.slane %v280_v26, 4  ;;  %v285_v37 = vrot.slane %v283_v27, 5  ;;  %v5516_v38 = vld [vmem:[%s5463_s17 + $0x28] sm:$0xf]  ;;  %v5210_v26 = vld [vmem:[%s6580_s1 + $0x10] sm:$0xff]  }
  0x21   : > { %v259_v35 = vrot.slane %v258_v24, 4  ;;  %v296_v40 = vrot.slane %v294_v31, 4  ;;  %v299_v41 = vrot.slane %v297_v32, 5  ;;  %v5519_v42 = vld [vmem:[%s5463_s17 + $0x24] sm:$0x1]  ;;  %v291_v45 = vrot.slane %v289_v28, 5 }
  0x22   : > { %v273_v39 = vrot.slane %v272_v30, 4  ;;  %v286_v44 = vor.u32 %v285_v37, %v282_v36  ;;  %v305_v46 = vrot.slane %v303_v33, 5  ;;  %v5527_v49 = vld [vmem:[%s5463_s17 + $0x2c] sm:$0x1]  ;;  %v308_v50 = vshrl.u32 %v5513_v34, 16 }
  0x23   : > { %v264_v43 = vsel %vm5505_vm2, %v259_v35, %v263_v17  ;;  %v300_v48 = vor.u32 %v299_v41, %v296_v40  ;;  %v311_v51 = vshll.u32 %v5513_v34, 16  ;;  %v5532_v52 = vld [vmem:[%s5463_s17 + $0x30] sm:$0xf]  ;;  %v317_v55 = vshll.u32 %v5519_v42, 16  ;;  %v5537_v57 = vld [vmem:[%s5463_s17 + $0x38] sm:$0xf] }
  0x24   : > { %v278_v47 = vsel %vm5505_vm2, %v273_v39, %v277_v21  ;;  %v287_v54 = vrot.slane %v286_v44, 4  ;;  %v322_v56 = vshrl.u32 %v5516_v38, 16  ;;  %v5540_v58 = vld [vmem:[%s5463_s17 + $0x34] sm:$0x1]  ;;  %v310_v60 = vrot.slane %v308_v50, 4 }
  0x25   : > { %v4113_v53 = vcombine.low %v264_v43, %v278_v47  ;;  %v301_v59 = vrot.slane %v300_v48, 4  ;;  %v313_v61 = vrot.slane %v311_v51, 5  ;;  %v325_v62 = vshll.u32 %v5516_v38, 16  ;;  %v5544_v63 = vld [vmem:[%s5463_s17 + $0x3c] sm:$0x1]  ;;  %v5213_v51 = vld [vmem:[%s6580_s1 + $0x40] sm:$0xff]  }
  0x26   : > { %v292_v0 = vsel %vm5505_vm2, %v287_v54, %v291_v45  ;;  %v319_v1 = vrot.slane %v317_v55, 5  ;;  %v324_v2 = vrot.slane %v322_v56, 4  ;;  %v331_v3 = vshll.u32 %v5527_v49, 16  ;;  %v608_v54 = vld [vmem:[%s5463_s17 + $0x8] sm:$0xe] }
  0x27   : > { %4753 = vmatprep.mubr.msk.bf16.mxu0 %vm408_vm3, %v4113_v53  ;;  %v306_v8 = vsel %vm5505_vm2, %v301_v59, %v305_v46  ;;  %v314_v9 = vor.u32 %v313_v61, %v310_v60  ;;  %v327_v10 = vrot.slane %v325_v62, 5  ;;  %v336_v11 = vshrl.u32 %v5532_v52, 16  ;;  %v5211_v46 = vld [vmem:[%s6580_s1 + $0x18] sm:$0xff]   ;;  %v607_v53 = vld [vmem:[%s5463_s17] sm:$0xe]  ;;  %v5215_v56 = vld [vmem:[%s6580_s1 + $0x48] sm:$0xff]  }
  0x28   : > { %v4114_v12 = vcombine.low %v292_v0, %v306_v8  ;;  %v333_v15 = vrot.slane %v331_v3, 5  ;;  %v339_v16 = vshll.u32 %v5532_v52, 16  ;;  %v345_v17 = vshll.u32 %v5540_v58, 16  ;;  %v611_v62 = vld [vmem:[%s5463_s17 + $0x20] sm:$0xe] }
  0x29   : > { %v315_v18 = vrot.slane %v314_v9, 4  ;;  %v328_v20 = vor.u32 %v327_v10, %v324_v2  ;;  %v338_v21 = vrot.slane %v336_v11, 4  ;;  %v350_v24 = vshrl.u32 %v5537_v57, 16  ;;  %v612_v0 = vld [vmem:[%s5463_s17 + $0x28] sm:$0xe]  ;;  %v5219_v9 = vld [vmem:[%s6580_s1 + $0x58] sm:$0xff]  }
  0x2a   : > { %4754 = vmatmul.mubr.msk.bf16.vlgmr.msra.gmra.mrb[0].mxu0 %vm408_vm3, %v4114_v12  ;;  %v341_v27 = vrot.slane %v339_v16, 5  ;;  %v353_v28 = vshll.u32 %v5537_v57, 16  ;;  %v359_v30 = vshll.u32 %v5544_v63, 16  ;;  %v347_v36 = vrot.slane %v345_v17, 5  ;;  %v613_v16 = vld [vmem:[%s5463_s17 + $0x30] sm:$0xe] }
  0x2b   : > { %4762 = vmatpush3.bf16.msra.mxu0 %v5498_v25  ;;  %v320_v31 = vsel %vm5505_vm2, %v315_v18, %v319_v1  ;;  %v329_v32 = vrot.slane %v328_v20, 4  ;;  %v352_v33 = vrot.slane %v350_v24, 4  ;;  %v4125_v48 = vcombine.low %v5466_v4, %v5469_v5  ;;  %v614_v17 = vld [vmem:[%s5463_s17 + $0x38] sm:$0xe]  ;;  %v5220_v20 = vld [vmem:[%s6580_s1 + $0x60] sm:$0xff]  }
  0x2c   : > { %4763 = vmatprep.subr.bf16.mxu0 %v5209_v13  ;;  %v342_v35 = vor.u32 %v341_v27, %v338_v21  ;;  %v355_v37 = vrot.slane %v353_v28, 5  ;;  %v361_v44 = vrot.slane %v359_v30, 5  ;;  %v636_v55 = vrot.slane %v5472_v6, 5 }
  0x2d   : > { %v334_v39 = vsel %vm5505_vm2, %v329_v32, %v333_v15  ;;  %v4126_v4 = vcombine.low %v5484_v14, %v5487_v19  ;;  %v640_v5 = vrot.slane %v5475_v7, 5  ;;  %v4127_v59 = vcombine.low %v5513_v34, %v5516_v38  ;;  %v5217_v7 = vld [vmem:[%s6580_s1 + $0x50] sm:$0xff]   ;;  %v610_v38 = vld [vmem:[%s5463_s17 + $0x18] sm:$0xe]  ;;  %v4193_v15 = vld [vmem:[%s5463_s17 + $0x8] sm:$0xf] }
  0x2e   : > { %v4115_v40 = vcombine.low %v320_v31, %v334_v39  ;;  %v343_v41 = vrot.slane %v342_v35, 4  ;;  %v356_v43 = vor.u32 %v355_v37, %v352_v33  ;;  %v4137_v60 = vrot.slane %v607_v53, 9  ;;  %v609_v34 = vld [vmem:[%s5463_s17 + $0x10] sm:$0xe]  ;;  %v5645_v37 = vld [vmem:[%s5463_s17 + $0x14] sm:$0x1] }
  0x2f   : > { %4764 = vmatpush3.bf16.msra.mxu0 %v5209_v13  ;;  %v4138_v61 = vrot.slane %v608_v54, 9  ;;  %v644_v1 = vrot.slane %v5490_v22, 5  ;;  %v648_v2 = vrot.slane %v5493_v23, 5  ;;  %v4128_v3 = vcombine.low %v5532_v52, %v5537_v57  ;;  %v4195_v52 = vld [vmem:[%s5463_s17 + $0x10] sm:$0xf] }
  0x30   : > { %4757 = vmatprep.mubr.msk.bf16.mxu0 %vm408_vm3, %v4115_v40  ;;  %4765 = vmatprep.subr.bf16.mxu0 %v5210_v26  ;;  %v348_v25 = vsel %vm5505_vm2, %v343_v41, %v347_v36  ;;  %v357_v45 = vrot.slane %v356_v43, 4  ;;  %v637_v14 = vsel %vm5596_vm6, %v4137_v60, %v636_v55  ;;  %v652_v8 = vrot.slane %v5519_v42, 5  ;;  %v5642_v36 = vld [vmem:[%s5463_s17 + $0xc] sm:$0x1]  ;;  %v5667_v53 = vld [vmem:[%s5463_s17 + $0x24] sm:$0x1] }
  0x31   : > { %v641_v19 = vsel %vm5596_vm6, %v4138_v61, %v640_v5  ;;  %v4139_v11 = vrot.slane %v609_v34, 9  ;;  %v4140_v12 = vrot.slane %v610_v38, 9  ;;  %v656_v13 = vrot.slane %v5527_v49, 5  ;;  %v4201_v54 = vld [vmem:[%s5463_s17 + $0x28] sm:$0xf]  ;;  %v5223_v60 = vld [vmem:[%s6580_s1 + $0x78] sm:$0xff]  }
  0x32   : > { %v362_v47 = vsel %vm5505_vm2, %v357_v45, %v361_v44  ;;  %v4153_v10 = vcombine.low %v637_v14, %v641_v19  ;;  %v4141_v22 = vrot.slane %v611_v62, 9  ;;  %v4142_v23 = vrot.slane %v612_v0, 9  ;;  %v5224_v61 = vld [vmem:[%s5463_s17 + $0x8] ss:$8 sps:$4 sm:$0xff]  }
  0x33   : > { %v4116_v50 = vcombine.low %v348_v25, %v362_v47  ;;  %4766 = vmatpush3.bf16.msra.mxu0 %v5210_v26  ;;  %v645_v42 = vsel %vm5596_vm6, %v4139_v11, %v644_v1  ;;  %v649_v57 = vsel %vm5596_vm6, %v4140_v12, %v648_v2  ;;  %v960_v49 = vshrl.u32 %v4193_v15, 16  ;;  %v5222_v47 = vld [vmem:[%s6580_s1 + $0x70] sm:$0xff]   ;;  %v5678_v2 = vld [vmem:[%s5463_s17 + $0x2c] sm:$0x1] }
  0x34   : > { %4767 = vmatprep.subr.bf16.mxu0 %v5211_v46  ;;  %v963_v18 = vshll.u32 %v4193_v15, 16  ;;  %v653_v21 = vsel %vm5596_vm6, %v4141_v22, %v652_v8  ;;  %v657_v24 = vsel %vm5596_vm6, %v4142_v23, %v656_v13  ;;  %v660_v26 = vrot.slane %v5540_v58, 5  ;;  %v5221_v58 = vld [vmem:[%s6580_s1 + $0x68] sm:$0xff]   ;;  %v5225_v13 = vld [vmem:[%s6580_s1 + $0x80] sm:$0xff]   ;;  %v5687_v15 = vld [vmem:[%s5463_s17 + $0x34] sm:$0x1] }
  0x35   : > { %4758 = vmatmul.mubr.msk.bf16.gmra.mrb[4].mxu0 %vm408_vm3, %v4116_v50  ;;  %v974_v27 = vshrl.u32 %v4195_v52, 16  ;;  %v977_v28 = vshll.u32 %v4195_v52, 16  ;;  %v4154_v30 = vcombine.low %v645_v42, %v649_v57  ;;  %v4143_v31 = vrot.slane %v613_v16, 9  ;;  %v5663_v50 = vld [vmem:[%s5463_s17 + $0x1c] sm:$0x1] }
  0x36   : > { %4769 = vmatprep.mubr.msk.bf16.mxu0 %vm408_vm3, %v4125_v48  ;;  %v4144_v32 = vrot.slane %v614_v17, 9  ;;  %v664_v33 = vrot.slane %v5544_v63, 5  ;;  %v4155_v35 = vcombine.low %v653_v21, %v657_v24  ;;  %v962_v39 = vrot.slane %v960_v49, 4  ;;  %v5226_v17 = vld [vmem:[%s5463_s17 + $0x18] ss:$8 sps:$4 sm:$0xff]  }
  0x37   : > { %4768 = vmatpush3.bf16.msra.mxu0 %v5211_v46  ;;  %v965_v40 = vrot.slane %v963_v18, 5  ;;  %v976_v41 = vrot.slane %v974_v27, 4  ;;  %v979_v63 = vrot.slane %v977_v28, 5  ;;  %v661_v43 = vsel %vm5596_vm6, %v4143_v31, %v660_v26  ;;  %v4197_v46 = vld [vmem:[%s5463_s17 + $0x18] sm:$0xf]  ;;  %v5227_v27 = vld [vmem:[%s6580_s1 + $0x88] sm:$0xff]  }
  0x38   : > { %4777 = vmatprep.subr.bf16.mxu0 %v5213_v51  ;;  %v665_v44 = vsel %vm5596_vm6, %v4144_v32, %v664_v33  ;;  %v969_v25 = vshll.u32 %v5642_v36, 16  ;;  %v983_v45 = vshll.u32 %v5645_v37, 16  ;;  %v988_v5 = vshrl.u32 %v4197_v46, 16  ;;  %v5228_v21 = vld [vmem:[%s5463_s17 + $0x28] ss:$8 sps:$4 sm:$0xff]  }
  0x39   : > { %v966_v48 = vor.u32 %v965_v40, %v962_v39  ;;  %v4156_v55 = vcombine.low %v661_v43, %v665_v44  ;;  %v997_v19 = vshll.u32 %v5663_v50, 16  ;;  %v1011_v0 = vshll.u32 %v5667_v53, 16  ;;  %v4207_v28 = vld [vmem:[%s5463_s17 + $0x40] sm:$0xf]  ;;  %v5709_v43 = vld [vmem:[%s5463_s17 + $0x44] sm:$0x1] }
  0x3a   : > { %v985_v14 = vrot.slane %v983_v45, 5  ;;  %v1016_v1 = vshrl.u32 %v4201_v54, 16  ;;  %v1025_v16 = vshll.u32 %v5678_v2, 16  ;;  %v1039_v26 = vshll.u32 %v5687_v15, 16  ;;  %v5229_v44 = vld [vmem:[%s6580_s1 + $0x90] sm:$0xff]  }
  0x3b   : > { %v967_v38 = vrot.slane %v966_v48, 4  ;;  %v5684_v22 = vrot.slane %v997_v19, 5  ;;  %v1013_v42 = vrot.slane %v1011_v0, 5  ;;  %v1058_v40 = vshrl.u32 %v4207_v28, 16  ;;  %v5230_v48 = vld [vmem:[%s5463_s17 + $0x38] ss:$8 sps:$4 sm:$0xff]  }
  0x3c   : > { %v1018_v57 = vrot.slane %v1016_v1, 4  ;;  %v5231_v19 = vld [vmem:[%s6580_s1 + $0x98] sm:$0xff]   ;;  %v1235_v1 = vrot.slane %v5642_v36, 5  ;;  %v5748_v36 = vld [vmem:[%s5463_s17 + $0x20] sm:$0xe] }
  0x3d   : > { %4770 = vmatmul.mubr.msk.bf16.vlgmr.msra.gmra.mrb[0].mxu0 %vm408_vm3, %v4126_v4  ;;  %v980_v4 = vor.u32 %v979_v63, %v976_v41 }
  0x3e   : > { %4778 = vmatpush3.bf16.msra.mxu0 %v5213_v51  ;;  %4773 = vmatprep.mubr.msk.bf16.mxu0 %vm408_vm3, %v4127_v59  ;;  %v4199_v51 = vld [vmem:[%s5463_s17 + $0x20] sm:$0xf]  ;;  %v4203_v59 = vld [vmem:[%s5463_s17 + $0x30] sm:$0xf] }
  0x3f   : > { %4779 = vmatprep.subr.bf16.mxu0 %v5215_v56  ;;  %v1002_v34 = vshrl.u32 %v4199_v51, 16  ;;  %v1005_v62 = vshll.u32 %v4199_v51, 16  ;;  %v1030_v8 = vshrl.u32 %v4203_v59, 16  ;;  %v1033_v12 = vshll.u32 %v4203_v59, 16  ;;  %v4229_v59 = vld [vmem:[%s5463_s17 + $0x8] sm:$0xe] }
  0x40   : > { %v4237_v0 = vrot.slane %v4229_v59, 9 }
  0x41   : > { %v1004_v23 = vrot.slane %v1002_v34, 4  ;;  %v1007_v52 = vrot.slane %v1005_v62, 5  ;;  %v1032_v18 = vrot.slane %v1030_v8, 4  ;;  %v1035_v24 = vrot.slane %v1033_v12, 5  ;;  %v4230_v62 = vld [vmem:[%s5463_s17 + $0x10] sm:$0xe] }
  0x42   : > { %4780 = vmatpush3.bf16.msra.mxu0 %v5215_v56  ;;  %v991_v56 = vshll.u32 %v4197_v46, 16  ;;  %v4293_v8 = vld [vmem:[%s5463_s17 + $0x10] sm:$0xf] }
  0x43   : > { %4781 = vmatprep.subr.bf16.mxu0 %v5217_v7  ;;  %v1036_v63 = vor.u32 %v1035_v24, %v1032_v18  ;;  %v1562_v18 = vshll.u32 %v4293_v8, 16  ;;  %v5764_v24 = vld [vmem:[%s5463_s17 + $0x28] sm:$0xe] }
  0x44   : > { %v993_v11 = vrot.slane %v991_v56, 5 }
  0x45   : > { %4774 = vmatmul.mubr.msk.bf16.gmra.mrb[4].mxu0 %vm408_vm3, %v4128_v3  ;;  %v1019_v3 = vshll.u32 %v4201_v54, 16 }
  0x46   : > { %4782 = vmatpush3.bf16.msra.mxu0 %v5217_v7  ;;  %4785 = vmatprep.mubr.msk.bf16.mxu0 %vm408_vm3, %v4153_v10  ;;  %v971_v7 = vrot.slane %v969_v25, 5  ;;  %v990_v10 = vrot.slane %v988_v5, 4  ;;  %v1060_v5 = vrot.slane %v1058_v40, 4 }
  0x47   : > { %4783 = vmatprep.subr.bf16.mxu0 %v5219_v9  ;;  %v1021_v49 = vrot.slane %v1019_v3, 5  ;;  %v5730_v3 = vld [vmem:[%s5463_s17 + $0x18] sm:$0xe] }
  0x48   : > { %v994_v31 = vor.u32 %v993_v11, %v990_v10  ;;  %v5706_v41 = vsel %vm5505_vm2, %v967_v38, %v971_v7  ;;  %v1041_v7 = vrot.slane %v1039_v26, 5 }
  0x49   : > { %v1022_v39 = vor.u32 %v1021_v49, %v1018_v57  ;;  %v5232_v57 = vld [vmem:[%s6580_s1 + $0xa0] sm:$0xff]   ;;  %v1559_v49 = vshrl.u32 %v4293_v8, 16 }
  0x4a   : > { %4784 = vmatpush3.bf16.msra.mxu0 %v5219_v9  ;;  %v981_v9 = vrot.slane %v980_v4, 4  ;;  %v995_v51 = vrot.slane %v994_v31, 4  ;;  %v1027_v4 = vrot.slane %v1025_v16, 5  ;;  %v1247_v31 = vrot.slane %v5667_v53, 5  ;;  %v5824_v8 = vld [vmem:[%s5463_s17 + $0x24] sm:$0x1] }
  0x4b   : > { %4793 = vmatprep.subr.bf16.mxu0 %v5220_v20 }
  0x4c   : > { %v5716_v25 = vsel %vm5505_vm2, %v981_v9, %v985_v14  ;;  %v1067_v14 = vshll.u32 %v5709_v43, 16  ;;  %v5737_v9 = vsel %vm5505_vm2, %v995_v51, %v5684_v22  ;;  %v1255_v51 = vrot.slane %v5687_v15, 5 }
  0x4d   : > { %4786 = vmatmul.mubr.msk.bf16.vlgmr.msra.gmra.mrb[0].mxu0 %vm408_vm3, %v4154_v30  ;;  %v5700_v30 = vld [vmem:[%s5463_s17 + $0x3c] sm:$0x1] }
  0x4e   : > { %4794 = vmatpush3.bf16.msra.mxu0 %v5220_v20  ;;  %4789 = vmatprep.mubr.msk.bf16.mxu0 %vm408_vm3, %v4155_v35  ;;  %v4205_v20 = vld [vmem:[%s5463_s17 + $0x38] sm:$0xf]  ;;  %v1008_v35 = vor.u32 %v1007_v52, %v1004_v23  ;;  %v1069_v23 = vrot.slane %v1067_v14, 5  ;;  %v4238_v52 = vrot.slane %v4230_v62, 9  ;;  %v4297_v14 = vld [vmem:[%s5463_s17 + $0x20] sm:$0xf] }
  0x4f   : > { %4795 = vmatprep.subr.bf16.mxu0 %v5221_v58  ;;  %v1044_v32 = vshrl.u32 %v4205_v20, 16  ;;  %v1047_v33 = vshll.u32 %v4205_v20, 16  ;;  %v1243_v20 = vrot.slane %v5663_v50, 5 }
  0x50   : > { %v1009_v54 = vrot.slane %v1008_v35, 4 }
  0x51   : > { %v1046_v45 = vrot.slane %v1044_v32, 4  ;;  %v1049_v46 = vrot.slane %v1047_v33, 5  ;;  %v5770_v32 = vld [vmem:[%s5463_s17 + $0x30] sm:$0xe]  ;;  %v5773_v33 = vld [vmem:[%s5463_s17 + $0x14] sm:$0x1] }
  0x52   : > { %4796 = vmatpush3.bf16.msra.mxu0 %v5221_v58  ;;  %v1061_v58 = vshll.u32 %v4207_v28, 16  ;;  %v5741_v10 = vsel %vm5505_vm2, %v1009_v54, %v1013_v42  ;;  %v1239_v42 = vrot.slane %v5645_v37, 5  ;;  %v5796_v54 = vld [vmem:[%s5463_s17 + $0x38] sm:$0xe] }
  0x53   : > { %4797 = vmatprep.subr.bf16.mxu0 %v5222_v47  ;;  %v1050_v34 = vor.u32 %v1049_v46, %v1046_v45  ;;  %v1251_v45 = vrot.slane %v5678_v2, 5  ;;  %v1561_v46 = vrot.slane %v1559_v49, 4  ;;  %v4243_v62 = vrot.slane %v5796_v54, 9  ;;  %v5237_v2 = vld [vmem:[%s6580_s1 + $0xc8] sm:$0xff]  }
  0x54   : > { %v1063_v56 = vrot.slane %v1061_v58, 5  ;;  %v5783_v40 = vsel %vm5596_vm6, %v4238_v52, %v1239_v42  ;;  %v5786_v58 = vld [vmem:[%s5463_s17 + $0x1c] sm:$0x1]  ;;  %v1587_v52 = vshrl.u32 %v4297_v14, 16  ;;  %v1590_v42 = vshll.u32 %v4297_v14, 16 }
  0x55   : > { %4790 = vmatmul.mubr.msk.bf16.gmra.mrb[4].mxu0 %vm408_vm3, %v4156_v55  ;;  %v1023_v55 = vrot.slane %v1022_v39, 4  ;;  %v1051_v16 = vrot.slane %v1050_v34, 4  ;;  %v5779_v39 = vsel %vm5596_vm6, %v4237_v0, %v1235_v1  ;;  %v4301_v34 = vld [vmem:[%s5463_s17 + $0x30] sm:$0xf]  ;;  %v1259_v0 = vrot.slane %v5700_v30, 5 }
  0x56   : > { %4798 = vmatpush3.bf16.msra.mxu0 %v5222_v47  ;;  %4801 = vmatprep.mubr.msk.bf16.mxu0 %vm408_vm3, %v5224_v61  ;;  %v1053_v47 = vshll.u32 %v5700_v30, 16  ;;  %v1037_v61 = vrot.slane %v1036_v63, 4  ;;  %v1064_v12 = vor.u32 %v1063_v56, %v1060_v5  ;;  %v5233_v63 = vld [vmem:[%s6580_s1 + $0xa8] sm:$0xff]   ;;  %v5234_v5 = vld [vmem:[%s6580_s1 + $0xb0] sm:$0xff]   ;;  %v5241_v30 = vld [vmem:[%s6580_s1 + $0xe0] sm:$0xff]  }
  0x57   : > { %4799 = vmatprep.subr.bf16.mxu0 %v5223_v60  ;;  %v5745_v11 = vsel %vm5505_vm2, %v1023_v55, %v1027_v4  ;;  %v5242_v54 = vld [vmem:[%s5463_s17 + $0x20] ss:$8 sps:$4 sm:$0xff]  }
  0x58   : > { %v1055_v38 = vrot.slane %v1053_v47, 5  ;;  %v5754_v22 = vsel %vm5505_vm2, %v1037_v61, %v1041_v7  ;;  %v1065_v28 = vrot.slane %v1064_v12, 4  ;;  %v1564_v47 = vrot.slane %v1562_v18, 5 }
  0x59   : > { %v4219_v35 = vcombine.low %v5745_v11, %v5754_v22  ;;  %v1568_v61 = vshll.u32 %v5773_v33, 16  ;;  %v1582_v7 = vshll.u32 %v5786_v58, 16 }
  0x5a   : > { %4800 = vmatpush3.bf16.msra.mxu0 %v5223_v60  ;;  %v4217_v60 = vcombine.low %v5706_v41, %v5716_v25  ;;  %v5804_v56 = vsel %vm5505_vm2, %v1051_v16, %v1055_v38  ;;  %v5808_v59 = vsel %vm5505_vm2, %v1065_v28, %v1069_v23  ;;  %v4253_v38 = vcombine.low %v5779_v39, %v5783_v40  ;;  %v5829_v23 = vld [vmem:[%s5463_s17 + $0x2c] sm:$0x1]  ;;  %v5840_v39 = vld [vmem:[%s5463_s17 + $0x34] sm:$0x1]  ;;  %v5235_v40 = vld [vmem:[%s6580_s1 + $0xb8] sm:$0xff]  }
  0x5b   : > { %4809 = vmatprep.subr.bf16.mxu0 %v5225_v13  ;;  %v1565_v1 = vor.u32 %v1564_v47, %v1561_v46  ;;  %v4220_v12 = vcombine.low %v5804_v56, %v5808_v59  ;;  %v5836_v28 = vrot.slane %v1582_v7, 5  ;;  %v1618_v47 = vshll.u32 %v4301_v34, 16  ;;  %v5236_v7 = vld [vmem:[%s6580_s1 + $0xc0] sm:$0xff]  }
  0x5d   : > { %4802 = vmatmul.mubr.msk.bf16.vlgmr.msra.gmra.mrb[0].mxu0 %vm408_vm3, %v5226_v17  ;;  %v4239_v17 = vrot.slane %v5730_v3, 9  ;;  %v5845_v46 = vrot.slane %v1565_v1, 4  ;;  %v1620_v3 = vrot.slane %v1618_v47, 5 }
  0x5e   : > { %4810 = vmatpush3.bf16.msra.mxu0 %v5225_v13  ;;  %4805 = vmatprep.mubr.msk.bf16.mxu0 %vm408_vm3, %v5228_v21  ;;  %v4295_v13 = vld [vmem:[%s5463_s17 + $0x18] sm:$0xf]  ;;  %v4240_v21 = vrot.slane %v5748_v36, 9 }
  0x5f   : > { %4811 = vmatprep.subr.bf16.mxu0 %v5227_v27  ;;  %v1573_v26 = vshrl.u32 %v4295_v13, 16  ;;  %v1576_v37 = vshll.u32 %v4295_v13, 16 }
  0x61   : > { %v1575_v55 = vrot.slane %v1573_v26, 4  ;;  %v1578_v4 = vrot.slane %v1576_v37, 5  ;;  %v1615_v26 = vshrl.u32 %v4301_v34, 16  ;;  %v1263_v37 = vrot.slane %v5709_v43, 5  ;;  %v5863_v34 = vld [vmem:[%s5463_s17 + $0x3c] sm:$0x1] }
  0x62   : > { %4812 = vmatpush3.bf16.msra.mxu0 %v5227_v27  ;;  %v4218_v27 = vcombine.low %v5737_v9, %v5741_v10 }
  0x63   : > { %4813 = vmatprep.subr.bf16.mxu0 %v5229_v44  ;;  %v1579_v13 = vor.u32 %v1578_v4, %v1575_v55  ;;  %v5850_v4 = vrot.slane %v1587_v52, 4  ;;  %v5865_v1 = vrot.slane %v1615_v26, 4  ;;  %v1248_v52 = vsel %vm5596_vm6, %v4240_v21, %v1247_v31 }
  0x64   : > { %v1638_v21 = vshll.u32 %v5863_v34, 16 }
  0x65   : > { %4806 = vmatmul.mubr.msk.bf16.gmra.mrb[4].mxu0 %vm408_vm3, %v5230_v48  ;;  %v4242_v48 = vrot.slane %v5770_v32, 9  ;;  %v5848_v55 = vrot.slane %v1579_v13, 4  ;;  %v1624_v13 = vshll.u32 %v5840_v39, 16  ;;  %v1621_v47 = vor.u32 %v1620_v3, %v5865_v1 }
  0x66   : > { %4814 = vmatpush3.bf16.msra.mxu0 %v5229_v44  ;;  %4817 = vmatprep.mubr.msk.bf16.mxu0 %vm408_vm3, %v4217_v60  ;;  %v4241_v44 = vrot.slane %v5764_v24, 9  ;;  %v5811_v60 = vld [vmem:[%s5463_s17 + $0x40] sm:$0xe] }
  0x67   : > { %4815 = vmatprep.subr.bf16.mxu0 %v5231_v19  ;;  %v4244_v16 = vrot.slane %v5811_v60, 9  ;;  %v5852_v60 = vrot.slane %v1590_v42, 5  ;;  %v4305_v42 = vld [vmem:[%s5463_s17 + $0x40] sm:$0xf]  ;;  %v1256_v53 = vsel %vm5596_vm6, %v4242_v48, %v1255_v51  ;;  %v5238_v48 = vld [vmem:[%s6580_s1 + $0xd0] sm:$0xff]   ;;  %v1260_v51 = vsel %vm5596_vm6, %v4243_v62, %v1259_v0  ;;  %v5243_v0 = vld [vmem:[%s6580_s1 + $0xe8] sm:$0xff]  }
  0x68   : > { %v1252_v50 = vsel %vm5596_vm6, %v4241_v44, %v1251_v45  ;;  %v1643_v24 = vshrl.u32 %v4305_v42, 16  ;;  %v1646_v44 = vshll.u32 %v4305_v42, 16  ;;  %v5244_v62 = vld [vmem:[%s5463_s17 + $0x30] ss:$8 sps:$4 sm:$0xff]  }
  0x69   : > { %v4255_v15 = vcombine.low %v1252_v50, %v1256_v53  ;;  %v1640_v50 = vrot.slane %v1638_v21, 5  ;;  %v5958_v53 = vld [vmem:[%s5463_s17 + $0x4c] sm:$0x1]  ;;  %v5248_v21 = vld [vmem:[%s6580_s1 + $0x100] sm:$0xff]  }
  0x6a   : > { %4816 = vmatpush3.bf16.msra.mxu0 %v5231_v19  ;;  %v4299_v19 = vld [vmem:[%s5463_s17 + $0x28] sm:$0xf] }
  0x6b   : > { %4825 = vmatprep.subr.bf16.mxu0 %v5232_v57  ;;  %v1601_v49 = vshrl.u32 %v4299_v19, 16  ;;  %v1604_v18 = vshll.u32 %v4299_v19, 16 }
  0x6d   : > { %4818 = vmatmul.mubr.msk.bf16.vlgmr.msra.gmra.mrb[0].mxu0 %vm408_vm3, %v4218_v27  ;;  %v5834_v27 = vrot.slane %v1568_v61, 5  ;;  %v5858_v14 = vrot.slane %v1601_v49, 4  ;;  %v5860_v19 = vrot.slane %v1604_v18, 5  ;;  %v5239_v49 = vld [vmem:[%s6580_s1 + $0xd8] sm:$0xff]   ;;  %v1593_v18 = vor.u32 %v5852_v60, %v5850_v4  ;;  %v5246_v60 = vld [vmem:[%s5463_s17 + $0x40] ss:$8 sps:$4 sm:$0xff]  }
  0x6e   : > { %4826 = vmatpush3.bf16.msra.mxu0 %v5232_v57  ;;  %4821 = vmatprep.mubr.msk.bf16.mxu0 %vm408_vm3, %v4219_v35  ;;  %v4303_v57 = vld [vmem:[%s5463_s17 + $0x38] sm:$0xf]  ;;  %v1596_v35 = vshll.u32 %v5824_v8, 16 }
  0x6f   : > { %4827 = vmatprep.subr.bf16.mxu0 %v5233_v63  ;;  %v1629_v43 = vshrl.u32 %v4303_v57, 16  ;;  %v1632_v61 = vshll.u32 %v4303_v57, 16  ;;  %v1607_v26 = vor.u32 %v5860_v19, %v5858_v14  ;;  %v1648_v19 = vrot.slane %v1646_v44, 5  ;;  %v4330_v44 = vld [vmem:[%s5463_s17 + $0x18] sm:$0xe] }
  0x70   : > { %v1598_v4 = vrot.slane %v1596_v35, 5  ;;  %v1622_v35 = vrot.slane %v1621_v47, 4 }
  0x71   : > { %v1631_v36 = vrot.slane %v1629_v43, 4 }
  0x72   : > { %4828 = vmatpush3.bf16.msra.mxu0 %v5233_v63  ;;  %v1610_v63 = vshll.u32 %v5829_v23, 16 }
  0x73   : > { %4829 = vmatprep.subr.bf16.mxu0 %v5234_v5 }
  0x74   : > { %v1612_v14 = vrot.slane %v1610_v63, 5 }
  0x75   : > { %4822 = vmatmul.mubr.msk.bf16.gmra.mrb[4].mxu0 %vm408_vm3, %v4220_v12  ;;  %v1244_v12 = vsel %vm5596_vm6, %v4239_v17, %v1243_v20  ;;  %v4307_v17 = vld [vmem:[%s5463_s17 + $0x48] sm:$0xf]  ;;  %v1634_v20 = vrot.slane %v1632_v61, 5  ;;  %v5247_v61 = vld [vmem:[%s6580_s1 + $0xf8] sm:$0xff]  }
  0x76   : > { %4830 = vmatpush3.bf16.msra.mxu0 %v5234_v5  ;;  %4833 = vmatprep.mubr.msk.bf16.mxu0 %vm408_vm3, %v4253_v38  ;;  %v4254_v31 = vcombine.low %v1244_v12, %v1248_v52  ;;  %v1657_v32 = vshrl.u32 %v4307_v17, 16  ;;  %v1660_v45 = vshll.u32 %v4307_v17, 16  ;;  %v1264_v5 = vsel %vm5596_vm6, %v4244_v16, %v1263_v37  ;;  %v5240_v38 = vld [vmem:[%s5463_s17 + $0x10] ss:$8 sps:$4 sm:$0xff]  }
  0x77   : > { %4831 = vmatprep.subr.bf16.mxu0 %v5235_v40  ;;  %v4256_v57 = vcombine.low %v1260_v51, %v1264_v5  ;;  %v5245_v16 = vld [vmem:[%s6580_s1 + $0xf0] sm:$0xff]   ;;  %v1571_v37 = vsel %vm5505_vm2, %v5845_v46, %v5834_v27  ;;  %v1635_v43 = vor.u32 %v1634_v20, %v1631_v36  ;;  %v1594_v27 = vrot.slane %v1593_v18, 4 }
  0x78   : > { %v1608_v46 = vrot.slane %v1607_v26, 4  ;;  %v1659_v1 = vrot.slane %v1657_v32, 4  ;;  %v1662_v12 = vrot.slane %v1660_v45, 5  ;;  %v1626_v52 = vrot.slane %v1624_v13, 5  ;;  %v4332_v26 = vld [vmem:[%s5463_s17 + $0x28] sm:$0xe] }
  0x79   : > { %v1636_v42 = vrot.slane %v1635_v43, 4  ;;  %v1599_v63 = vsel %vm5505_vm2, %v1594_v27, %v1598_v4  ;;  %v1666_v20 = vshll.u32 %v5958_v53, 16  ;;  %v5251_v27 = vld [vmem:[%s6580_s1 + $0x118] sm:$0xff]  }
  0x7a   : > { %4832 = vmatpush3.bf16.msra.mxu0 %v5235_v40  ;;  %v1585_v40 = vsel %vm5505_vm2, %v5848_v55, %v5836_v28  ;;  %v5953_v28 = vld [vmem:[%s5463_s17 + $0x44] sm:$0x1]  ;;  %v1645_v55 = vrot.slane %v1643_v24, 4  ;;  %v1613_v36 = vsel %vm5505_vm2, %v1608_v46, %v1612_v14  ;;  %v1663_v17 = vor.u32 %v1662_v12, %v1659_v1  ;;  %v4329_v24 = vld [vmem:[%s5463_s17 + $0x10] sm:$0xe] }
  0x7b   : > { %4841 = vmatprep.subr.bf16.mxu0 %v5236_v7  ;;  %v1652_v3 = vshll.u32 %v5953_v28, 16  ;;  %v1668_v5 = vrot.slane %v1666_v20, 5  ;;  %v1842_v14 = vrot.slane %v5840_v39, 5  ;;  %v4335_v1 = vld [vmem:[%s5463_s17 + $0x40] sm:$0xe]  ;;  %v5364_v20 = vmov 0  }
  0x7c   : > { %v1649_v13 = vor.u32 %v1648_v19, %v1645_v55  ;;  %v1664_v51 = vrot.slane %v1663_v17, 4  ;;  %v1846_v19 = vrot.slane %v5863_v34, 5  ;;  %v4336_v34 = vld [vmem:[%s5463_s17 + $0x48] sm:$0xe]  ;;  %2025 = vst.msk [vmem:[#allocation2 + $0x18] sm:$0xf] %vm2017_vm7, %v5364_v20 }
  0x7d   : > { %4834 = vmatmul.mubr.msk.bf16.vlgmr.msra.gmra.mrb[0].mxu0 %vm408_vm3, %v4254_v31  ;;  %v1627_v31 = vsel %vm5505_vm2, %v1622_v35, %v1626_v52  ;;  %v1654_v32 = vrot.slane %v1652_v3, 5  ;;  %v4343_v52 = vrot.slane %v4335_v1, 9  ;;  %v1854_v3 = vrot.slane %v5958_v53, 5  ;;  %2026 = vst.msk [vmem:[#allocation2 + $0x1c] sm:$0x1] %vm2019_vm8, %v5364_v20  ;;  %v5253_v53 = vld [vmem:[%s6582_s3 + $0x28] sm:$0xff]  }
  0x7e   : > { %4842 = vmatpush3.bf16.msra.mxu0 %v5236_v7  ;;  %4837 = vmatprep.mubr.msk.bf16.mxu0 %vm408_vm3, %v4255_v15  ;;  %v4317_v7 = vcombine.low %v1571_v37, %v1585_v40  ;;  %v4318_v15 = vcombine.low %v1599_v63, %v1613_v36  ;;  %v4333_v37 = vld [vmem:[%s5463_s17 + $0x30] sm:$0xe]  ;;  %v4334_v40 = vld [vmem:[%s5463_s17 + $0x38] sm:$0xe]  ;;  %v4344_v63 = vrot.slane %v4336_v34, 9 }
  0x7f   : > { %4843 = vmatprep.subr.bf16.mxu0 %v5237_v2  ;;  %v4341_v46 = vrot.slane %v4333_v37, 9  ;;  %v4342_v55 = vrot.slane %v4334_v40, 9  ;;  %2018 = vst.msk [vmem:[#allocation2] sm:$0xf] %vm2017_vm7, %v5364_v20  ;;  %2021 = vst.msk [vmem:[#allocation2 + $0x8] sm:$0xf] %vm2017_vm7, %v5364_v20 }
  0x80   : > { %2020 = vst.msk [vmem:[#allocation2 + $0x4] sm:$0x1] %vm2019_vm8, %v5364_v20  ;;  %2022 = vst.msk [vmem:[#allocation2 + $0xc] sm:$0x1] %vm2019_vm8, %v5364_v20 }
  0x81   : > { %v1843_v12 = vsel %vm5596_vm6, %v4341_v46, %v1842_v14  ;;  %v1847_v39 = vsel %vm5596_vm6, %v4342_v55, %v1846_v19  ;;  %2023 = vst.msk [vmem:[#allocation2 + $0x10] sm:$0xf] %vm2017_vm7, %v5364_v20  ;;  %2027 = vst.msk [vmem:[#allocation2 + $0x20] sm:$0xf] %vm2017_vm7, %v5364_v20 }
  0x82   : > { %4844 = vmatpush3.bf16.msra.mxu0 %v5237_v2  ;;  %v1641_v2 = vsel %vm5505_vm2, %v1636_v42, %v1640_v50  ;;  %v4355_v42 = vcombine.low %v1843_v12, %v1847_v39  ;;  %v1850_v50 = vrot.slane %v5953_v28, 5  ;;  %2024 = vst.msk [vmem:[#allocation2 + $0x14] sm:$0x1] %vm2019_vm8, %v5364_v20  ;;  %2028 = vst.msk [vmem:[#allocation2 + $0x24] sm:$0x1] %vm2019_vm8, %v5364_v20  ;;  %v5252_v28 = vld [vmem:[%s6582_s3 + $0x20] sm:$0xff]  }
  0x83   : > { %4845 = vmatprep.subr.bf16.mxu0 %v5238_v48  ;;  %v4319_v45 = vcombine.low %v1627_v31, %v1641_v2  ;;  %2029 = vst.msk [vmem:[#allocation2 + $0x28] sm:$0xf] %vm2017_vm7, %v5364_v20  ;;  %2031 = vst.msk [vmem:[#allocation2 + $0x30] sm:$0xf] %vm2017_vm7, %v5364_v20  ;;  %4889 = vmatprep.subr.bf16.mxu1 %v5252_v28  ;;  %v5255_v31 = vld [vmem:[%s6582_s3 + $0x38] sm:$0xff]   ;;  %v6062_v2 = vld [vmem:[%s6582_s3] sm:$0xff]  }
  0x84   : > { %v1851_v36 = vsel %vm5596_vm6, %v4343_v52, %v1850_v50  ;;  %2030 = vst.msk [vmem:[#allocation2 + $0x2c] sm:$0x1] %vm2019_vm8, %v5364_v20  ;;  %2032 = vst.msk [vmem:[#allocation2 + $0x34] sm:$0x1] %vm2019_vm8, %v5364_v20  ;;  %4890 = vmatpush3.bf16.msra.mxu1 %v5252_v28 }
  0x85   : > { %4838 = vmatmul.mubr.msk.bf16.gmra.mrb[4].mxu0 %vm408_vm3, %v4256_v57  ;;  %v4337_v57 = vrot.slane %v4329_v24, 9  ;;  %2033 = vst.msk [vmem:[#allocation2 + $0x38] sm:$0xf] %vm2017_vm7, %v5364_v20  ;;  %2035 = vst.msk [vmem:[#allocation2 + $0x40] sm:$0xf] %vm2017_vm7, %v5364_v20  ;;  %4891 = vmatprep.subr.bf16.mxu1 %v5253_v53 }
  0x86   : > { %4846 = vmatpush3.bf16.msra.mxu0 %v5238_v48  ;;  %4849 = vmatprep.mubr.msk.bf16.mxu0 %vm408_vm3, %v5240_v38  ;;  %v1650_v48 = vrot.slane %v1649_v13, 4  ;;  %v5249_v38 = vld [vmem:[%s6580_s1 + $0x108] sm:$0xff]   ;;  %v1855_v13 = vsel %vm5596_vm6, %v4344_v63, %v1854_v3  ;;  %2034 = vst.msk [vmem:[#allocation2 + $0x3c] sm:$0x1] %vm2019_vm8, %v5364_v20  ;;  %2036 = vst.msk [vmem:[#allocation2 + $0x44] sm:$0x1] %vm2019_vm8, %v5364_v20 }
  0x87   : > { %4847 = vmatprep.subr.bf16.mxu0 %v5239_v49  ;;  %v4356_v17 = vcombine.low %v1851_v36, %v1855_v13  ;;  %2037 = vst.msk [vmem:[#allocation2 + $0x48] sm:$0xf] %vm2017_vm7, %v5364_v20  ;;  %v6068_v24 = vld [vmem:[%s6581_s2] ss:$0 sm:$0xff]  ;;  %v2161_v52 = vld [vmem:[#allocation2 + $0xc] sm:$0x1] }
  0x88   : > { %2038 = vst.msk [vmem:[#allocation2 + $0x4c] sm:$0x1] %vm2019_vm8, %v5364_v20  ;;  %4892 = vmatpush3.bf16.msra.mxu1 %v5253_v53  ;;  %v2176_v20 = vld [vmem:[#allocation2 + $0x20] sm:$0xf] }
  0x8a   : > { %4848 = vmatpush3.bf16.msra.mxu0 %v5239_v49  ;;  %v1826_v49 = vrot.slane %v5773_v33, 5  ;;  %v5250_v33 = vld [vmem:[%s6580_s1 + $0x110] sm:$0xff]  }
  0x8b   : > { %4857 = vmatprep.subr.bf16.mxu0 %v5241_v30 }
  0x8d   : > { %4850 = vmatmul.mubr.msk.bf16.vlgmr.msra.gmra.mrb[0].mxu0 %vm408_vm3, %v5242_v54  ;;  %v1830_v54 = vrot.slane %v5786_v58, 5  ;;  %v1827_v58 = vsel %vm5596_vm6, %v4337_v57, %v1826_v49 }
  0x8e   : > { %4858 = vmatpush3.bf16.msra.mxu0 %v5241_v30  ;;  %4853 = vmatprep.mubr.msk.bf16.mxu0 %vm408_vm3, %v5244_v62  ;;  %v4338_v30 = vrot.slane %v4330_v44, 9  ;;  %v1655_v62 = vsel %vm5505_vm2, %v1650_v48, %v1654_v32 }
  0x8f   : > { %4859 = vmatprep.subr.bf16.mxu0 %v5243_v0 }
  0x90   : > { %v1831_v18 = vsel %vm5596_vm6, %v4338_v30, %v1830_v54 }
  0x91   : > { %v4353_v4 = vcombine.low %v1827_v58, %v1831_v18 }
  0x92   : > { %4860 = vmatpush3.bf16.msra.mxu0 %v5243_v0  ;;  %v1669_v0 = vsel %vm5505_vm2, %v1664_v51, %v1668_v5 }
  0x93   : > { %4861 = vmatprep.subr.bf16.mxu0 %v5245_v16  ;;  %v4320_v47 = vcombine.low %v1655_v62, %v1669_v0 }
  0x95   : > { %4854 = vmatmul.mubr.msk.bf16.gmra.mrb[4].mxu0 %vm408_vm3, %v5246_v60  ;;  %v1834_v60 = vrot.slane %v5824_v8, 5 }
  0x96   : > { %4862 = vmatpush3.bf16.msra.mxu0 %v5245_v16  ;;  %4865 = vmatprep.mubr.msk.bf16.mxu0 %vm408_vm3, %v4317_v7  ;;  %v4331_v16 = vld [vmem:[%s5463_s17 + $0x20] sm:$0xe]  ;;  %v1838_v7 = vrot.slane %v5829_v23, 5  ;;  %s4037_s17 = sshll.u32 %s6507_s26, 4  ;;  %s6528_s17 = int_to_ptr.vmem [resolvable:$true] %s4037_s17 }
  0x97   : > { %4863 = vmatprep.subr.bf16.mxu0 %v5247_v61  ;;  %v4339_v43 = vrot.slane %v4331_v16, 9  ;;  %s5300_s9 = scalar_lea.vmem %s6528_s17, 512  ;;  %p5307_p0 = scmp.lt.s32.totalorder %s6528_s17, %s5305_s11 }
  0x98   : > { %p5301_p11 = scmp.ne.s32.totalorder %s6528_s17, %s5300_s9  ;;  %p5308_p1 = scmp.lt.s32.totalorder %s5306_s12, %s5300_s9 }
  0x99   : > { %v1835_v8 = vsel %vm5596_vm6, %v4339_v43, %v1834_v60  ;;  %v2170_v60 = vld [vmem:[#allocation2 + $0x18] sm:$0xf] }
  0x9a   : > { %4864 = vmatpush3.bf16.msra.mxu0 %v5247_v61  ;;  %v4340_v61 = vrot.slane %v4332_v26, 9  ;;  %p5302_p12 = pnand %p5301_p11, %p5436_p5  ;;  %p5309_p2 = por %p5308_p1, %p5307_p0 }
  0x9b   : > { %4873 = vmatprep.subr.bf16.mxu0 %v5248_v21 }
  0x9c   : > { %v1839_v23 = vsel %vm5596_vm6, %v4340_v61, %v1838_v7  ;;  %v2173_v61 = vld [vmem:[#allocation2 + $0x1c] sm:$0x1]  ;;  %p5303_p13 = pneg %p5302_p12 }
  0x9d   : > { %4866 = vmatmul.mubr.msk.bf16.vlgmr.msra.gmra.mrb[0].mxu0 %vm408_vm3, %v4318_v15  ;;  %v4354_v35 = vcombine.low %v1835_v8, %v1839_v23  ;;  %v6070_v15 = vld [vmem:[#allocation2] sm:$0xf]  ;;  %v2155_v8 = vld [vmem:[#allocation2 + $0x8] sm:$0xf] }
  0x9e   : > { %4874 = vmatpush3.bf16.msra.mxu0 %v5248_v21  ;;  %4869 = vmatprep.mubr.msk.bf16.mxu0 %vm408_vm3, %v4319_v45  ;;  %v5254_v21 = vld [vmem:[%s6582_s3 + $0x30] sm:$0xff]   ;;  %v2231_v49 = vshrl.u32 %v6070_v15, 16  ;;  %v2234_v30 = vshll.u32 %v6070_v15, 16  ;;  %p5310_p3 = pnand %p5309_p2, %p5303_p13 }
  0x9f   : > { %4875 = vmatprep.subr.bf16.mxu0 %v5249_v38  ;;  %4893 = vmatprep.subr.bf16.mxu1 %v5254_v21 }
  0xa0   : > { %4894 = vmatpush3.bf16.msra.mxu1 %v5254_v21  ;;  %v6083_v43 = vrot.slane %v2234_v30, 5 }
  0xa1   : > { %4895 = vmatprep.subr.bf16.mxu1 %v5255_v31 }
  0xa2   : > { %4876 = vmatpush3.bf16.msra.mxu0 %v5249_v38 }
  0xa3   : > { %4877 = vmatprep.subr.bf16.mxu0 %v5250_v33 }
  0xa4   : > { %4896 = vmatpush3.bf16.msra.mxu1 %v5255_v31 }
  0xa5   : > { %4870 = vmatmul.mubr.msk.bf16.gmra.mrb[4].mxu0 %vm408_vm3, %v4320_v47  ;;  %4905 = vmatprep.subr.bf16.mxu1 %v6062_v2  ;;  %v6081_v47 = vrot.slane %v2231_v49, 4  ;;  %v2167_v49 = vld [vmem:[#allocation2 + $0x14] sm:$0x1] }
  0xa6   : > { %4878 = vmatpush3.bf16.msra.mxu0 %v5250_v33  ;;  %4881 = vmatprep.mubr.msk.bf16.mxu0 %vm408_vm3, %v4353_v4  ;;  %v6078_v33 = vld [vmem:[#allocation2 + $0x4] sm:$0x1] }
  0xa7   : > { %4879 = vmatprep.subr.bf16.mxu0 %v5251_v27  ;;  %v2240_v26 = vshll.u32 %v6078_v33, 16 }
  0xaa   : > { %4880 = vmatpush3.bf16.msra.mxu0 %v5251_v27 }
  0xad   : > { %4882 = vmatmul.mubr.msk.bf16.vlgmr.msra.gmra.mrb[0].mxu0 %vm408_vm3, %v4354_v35 }
  0xae   : > { %4885 = vmatprep.mubr.msk.bf16.mxu0 %vm408_vm3, %v4355_v42 }
  0xb5   : > { %4886 = vmatmul.mubr.msk.bf16.gmra.mrb[4].mxu0 %vm408_vm3, %v4356_v17 }
 0x180   : > { %v4883_v44 = vpop.f32.mrb[0].mxu0 }
 0x181   : > { %v1995_v32 = vadd.f32 %v4883_v44, %v6068_v24  ;;  %v1947_v45 = vpop.f32.mrb[1].mxu0  ;;  %v2179_v44 = vld [vmem:[#allocation2 + $0x24] sm:$0x1] }
 0x182   : > { %v1993_v48 = vadd.f32 %v6068_v24, %v1947_v45  ;;  %v4884_v51 = vpop.f32.mrb[2].mxu0 }
 0x183   : > { %v2003_v5 = vmax.f32 %v1995_v32, 0.0  ;;  %v1996_v38 = vadd.f32 %v4884_v51, %v6068_v24  ;;  %v1950_v57 = vpop.f32.mrb[3].mxu0 }
 0x184   : > { %v2001_v54 = vmax.f32 %v1993_v48, 0.0  ;;  %v1994_v62 = vadd.f32 %v6068_v24, %v1950_v57  ;;  %v2164_v57 = vld [vmem:[#allocation2 + $0x10] sm:$0xf] }
 0x185   : > { %v4586_v0 = vpack.c.bf16 %v2003_v5, %v2003_v5  ;;  %v2004_v16 = vmax.f32 %v1996_v38, 0.0 }
 0x186   : > { %v4584_v58 = vpack.c.bf16 %v2001_v54, %v2001_v54  ;;  %v2002_v18 = vmax.f32 %v1994_v62, 0.0 }
 0x187   : > { %v2088_v37 = vshrl.u32 %v4586_v0, 16  ;;  %v4587_v40 = vpack.c.bf16 %v2004_v16, %v2004_v16  ;;  %v2091_v4 = vshll.u32 %v4586_v0, 16 }
 0x188   : > { %v2072_v7 = vshrl.u32 %v4584_v58, 16  ;;  %v2075_v27 = vshll.u32 %v4584_v58, 16  ;;  %v4585_v46 = vpack.c.bf16 %v2002_v18, %v2002_v18  ;;  %v4887_v14 = vpop.f32.mrb[4].mxu0 }
 0x189   : > { %v2090_v55 = vrot.slane %v2088_v37, 7  ;;  %v2096_v23 = vshrl.u32 %v4587_v40, 16  ;;  %v2099_v1 = vshll.u32 %v4587_v40, 16  ;;  %v1999_v12 = vadd.f32 %v4887_v14, %v6068_v24  ;;  %v1963_v39 = vpop.f32.mrb[5].mxu0 }
 0x18a   : > { %v2074_v35 = vrot.slane %v2072_v7, 7  ;;  %v2080_v42 = vshrl.u32 %v4585_v46, 16  ;;  %v2083_v50 = vshll.u32 %v4585_v46, 16  ;;  %v1997_v63 = vadd.f32 %v6068_v24, %v1963_v39  ;;  %v4888_v3 = vpop.f32.mrb[6].mxu0  ;;  %v2194_v46 = vld [vmem:[#allocation2 + $0x38] sm:$0xf] }
 0x18b   : > { %v2093_v36 = vor.u32 %v2091_v4, %v2090_v55  ;;  %v2094_v13 = vrot.slane %v2090_v55, 4  ;;  %v2098_v17 = vrot.slane %v2096_v23, 7  ;;  %v2007_v28 = vmax.f32 %v1999_v12, 0.0  ;;  %v1966_v53 = vpop.f32.mrb[7].mxu0 }
 0x18c   : > { %v2077_v21 = vor.u32 %v2075_v27, %v2074_v35  ;;  %v2078_v31 = vrot.slane %v2074_v35, 4  ;;  %v2082_v32 = vrot.slane %v2080_v42, 7  ;;  %v2005_v45 = vmax.f32 %v1997_v63, 0.0  ;;  %v2182_v35 = vld [vmem:[#allocation2 + $0x28] sm:$0xf] }
 0x18d   : > { %v2171_v48 = vsel %vm6087_vm11, %v2093_v36, %v2170_v60  ;;  %v2174_v51 = vsel %vm6094_vm12, %v2094_v13, %v2173_v61  ;;  %v2101_v5 = vor.u32 %v2099_v1, %v2098_v17  ;;  %v2102_v38 = vrot.slane %v2098_v17, 4  ;;  %v2197_v1 = vld [vmem:[#allocation2 + $0x3c] sm:$0x1] }
 0x18e   : > { %2172 = vst [vmem:[#allocation2 + $0x18] sm:$0xf] %v2171_v48  ;;  %2175 = vst [vmem:[#allocation2 + $0x1c] sm:$0x1] %v2174_v51  ;;  %v2156_v30 = vsel %vm6087_vm11, %v2077_v21, %v2155_v8  ;;  %v2162_v54 = vsel %vm6094_vm12, %v2078_v31, %v2161_v52  ;;  %v2085_v62 = vor.u32 %v2083_v50, %v2082_v32  ;;  %v2086_v0 = vrot.slane %v2082_v32, 4 }
 0x18f   : > { %2157 = vst [vmem:[#allocation2 + $0x8] sm:$0xf] %v2156_v30  ;;  %2163 = vst [vmem:[#allocation2 + $0xc] sm:$0x1] %v2162_v54  ;;  %v2177_v16 = vsel %vm6087_vm11, %v2101_v5, %v2176_v20  ;;  %v2180_v58 = vsel %vm6094_vm12, %v2102_v38, %v2179_v44  ;;  %v4590_v18 = vpack.c.bf16 %v2007_v28, %v2007_v28  ;;  %v2185_v52 = vld [vmem:[#allocation2 + $0x2c] sm:$0x1] }
 0x190   : > { %v4588_v37 = vpack.c.bf16 %v2005_v45, %v2005_v45  ;;  %2178 = vst [vmem:[#allocation2 + $0x20] sm:$0xf] %v2177_v16  ;;  %2181 = vst [vmem:[#allocation2 + $0x24] sm:$0x1] %v2180_v58  ;;  %v2165_v40 = vsel %vm6087_vm11, %v2085_v62, %v2164_v57  ;;  %v2168_v4 = vsel %vm6094_vm12, %v2086_v0, %v2167_v49  ;;  %v2200_v32 = vld [vmem:[#allocation2 + $0x40] sm:$0xf] }
 0x191   : > { %v2000_v60 = vadd.f32 %v4888_v3, %v6068_v24  ;;  %v1998_v61 = vadd.f32 %v6068_v24, %v1966_v53  ;;  %2166 = vst [vmem:[#allocation2 + $0x10] sm:$0xf] %v2165_v40  ;;  %2169 = vst [vmem:[#allocation2 + $0x14] sm:$0x1] %v2168_v4  ;;  %v2120_v7 = vshrl.u32 %v4590_v18, 16  ;;  %v2123_v23 = vshll.u32 %v4590_v18, 16 }
 0x192   : > { %v2104_v27 = vshrl.u32 %v4588_v37, 16  ;;  %v2107_v39 = vshll.u32 %v4588_v37, 16  ;;  %v2237_v63 = vor.u32 %v6083_v43, %v6081_v47  ;;  %v6121_v24 = vrot.slane %v2240_v26, 5  ;;  %v2203_v45 = vld [vmem:[#allocation2 + $0x44] sm:$0x1] }
 0x193   : > { %v2008_v14 = vmax.f32 %v2000_v60, 0.0  ;;  %v2006_v55 = vmax.f32 %v1998_v61, 0.0  ;;  %v2122_v8 = vrot.slane %v2120_v7, 7  ;;  %v2188_v48 = vld [vmem:[#allocation2 + $0x30] sm:$0xf] }
 0x194   : > { %v2106_v12 = vrot.slane %v2104_v27, 7  ;;  %v2191_v54 = vld [vmem:[#allocation2 + $0x34] sm:$0x1]  ;;  %v2238_v62 = vrot.slane %v2237_v63, 4 }
 0x195   : > { %v4591_v42 = vpack.c.bf16 %v2008_v14, %v2008_v14  ;;  %v4589_v50 = vpack.c.bf16 %v2006_v55, %v2006_v55  ;;  %v2125_v3 = vor.u32 %v2123_v23, %v2122_v8  ;;  %v2126_v36 = vrot.slane %v2122_v8, 4  ;;  %v6142_v60 = vld [vmem:[#allocation2 + $0x18] sm:$0xf] }
 0x196   : > { %v2109_v13 = vor.u32 %v2107_v39, %v2106_v12  ;;  %v2110_v17 = vrot.slane %v2106_v12, 4  ;;  %v6123_v31 = vld [vmem:[#allocation2 + $0x8] sm:$0xf]  ;;  %v6133_v51 = vld [vmem:[#allocation2 + $0xc] sm:$0x1]  ;;  %v2243_v19 = vsel %vm5505_vm2, %v2238_v62, %v6121_v24 }
 0x197   : > { %v2128_v20 = vshrl.u32 %v4591_v42, 16  ;;  %v2131_v28 = vshll.u32 %v4591_v42, 16  ;;  %v2112_v53 = vshrl.u32 %v4589_v50, 16  ;;  %v2115_v21 = vshll.u32 %v4589_v50, 16  ;;  %v6158_v42 = vld [vmem:[#allocation2 + $0x20] sm:$0xf] }
 0x198   : > { %v2195_v44 = vsel %vm6087_vm11, %v2125_v3, %v2194_v46  ;;  %v2198_v47 = vsel %vm6094_vm12, %v2126_v36, %v2197_v1  ;;  %v2183_v26 = vsel %vm6087_vm11, %v2109_v13, %v2182_v35  ;;  %v2186_v43 = vsel %vm6094_vm12, %v2110_v17, %v2185_v52  ;;  %v6137_v30 = vld [vmem:[#allocation2 + $0x10] sm:$0xf]  ;;  %v6144_v61 = vld [vmem:[#allocation2 + $0x14] sm:$0x1]  ;;  %v6154_v1 = vld [vmem:[#allocation2 + $0x1c] sm:$0x1] }
 0x199   : > { %2196 = vst [vmem:[#allocation2 + $0x38] sm:$0xf] %v2195_v44  ;;  %2199 = vst [vmem:[#allocation2 + $0x3c] sm:$0x1] %v2198_v47  ;;  %v2130_v5 = vrot.slane %v2128_v20, 7  ;;  %v2114_v38 = vrot.slane %v2112_v53, 7 }
 0x19a   : > { %2184 = vst [vmem:[#allocation2 + $0x28] sm:$0xf] %v2183_v26  ;;  %2187 = vst [vmem:[#allocation2 + $0x2c] sm:$0x1] %v2186_v43  ;;  %v2245_v57 = vshrl.u32 %v6123_v31, 16  ;;  %v2248_v49 = vshll.u32 %v6123_v31, 16 }
 0x19b   : > { %v2254_v0 = vshll.u32 %v6133_v51, 16  ;;  %v2259_v16 = vshrl.u32 %v6137_v30, 16  ;;  %v2262_v58 = vshll.u32 %v6137_v30, 16  ;;  %v2133_v18 = vor.u32 %v2131_v28, %v2130_v5  ;;  %v6171_v47 = vld [vmem:[#allocation2 + $0x24] sm:$0x1] }
 0x19c   : > { %v2134_v37 = vrot.slane %v2130_v5, 4  ;;  %v2117_v40 = vor.u32 %v2115_v21, %v2114_v38  ;;  %v2118_v4 = vrot.slane %v2114_v38, 4  ;;  %v2247_v7 = vrot.slane %v2245_v57, 4 }
 0x19d   : > { %v2250_v27 = vrot.slane %v2248_v49, 5  ;;  %v2261_v46 = vrot.slane %v2259_v16, 4  ;;  %v2201_v14 = vsel %vm6087_vm11, %v2133_v18, %v2200_v32  ;;  %v2264_v39 = vrot.slane %v2262_v58, 5 }
 0x19e   : > { %v2204_v55 = vsel %vm6094_vm12, %v2134_v37, %v2203_v45  ;;  %v2189_v8 = vsel %vm6087_vm11, %v2117_v40, %v2188_v48  ;;  %v2192_v23 = vsel %vm6094_vm12, %v2118_v4, %v2191_v54  ;;  %2202 = vst [vmem:[#allocation2 + $0x40] sm:$0xf] %v2201_v14  ;;  %v2268_v35 = vshll.u32 %v6144_v61, 16  ;;  %v5257_v14 = vld [vmem:[%s6582_s3 + $0x8] sm:$0xff]  }
 0x19f   : > { %2205 = vst [vmem:[#allocation2 + $0x44] sm:$0x1] %v2204_v55  ;;  %2190 = vst [vmem:[#allocation2 + $0x30] sm:$0xf] %v2189_v8  ;;  %v2251_v12 = vor.u32 %v2250_v27, %v2247_v7  ;;  %v2273_v52 = vshrl.u32 %v6142_v60, 16  ;;  %v2256_v34 = vrot.slane %v2254_v0, 5  ;;  %v2265_v3 = vor.u32 %v2264_v39, %v2261_v46 }
 0x1a0   : > { %2193 = vst [vmem:[#allocation2 + $0x34] sm:$0x1] %v2192_v23  ;;  %v2276_v50 = vshll.u32 %v6142_v60, 16  ;;  %v2282_v13 = vshll.u32 %v6154_v1, 16  ;;  %v2287_v28 = vshrl.u32 %v6158_v42, 16  ;;  %v2290_v53 = vshll.u32 %v6158_v42, 16 }
 0x1a1   : > { %v2252_v63 = vrot.slane %v2251_v12, 4  ;;  %v2275_v36 = vrot.slane %v2273_v52, 4  ;;  %v6165_v17 = vld [vmem:[#allocation2 + $0x28] sm:$0xf]  ;;  %v2266_v44 = vrot.slane %v2265_v3, 4  ;;  %v2270_v24 = vrot.slane %v2268_v35, 5 }
 0x1a2   : > { %v2278_v20 = vrot.slane %v2276_v50, 5  ;;  %v2301_v26 = vshrl.u32 %v6165_v17, 16  ;;  %v6174_v45 = vld [vmem:[#allocation2 + $0x2c] sm:$0x1]  ;;  %v2289_v48 = vrot.slane %v2287_v28, 4  ;;  %v2292_v5 = vrot.slane %v2290_v53, 5 }
 0x1a3   : > { %v2257_v21 = vsel %vm5505_vm2, %v2252_v63, %v2256_v34  ;;  %v2284_v38 = vrot.slane %v2282_v13, 5  ;;  %v2304_v49 = vshll.u32 %v6165_v17, 16  ;;  %v6177_v54 = vld [vmem:[#allocation2 + $0x38] sm:$0xf]  ;;  %v2271_v62 = vsel %vm5505_vm2, %v2266_v44, %v2270_v24  ;;  %v6196_v39 = vld [vmem:[#allocation2 + $0x3c] sm:$0x1] }
 0x1a4   : > { %v4382_v43 = vcombine.low %v2243_v19, %v2257_v21  ;;  %v2279_v32 = vor.u32 %v2278_v20, %v2275_v36  ;;  %v2303_v57 = vrot.slane %v2301_v26, 4  ;;  %v2293_v16 = vor.u32 %v2292_v5, %v2289_v48  ;;  %v5258_v44 = vld [vmem:[%s6582_s3 + $0x10] sm:$0xff]  }
 0x1a5   : > { %v2296_v58 = vshll.u32 %v6171_v47, 16  ;;  %v2306_v37 = vrot.slane %v2304_v49, 5  ;;  %v2310_v40 = vshll.u32 %v6174_v45, 16  ;;  %v2329_v8 = vshrl.u32 %v6177_v54, 16 }
 0x1a6   : > { %4897 = vmatprep.mubr.msk.bf16.mxu1 %vm408_vm3, %v4382_v43  ;;  %v2280_v0 = vrot.slane %v2279_v32, 4  ;;  %v6183_v18 = vld [vmem:[#allocation2 + $0x30] sm:$0xf]  ;;  %v2294_v55 = vrot.slane %v2293_v16, 4  ;;  %v2332_v50 = vshll.u32 %v6177_v54, 16  ;;  %v2338_v28 = vshll.u32 %v6196_v39, 16 }
 0x1a7   : > { %v6186_v4 = vld [vmem:[#allocation2 + $0x34] sm:$0x1]  ;;  %v2315_v7 = vshrl.u32 %v6183_v18, 16  ;;  %v2318_v27 = vshll.u32 %v6183_v18, 16  ;;  %v2307_v12 = vor.u32 %v2306_v37, %v2303_v57  ;;  %v2331_v34 = vrot.slane %v2329_v8, 4 }
 0x1a8   : > { %v2285_v46 = vsel %vm5505_vm2, %v2280_v0, %v2284_v38  ;;  %v2324_v19 = vshll.u32 %v6186_v4, 16  ;;  %v2298_v63 = vrot.slane %v2296_v58, 5  ;;  %v2312_v36 = vrot.slane %v2310_v40, 5  ;;  %v5260_v38 = vld [vmem:[%s6582_s3 + $0x18] sm:$0xff]   ;;  %v5261_v0 = vld [vmem:[%s6582_s3 + $0x40] sm:$0xff]  }
 0x1a9   : > { %v4383_v23 = vcombine.low %v2271_v62, %v2285_v46  ;;  %v2317_v35 = vrot.slane %v2315_v7, 4  ;;  %v2320_v52 = vrot.slane %v2318_v27, 5  ;;  %v2308_v3 = vrot.slane %v2307_v12, 4  ;;  %v2585_v16 = vld [vmem:[#allocation2] sm:$0xe] }
 0x1aa   : > { %v2334_v20 = vrot.slane %v2332_v50, 5  ;;  %v2299_v53 = vsel %vm5505_vm2, %v2294_v55, %v2298_v63  ;;  %v2326_v43 = vrot.slane %v2324_v19, 5  ;;  %v2340_v5 = vrot.slane %v2338_v28, 5  ;;  %v2586_v58 = vld [vmem:[#allocation2 + $0x8] sm:$0xe] }
 0x1ab   : > { %4898 = vmatmul.mubr.msk.bf16.vlgmr.msra.gmra.mrb[0].mxu1 %vm408_vm3, %v4383_v23  ;;  %v2321_v13 = vor.u32 %v2320_v52, %v2317_v35  ;;  %v2313_v21 = vsel %vm5505_vm2, %v2308_v3, %v2312_v36  ;;  %v4394_v62 = vcombine.low %v6070_v15, %v6123_v31  ;;  %v4395_v37 = vcombine.low %v6137_v30, %v6142_v60  ;;  %v5264_v15 = vld [vmem:[%s6582_s3 + $0x48] sm:$0xff]   ;;  %v5265_v30 = vld [vmem:[%s6582_s3 + $0x50] sm:$0xff]   ;;  %v2588_v55 = vld [vmem:[#allocation2 + $0x18] sm:$0xe] }
 0x1ac   : > { %4906 = vmatpush3.bf16.msra.mxu1 %v6062_v2  ;;  %v4384_v26 = vcombine.low %v2299_v53, %v2313_v21  ;;  %v2335_v32 = vor.u32 %v2334_v20, %v2331_v34  ;;  %v4396_v31 = vcombine.low %v6158_v42, %v6165_v17  ;;  %v2611_v40 = vrot.slane %v6078_v33, 5  ;;  %v2587_v42 = vld [vmem:[#allocation2 + $0x10] sm:$0xe]  ;;  %v2589_v35 = vld [vmem:[#allocation2 + $0x20] sm:$0xe] }
 0x1ad   : > { %4907 = vmatprep.subr.bf16.mxu1 %v5257_v14  ;;  %v2322_v24 = vrot.slane %v2321_v13, 4  ;;  %v2615_v7 = vrot.slane %v6133_v51, 5  ;;  %v4406_v27 = vrot.slane %v2585_v16, 9  ;;  %v4407_v46 = vrot.slane %v2586_v58, 9  ;;  %v2590_v51 = vld [vmem:[#allocation2 + $0x28] sm:$0xe] }
 0x1ae   : > { %4901 = vmatprep.mubr.msk.bf16.mxu1 %vm408_vm3, %v4384_v26  ;;  %v2336_v48 = vrot.slane %v2335_v32, 4  ;;  %v4397_v17 = vcombine.low %v6183_v18, %v6177_v54  ;;  %v2619_v8 = vrot.slane %v6144_v61, 5  ;;  %v4408_v12 = vrot.slane %v2587_v42, 9  ;;  %v5268_v18 = vld [vmem:[%s6582_s3 + $0x60] sm:$0xff]   ;;  %v2591_v3 = vld [vmem:[#allocation2 + $0x30] sm:$0xe] }
 0x1af   : > { %v2327_v2 = vsel %vm5505_vm2, %v2322_v24, %v2326_v43  ;;  %v2612_v60 = vsel %vm5596_vm6, %v4406_v27, %v2611_v40  ;;  %v2616_v33 = vsel %vm5596_vm6, %v4407_v46, %v2615_v7  ;;  %v4411_v52 = vrot.slane %v2590_v51, 9  ;;  %v2592_v20 = vld [vmem:[#allocation2 + $0x38] sm:$0xe]  ;;  %v2919_v26 = vld [vmem:[#allocation2 + $0x10] sm:$0xf] }
 0x1b0   : > { %4908 = vmatpush3.bf16.msra.mxu1 %v5257_v14  ;;  %v2341_v57 = vsel %vm5505_vm2, %v2336_v48, %v2340_v5  ;;  %v5267_v14 = vld [vmem:[%s6582_s3 + $0x58] sm:$0xff]   ;;  %v4422_v23 = vcombine.low %v2612_v60, %v2616_v33  ;;  %v2631_v19 = vrot.slane %v6174_v45, 5  ;;  %v2623_v34 = vrot.slane %v6154_v1, 5  ;;  %v5270_v43 = vld [vmem:[%s6582_s3 + $0x70] sm:$0xff]   ;;  %v2923_v58 = vld [vmem:[#allocation2 + $0x20] sm:$0xf] }
 0x1b1   : > { %4909 = vmatprep.subr.bf16.mxu1 %v5258_v44  ;;  %v4385_v49 = vcombine.low %v2327_v2, %v2341_v57  ;;  %v4409_v54 = vrot.slane %v2588_v55, 9  ;;  %v4410_v61 = vrot.slane %v2589_v35, 9  ;;  %v2627_v50 = vrot.slane %v6171_v47, 5  ;;  %v5269_v47 = vld [vmem:[%s6582_s3 + $0x68] sm:$0xff]   ;;  %v2921_v7 = vld [vmem:[#allocation2 + $0x18] sm:$0xf] }
 0x1b2   : > { %v2620_v63 = vsel %vm5596_vm6, %v4408_v12, %v2619_v8  ;;  %v2632_v45 = vsel %vm5596_vm6, %v4411_v52, %v2631_v19  ;;  %v4412_v53 = vrot.slane %v2591_v3, 9  ;;  %v2635_v21 = vrot.slane %v6186_v4, 5  ;;  %v2917_v2 = vld [vmem:[#allocation2 + $0x8] sm:$0xf]  ;;  %v6287_v27 = vld [vmem:[#allocation2 + $0x14] sm:$0x1] }
 0x1b3   : > { %4902 = vmatmul.mubr.msk.bf16.gmra.mrb[4].mxu1 %vm408_vm3, %v4385_v49  ;;  %v2624_v1 = vsel %vm5596_vm6, %v4409_v54, %v2623_v34  ;;  %v2628_v13 = vsel %vm5596_vm6, %v4410_v61, %v2627_v50  ;;  %v2639_v24 = vrot.slane %v6196_v39, 5  ;;  %v2948_v48 = vshrl.u32 %v2919_v26, 16  ;;  %v5272_v39 = vld [vmem:[%s6582_s3 + $0x78] sm:$0xff]   ;;  %v2925_v60 = vld [vmem:[#allocation2 + $0x28] sm:$0xf] }
 0x1b4   : > { %4910 = vmatpush3.bf16.msra.mxu1 %v5258_v44  ;;  %4913 = vmatprep.mubr.msk.bf16.mxu1 %vm408_vm3, %v4394_v62  ;;  %v4423_v36 = vcombine.low %v2620_v63, %v2624_v1  ;;  %v4424_v28 = vcombine.low %v2628_v13, %v2632_v45  ;;  %v4413_v44 = vrot.slane %v2592_v20, 9  ;;  %v2636_v32 = vsel %vm5596_vm6, %v4412_v53, %v2635_v21  ;;  %v5271_v62 = vld [vmem:[#allocation2 + $0x8] ss:$8 sps:$4 sm:$0xff]   ;;  %v5274_v8 = vld [vmem:[#allocation2 + $0x18] ss:$8 sps:$4 sm:$0xff]  }
 0x1b5   : > { %4911 = vmatprep.subr.bf16.mxu1 %v5260_v38  ;;  %v2951_v4 = vshll.u32 %v2919_v26, 16  ;;  %v2934_v57 = vshrl.u32 %v2917_v2, 16  ;;  %v2937_v49 = vshll.u32 %v2917_v2, 16  ;;  %v2976_v46 = vshrl.u32 %v2923_v58, 16  ;;  %v5275_v34 = vld [vmem:[#allocation2 + $0x28] ss:$8 sps:$4 sm:$0xff]  }
 0x1b6   : > { %v2640_v5 = vsel %vm5596_vm6, %v4413_v44, %v2639_v24  ;;  %v2965_v55 = vshll.u32 %v2921_v7, 16  ;;  %v2957_v35 = vshll.u32 %v6287_v27, 16  ;;  %v2990_v52 = vshrl.u32 %v2925_v60, 16  ;;  %v2931_v3 = vld [vmem:[#allocation2 + $0x40] sm:$0xf]  ;;  %v5277_v1 = vld [vmem:[%s6582_s3 + $0x90] sm:$0xff]  }
 0x1b7   : > { %v2953_v16 = vrot.slane %v2951_v4, 5  ;;  %v2939_v40 = vrot.slane %v2937_v49, 5  ;;  %v2993_v19 = vshll.u32 %v2925_v60, 16  ;;  %v2978_v54 = vrot.slane %v2976_v46, 4  ;;  %v2929_v44 = vld [vmem:[#allocation2 + $0x38] sm:$0xf] }
 0x1b8   : > { %4912 = vmatpush3.bf16.msra.mxu1 %v5260_v38  ;;  %v4425_v38 = vcombine.low %v2636_v32, %v2640_v5  ;;  %v2992_v53 = vrot.slane %v2990_v52, 4  ;;  %v6303_v24 = vld [vmem:[#allocation2 + $0x1c] sm:$0x1]  ;;  %v3032_v32 = vshrl.u32 %v2931_v3, 16  ;;  %v3035_v2 = vshll.u32 %v2931_v3, 16 }
 0x1b9   : > { %4921 = vmatprep.subr.bf16.mxu1 %v5261_v0  ;;  %v2995_v21 = vrot.slane %v2993_v19, 5  ;;  %v3018_v49 = vshrl.u32 %v2929_v44, 16  ;;  %v3176_v3 = vld [vmem:[#allocation2 + $0x10] sm:$0xe] }
 0x1ba   : > { %v3034_v46 = vrot.slane %v3032_v32, 4 }
 0x1bb   : > { %4914 = vmatmul.mubr.msk.bf16.vlgmr.msra.gmra.mrb[0].mxu1 %vm408_vm3, %v4395_v37  ;;  %v2927_v37 = vld [vmem:[#allocation2 + $0x30] sm:$0xf] }
 0x1bc   : > { %4922 = vmatpush3.bf16.msra.mxu1 %v5261_v0  ;;  %4917 = vmatprep.mubr.msk.bf16.mxu1 %vm408_vm3, %v4396_v31  ;;  %v2950_v0 = vrot.slane %v2948_v48, 4  ;;  %v2936_v31 = vrot.slane %v2934_v57, 4  ;;  %v3004_v42 = vshrl.u32 %v2927_v37, 16  ;;  %v3007_v51 = vshll.u32 %v2927_v37, 16  ;;  %v6310_v57 = vld [vmem:[#allocation2 + $0x2c] sm:$0x1] }
 0x1bd   : > { %4923 = vmatprep.subr.bf16.mxu1 %v5264_v15  ;;  %v2971_v37 = vshll.u32 %v6303_v24, 16  ;;  %v2999_v60 = vshll.u32 %v6310_v57, 16 }
 0x1be   : > { %v2954_v33 = vor.u32 %v2953_v16, %v2950_v0  ;;  %v2940_v12 = vor.u32 %v2939_v40, %v2936_v31  ;;  %v3006_v63 = vrot.slane %v3004_v42, 4  ;;  %v3009_v45 = vrot.slane %v3007_v51, 5  ;;  %v5278_v0 = vld [vmem:[#allocation2 + $0x38] ss:$8 sps:$4 sm:$0xff]  }
 0x1bf   : > { %v2973_v52 = vrot.slane %v2971_v37, 5  ;;  %v3177_v37 = vld [vmem:[#allocation2 + $0x18] sm:$0xe] }
 0x1c0   : > { %4924 = vmatpush3.bf16.msra.mxu1 %v5264_v15  ;;  %v5273_v15 = vld [vmem:[%s6582_s3 + $0x80] sm:$0xff]   ;;  %v2955_v50 = vrot.slane %v2954_v33, 4  ;;  %v2941_v20 = vrot.slane %v2940_v12, 4  ;;  %v3010_v5 = vor.u32 %v3009_v45, %v3006_v63 }
 0x1c1   : > { %4925 = vmatprep.subr.bf16.mxu1 %v5265_v30 }
 0x1c2   : > { %v3011_v33 = vrot.slane %v3010_v5, 4 }
 0x1c3   : > { %4918 = vmatmul.mubr.msk.bf16.gmra.mrb[4].mxu1 %vm408_vm3, %v4397_v17  ;;  %v6289_v17 = vld [vmem:[#allocation2 + $0xc] sm:$0x1] }
 0x1c4   : > { %4926 = vmatpush3.bf16.msra.mxu1 %v5265_v30  ;;  %4929 = vmatprep.mubr.msk.bf16.mxu1 %vm408_vm3, %v4422_v23  ;;  %v2979_v30 = vshll.u32 %v2923_v58, 16  ;;  %v5276_v23 = vld [vmem:[%s6582_s3 + $0x88] sm:$0xff]   ;;  %v2943_v61 = vshll.u32 %v6289_v17, 16  ;;  %v5279_v58 = vld [vmem:[%s6582_s3 + $0x98] sm:$0xff]   ;;  %v3201_v5 = vrot.slane %v6289_v17, 5 }
 0x1c5   : > { %4927 = vmatprep.subr.bf16.mxu1 %v5267_v14  ;;  %v5283_v17 = vld [vmem:[%s6582_s3 + $0xb8] sm:$0xff]  }
 0x1c6   : > { %v2945_v48 = vrot.slane %v2943_v61, 5  ;;  %v6331_v61 = vld [vmem:[#allocation2 + $0x3c] sm:$0x1] }
 0x1c8   : > { %4928 = vmatpush3.bf16.msra.mxu1 %v5267_v14  ;;  %v2962_v14 = vshrl.u32 %v2921_v7, 16  ;;  %v2946_v16 = vsel %vm5505_vm2, %v2941_v20, %v2945_v48  ;;  %v5282_v48 = vld [vmem:[%s6582_s3 + $0xb0] sm:$0xff]  }
 0x1c9   : > { %4937 = vmatprep.subr.bf16.mxu1 %v5268_v18 }
 0x1ca   : > { %v2964_v13 = vrot.slane %v2962_v14, 4  ;;  %v3020_v14 = vrot.slane %v3018_v49, 4  ;;  %v3178_v49 = vld [vmem:[#allocation2 + $0x20] sm:$0xe] }
 0x1cb   : > { %4930 = vmatmul.mubr.msk.bf16.vlgmr.msra.gmra.mrb[0].mxu1 %vm408_vm3, %v4423_v36  ;;  %v6301_v36 = vld [vmem:[#allocation2 + $0x24] sm:$0x1] }
 0x1cc   : > { %4938 = vmatpush3.bf16.msra.mxu1 %v5268_v18  ;;  %4933 = vmatprep.mubr.msk.bf16.mxu1 %vm408_vm3, %v4424_v28  ;;  %v2981_v18 = vrot.slane %v2979_v30, 5  ;;  %v2959_v28 = vrot.slane %v2957_v35, 5  ;;  %v3037_v30 = vrot.slane %v3035_v2, 5  ;;  %v6325_v35 = vld [vmem:[#allocation2 + $0x44] sm:$0x1] }
 0x1cd   : > { %4939 = vmatprep.subr.bf16.mxu1 %v5269_v47  ;;  %v3041_v45 = vshll.u32 %v6325_v35, 16 }
 0x1ce   : > { %v2982_v26 = vor.u32 %v2981_v18, %v2978_v54  ;;  %v2960_v4 = vsel %vm5505_vm2, %v2955_v50, %v2959_v28  ;;  %v3001_v54 = vrot.slane %v2999_v60, 5  ;;  %v3027_v28 = vshll.u32 %v6331_v61, 16 }
 0x1cf   : > { %v4462_v40 = vcombine.low %v2946_v16, %v2960_v4  ;;  %v3043_v2 = vrot.slane %v3041_v45, 5  ;;  %v4476_v60 = vrot.slane %v3177_v37, 9 }
 0x1d0   : > { %4940 = vmatpush3.bf16.msra.mxu1 %v5269_v47  ;;  %v2967_v47 = vrot.slane %v2965_v55, 5  ;;  %v2983_v7 = vrot.slane %v2982_v26, 4  ;;  %v3205_v26 = vrot.slane %v6287_v27, 5 }
 0x1d1   : > { %4941 = vmatprep.subr.bf16.mxu1 %v5270_v43 }
 0x1d3   : > { %4934 = vmatmul.mubr.msk.bf16.gmra.mrb[4].mxu1 %vm408_vm3, %v4425_v38  ;;  %v2968_v38 = vor.u32 %v2967_v47, %v2964_v13  ;;  %v5281_v47 = vld [vmem:[%s6582_s3 + $0xa8] sm:$0xff]  }
 0x1d4   : > { %4942 = vmatpush3.bf16.msra.mxu1 %v5270_v43  ;;  %4945 = vmatprep.mubr.msk.bf16.mxu1 %vm408_vm3, %v5271_v62  ;;  %v6305_v43 = vld [vmem:[#allocation2 + $0x34] sm:$0x1]  ;;  %v3021_v62 = vshll.u32 %v2929_v44, 16  ;;  %v4475_v44 = vrot.slane %v3176_v3, 9  ;;  %v3510_v3 = vld [vmem:[#allocation2 + $0x18] sm:$0xf] }
 0x1d5   : > { %4943 = vmatprep.subr.bf16.mxu1 %v5272_v39  ;;  %v3013_v31 = vshll.u32 %v6305_v43, 16  ;;  %v2969_v42 = vrot.slane %v2968_v38, 4  ;;  %v3029_v38 = vrot.slane %v3027_v28, 5  ;;  %v3542_v28 = vshll.u32 %v3510_v3, 16 }
 0x1d6   : > { %v3023_v55 = vrot.slane %v3021_v62, 5  ;;  %v3206_v27 = vsel %vm5596_vm6, %v4475_v44, %v3205_v26  ;;  %v3514_v26 = vld [vmem:[#allocation2 + $0x28] sm:$0xf] }
 0x1d7   : > { %v3015_v12 = vrot.slane %v3013_v31, 5  ;;  %v2974_v50 = vsel %vm5505_vm2, %v2969_v42, %v2973_v52  ;;  %v4477_v31 = vrot.slane %v3178_v49, 9  ;;  %v5284_v42 = vld [vmem:[%s6582_s3 + $0xc0] sm:$0xff]   ;;  %v3518_v49 = vld [vmem:[#allocation2 + $0x38] sm:$0xf] }
 0x1d8   : > { %4944 = vmatpush3.bf16.msra.mxu1 %v5272_v39  ;;  %v2985_v39 = vshll.u32 %v6301_v36, 16  ;;  %v3024_v63 = vor.u32 %v3023_v55, %v3020_v14  ;;  %v3182_v55 = vld [vmem:[#allocation2 + $0x40] sm:$0xe] }
 0x1d9   : > { %4953 = vmatprep.subr.bf16.mxu1 %v5273_v15  ;;  %v3016_v18 = vsel %vm5505_vm2, %v3011_v33, %v3015_v12  ;;  %v3209_v33 = vrot.slane %v6303_v24, 5  ;;  %v3181_v12 = vld [vmem:[#allocation2 + $0x38] sm:$0xe] }
 0x1da   : > { %v2987_v51 = vrot.slane %v2985_v39, 5  ;;  %v3025_v32 = vrot.slane %v3024_v63, 4  ;;  %v5286_v63 = vld [vmem:[%s6582_s3 + $0xd0] sm:$0xff]  }
 0x1db   : > { %4946 = vmatmul.mubr.msk.bf16.vlgmr.msra.gmra.mrb[0].mxu1 %vm408_vm3, %v5274_v8  ;;  %v5280_v8 = vld [vmem:[%s6582_s3 + $0xa0] sm:$0xff]  }
 0x1dc   : > { %4954 = vmatpush3.bf16.msra.mxu1 %v5273_v15  ;;  %4949 = vmatprep.mubr.msk.bf16.mxu1 %vm408_vm3, %v5275_v34  ;;  %v2996_v15 = vor.u32 %v2995_v21, %v2992_v53  ;;  %v2988_v19 = vsel %vm5505_vm2, %v2983_v7, %v2987_v51  ;;  %v3038_v34 = vor.u32 %v3037_v30, %v3034_v46  ;;  %v3175_v21 = vld [vmem:[#allocation2 + $0x8] sm:$0xe]  ;;  %v3221_v30 = vrot.slane %v6305_v43, 5 }
 0x1dd   : > { %4955 = vmatprep.subr.bf16.mxu1 %v5276_v23  ;;  %v4474_v4 = vrot.slane %v3175_v21, 9  ;;  %v3030_v62 = vsel %vm5505_vm2, %v3025_v32, %v3029_v38  ;;  %v3179_v7 = vld [vmem:[#allocation2 + $0x28] sm:$0xe]  ;;  %v3516_v32 = vld [vmem:[#allocation2 + $0x30] sm:$0xf] }
 0x1de   : > { %v3039_v53 = vrot.slane %v3038_v34, 4  ;;  %v4478_v51 = vrot.slane %v3179_v7, 9  ;;  %v3229_v34 = vrot.slane %v6325_v35, 5  ;;  %v6399_v38 = vld [vmem:[#allocation2 + $0x14] sm:$0x1] }
 0x1df   : > { %v3534_v7 = vshll.u32 %v6399_v38, 16 }
 0x1e0   : > { %4956 = vmatpush3.bf16.msra.mxu1 %v5276_v23  ;;  %v2997_v23 = vrot.slane %v2996_v15, 4  ;;  %v3044_v39 = vsel %vm5505_vm2, %v3039_v53, %v3043_v2  ;;  %v5287_v53 = vld [vmem:[#allocation2 + $0x10] ss:$8 sps:$4 sm:$0xff]   ;;  %v5289_v2 = vld [vmem:[%s6582_s3 + $0xe0] sm:$0xff]  }
 0x1e1   : > { %4957 = vmatprep.subr.bf16.mxu1 %v5277_v1  ;;  %v4465_v16 = vcombine.low %v3030_v62, %v3044_v39  ;;  %v3567_v39 = vshrl.u32 %v3514_v26, 16 }
 0x1e2   : > { %v3002_v13 = vsel %vm5505_vm2, %v2997_v23, %v3001_v54  ;;  %v4480_v54 = vrot.slane %v3181_v12, 9 }
 0x1e3   : > { %4950 = vmatmul.mubr.msk.bf16.gmra.mrb[4].mxu1 %vm408_vm3, %v5278_v0  ;;  %v4464_v20 = vcombine.low %v3002_v13, %v3016_v18  ;;  %v3180_v0 = vld [vmem:[#allocation2 + $0x30] sm:$0xe]  ;;  %v3225_v18 = vrot.slane %v6331_v61, 5  ;;  %v5288_v61 = vld [vmem:[%s6582_s3 + $0xd8] sm:$0xff]  }
 0x1e4   : > { %4958 = vmatpush3.bf16.msra.mxu1 %v5277_v1  ;;  %4961 = vmatprep.mubr.msk.bf16.mxu1 %vm408_vm3, %v4462_v40  ;;  %v4463_v1 = vcombine.low %v2974_v50, %v2988_v19  ;;  %v3213_v40 = vrot.slane %v6301_v36, 5  ;;  %v4479_v46 = vrot.slane %v3180_v0, 9  ;;  %v3217_v36 = vrot.slane %v6310_v57, 5  ;;  %v5285_v57 = vld [vmem:[%s6582_s3 + $0xc8] sm:$0xff]   ;;  %v3508_v50 = vld [vmem:[#allocation2 + $0x10] sm:$0xf] }
 0x1e5   : > { %4959 = vmatprep.subr.bf16.mxu1 %v5279_v58  ;;  %v4481_v19 = vrot.slane %v3182_v55, 9  ;;  %v3528_v35 = vshll.u32 %v3508_v50, 16  ;;  %v3226_v13 = vsel %vm5596_vm6, %v4480_v54, %v3225_v18  ;;  %v3581_v0 = vshrl.u32 %v3516_v32, 16  ;;  %v6413_v54 = vld [vmem:[#allocation2 + $0x2c] sm:$0x1] }
 0x1e6   : > { %v3214_v14 = vsel %vm5596_vm6, %v4477_v31, %v3213_v40  ;;  %v3222_v43 = vsel %vm5596_vm6, %v4479_v46, %v3221_v30  ;;  %v3218_v23 = vsel %vm5596_vm6, %v4478_v51, %v3217_v36  ;;  %v5290_v31 = vld [vmem:[#allocation2 + $0x20] ss:$8 sps:$4 sm:$0xff]   ;;  %v3595_v30 = vshrl.u32 %v3518_v49, 16 }
 0x1e7   : > { %v4492_v52 = vcombine.low %v3218_v23, %v3222_v43  ;;  %v3230_v45 = vsel %vm5596_vm6, %v4481_v19, %v3229_v34  ;;  %v3530_v44 = vrot.slane %v3528_v35, 5  ;;  %v5292_v40 = vld [vmem:[%s6582_s3 + $0xe8] sm:$0xff]   ;;  %v3583_v43 = vrot.slane %v3581_v0, 4 }
 0x1e8   : > { %4960 = vmatpush3.bf16.msra.mxu1 %v5279_v58  ;;  %v3202_v58 = vsel %vm5596_vm6, %v4474_v4, %v3201_v5  ;;  %v3544_v4 = vrot.slane %v3542_v28, 5  ;;  %v3512_v5 = vld [vmem:[#allocation2 + $0x20] sm:$0xf]  ;;  %v3536_v19 = vrot.slane %v3534_v7, 5  ;;  %v3597_v18 = vrot.slane %v3595_v30, 4 }
 0x1e9   : > { %4969 = vmatprep.subr.bf16.mxu1 %v5280_v8  ;;  %v4490_v15 = vcombine.low %v3202_v58, %v3206_v27  ;;  %v3570_v27 = vshll.u32 %v3514_v26, 16  ;;  %v6401_v58 = vld [vmem:[#allocation2 + $0x1c] sm:$0x1]  ;;  %v3556_v37 = vshll.u32 %v3512_v5, 16  ;;  %v3576_v28 = vshll.u32 %v6413_v54, 16 }
 0x1ea   : > { %v5294_v26 = vld [vmem:[#allocation2 + $0x40] ss:$8 sps:$4 sm:$0xff]   ;;  %v3804_v29 = vrot.slane %v6413_v54, 5 }
 0x1eb   : > { %4962 = vmatmul.mubr.msk.bf16.vlgmr.msra.gmra.mrb[0].mxu1 %vm408_vm3, %v4463_v1  ;;  %v3525_v1 = vshrl.u32 %v3508_v50, 16  ;;  %v3572_v51 = vrot.slane %v3570_v27, 5  ;;  %v3773_v54 = vld [vmem:[#allocation2 + $0x48] sm:$0xe] }
 0x1ec   : > { %4970 = vmatpush3.bf16.msra.mxu1 %v5280_v8  ;;  %4965 = vmatprep.mubr.msk.bf16.mxu1 %vm408_vm3, %v4464_v20  ;;  %v3210_v8 = vsel %vm5596_vm6, %v4476_v60, %v3209_v33  ;;  %v3539_v20 = vshrl.u32 %v3510_v3, 16  ;;  %v3598_v60 = vshll.u32 %v3518_v49, 16  ;;  %v5291_v33 = vld [vmem:[#allocation2 + $0x30] ss:$8 sps:$4 sm:$0xff]   ;;  %v6417_v3 = vld [vmem:[#allocation2 + $0x34] sm:$0x1] }
 0x1ed   : > { %4971 = vmatprep.subr.bf16.mxu1 %v5281_v47  ;;  %v4491_v24 = vcombine.low %v3210_v8, %v3214_v14  ;;  %v3527_v21 = vrot.slane %v3525_v1, 4  ;;  %v3548_v14 = vshll.u32 %v6401_v58, 16  ;;  %v3520_v8 = vld [vmem:[#allocation2 + $0x40] sm:$0xf] }
 0x1ee   : > { %v3600_v50 = vrot.slane %v3598_v60, 5  ;;  %v3609_v1 = vshrl.u32 %v3520_v8, 16  ;;  %v3612_v35 = vshll.u32 %v3520_v8, 16  ;;  %v3766_v8 = vld [vmem:[#allocation2 + $0x10] sm:$0xe] }
 0x1ef   : > { %v3531_v62 = vor.u32 %v3530_v44, %v3527_v21 }
 0x1f0   : > { %4972 = vmatpush3.bf16.msra.mxu1 %v5281_v47  ;;  %v4493_v47 = vcombine.low %v3226_v13, %v3230_v45  ;;  %v3611_v49 = vrot.slane %v3609_v1, 4 }
 0x1f1   : > { %4973 = vmatprep.subr.bf16.mxu1 %v5282_v48  ;;  %v3532_v36 = vrot.slane %v3531_v62, 4  ;;  %v3614_v62 = vrot.slane %v3612_v35, 5  ;;  %v5298_v35 = vld [vmem:[%s6582_s3 + $0x110] sm:$0xff]  }
 0x1f3   : > { %4966 = vmatmul.mubr.msk.bf16.gmra.mrb[4].mxu1 %vm408_vm3, %v4465_v16  ;;  %v3584_v16 = vshll.u32 %v3516_v32, 16  ;;  %v3537_v13 = vsel %vm5505_vm2, %v3532_v36, %v3536_v19 }
 0x1f4   : > { %4974 = vmatpush3.bf16.msra.mxu1 %v5282_v48  ;;  %4977 = vmatprep.mubr.msk.bf16.mxu1 %vm408_vm3, %v4490_v15  ;;  %v3541_v48 = vrot.slane %v3539_v20, 4  ;;  %v3522_v15 = vld [vmem:[#allocation2 + $0x48] sm:$0xf] }
 0x1f5   : > { %4975 = vmatprep.subr.bf16.mxu1 %v5283_v17  ;;  %v3586_v55 = vrot.slane %v3584_v16, 5  ;;  %v3623_v12 = vshrl.u32 %v3522_v15, 16 }
 0x1f6   : > { %v3545_v46 = vor.u32 %v3544_v4, %v3541_v48  ;;  %v3590_v4 = vshll.u32 %v6417_v3, 16 }
 0x1f7   : > { %v3625_v21 = vrot.slane %v3623_v12, 4 }
 0x1f8   : > { %4976 = vmatpush3.bf16.msra.mxu1 %v5283_v17  ;;  %v3553_v17 = vshrl.u32 %v3512_v5, 16  ;;  %v3546_v34 = vrot.slane %v3545_v46, 4  ;;  %v3601_v5 = vor.u32 %v3600_v50, %v3597_v18  ;;  %v6439_v46 = vld [vmem:[#allocation2 + $0x44] sm:$0x1]  ;;  %v3767_v18 = vld [vmem:[#allocation2 + $0x18] sm:$0xe] }
 0x1f9   : > { %4985 = vmatprep.subr.bf16.mxu1 %v5284_v42  ;;  %v4542_v50 = vrot.slane %v3766_v8, 9  ;;  %v2012_v8 = vunpack.c.l.bf16 %v5741_v10 }
 0x1fa   : > { %v3555_v23 = vrot.slane %v3553_v17, 4  ;;  %v3602_v7 = vrot.slane %v3601_v5, 4 }
 0x1fb   : > { %4978 = vmatmul.mubr.msk.bf16.vlgmr.msra.gmra.mrb[0].mxu1 %vm408_vm3, %v4491_v24  ;;  %v5293_v24 = vld [vmem:[%s6582_s3 + $0xf0] sm:$0xff]  }
 0x1fc   : > { %4986 = vmatpush3.bf16.msra.mxu1 %v5284_v42  ;;  %4981 = vmatprep.mubr.msk.bf16.mxu1 %vm408_vm3, %v4492_v52  ;;  %v3569_v42 = vrot.slane %v3567_v39, 4  ;;  %v3626_v52 = vshll.u32 %v3522_v15, 16  ;;  %v6434_v15 = vld [vmem:[#allocation2 + $0x4c] sm:$0x1] }
 0x1fd   : > { %4987 = vmatprep.subr.bf16.mxu1 %v5285_v57 }
 0x1fe   : > { %v3573_v45 = vor.u32 %v3572_v51, %v3569_v42  ;;  %v3628_v44 = vrot.slane %v3626_v52, 5  ;;  %v3615_v42 = vor.u32 %v3614_v62, %v3611_v49  ;;  %v3632_v51 = vshll.u32 %v6434_v15, 16 }
 0x200   : > { %4988 = vmatpush3.bf16.msra.mxu1 %v5285_v57  ;;  %v3558_v57 = vrot.slane %v3556_v37, 5  ;;  %v3574_v27 = vrot.slane %v3573_v45, 4  ;;  %v3578_v37 = vrot.slane %v3576_v28, 5  ;;  %v3629_v30 = vor.u32 %v3628_v44, %v3625_v21  ;;  %v3769_v28 = vld [vmem:[#allocation2 + $0x28] sm:$0xe] }
 0x201   : > { %4989 = vmatprep.subr.bf16.mxu1 %v5286_v63  ;;  %v3616_v52 = vrot.slane %v3615_v42, 4  ;;  %v3792_v45 = vrot.slane %v6399_v38, 5  ;;  %v3770_v21 = vld [vmem:[#allocation2 + $0x30] sm:$0xe] }
 0x202   : > { %v3559_v20 = vor.u32 %v3558_v57, %v3555_v23  ;;  %v5297_v57 = vld [vmem:[%s6582_s3 + $0x108] sm:$0xff]   ;;  %v3630_v19 = vrot.slane %v3629_v30, 4  ;;  %v4546_v5 = vrot.slane %v3770_v21, 9  ;;  %v3816_v30 = vrot.slane %v6439_v46, 5 }
 0x203   : > { %4982 = vmatmul.mubr.msk.bf16.gmra.mrb[4].mxu1 %vm408_vm3, %v4493_v47  ;;  %v3550_v47 = vrot.slane %v3548_v14, 5  ;;  %v3793_v38 = vsel %vm5596_vm6, %v4542_v50, %v3792_v45 }
 0x204   : > { %4990 = vmatpush3.bf16.msra.mxu1 %v5286_v63  ;;  %4993 = vmatprep.mubr.msk.bf16.mxu1 %vm408_vm3, %v5287_v53  ;;  %v6415_v63 = vld [vmem:[#allocation2 + $0x24] sm:$0x1]  ;;  %v6422_v53 = vld [vmem:[#allocation2 + $0x3c] sm:$0x1]  ;;  %v3560_v17 = vrot.slane %v3559_v20, 4 }
 0x205   : > { %4991 = vmatprep.subr.bf16.mxu1 %v5288_v61  ;;  %v3551_v32 = vsel %vm5505_vm2, %v3546_v34, %v3550_v47  ;;  %v3562_v48 = vshll.u32 %v6415_v63, 16  ;;  %v3604_v16 = vshll.u32 %v6422_v53, 16  ;;  %v3634_v34 = vrot.slane %v3632_v51, 5 }
 0x206   : > { %v4530_v39 = vcombine.low %v3537_v13, %v3551_v32  ;;  %v4543_v13 = vrot.slane %v3767_v18, 9  ;;  %v3796_v47 = vrot.slane %v6401_v58, 5  ;;  %v5299_v58 = vld [vmem:[%s6582_s3 + $0x118] sm:$0xff]   ;;  %v3768_v32 = vld [vmem:[#allocation2 + $0x20] sm:$0xe]  ;;  %v3800_v49 = vrot.slane %v6415_v63, 5 }
 0x207   : > { %v3564_v60 = vrot.slane %v3562_v48, 5  ;;  %v3606_v14 = vrot.slane %v3604_v16, 5  ;;  %v3635_v20 = vsel %vm5505_vm2, %v3630_v19, %v3634_v34  ;;  %v4545_v48 = vrot.slane %v3769_v28, 9 }
 0x208   : > { %4992 = vmatpush3.bf16.msra.mxu1 %v5288_v61  ;;  %v3587_v61 = vor.u32 %v3586_v55, %v3583_v43  ;;  %v3618_v55 = vshll.u32 %v6439_v46, 16  ;;  %v4570_v46 = vld [vmem:[%s6583_s4] ss:$0 sm:$0xff]  ;;  %v2016_v28 = vunpack.c.l.bf16 %v5808_v59 }
 0x209   : > { %5001 = vmatprep.subr.bf16.mxu1 %v5289_v2  ;;  %v3565_v43 = vsel %vm5505_vm2, %v3560_v17, %v3564_v60  ;;  %v3607_v23 = vsel %vm5505_vm2, %v3602_v7, %v3606_v14  ;;  %v3805_v16 = vsel %vm5596_vm6, %v4545_v48, %v3804_v29  ;;  %v3820_v60 = vrot.slane %v6434_v15, 5 }
 0x20a   : > { %v3588_v0 = vrot.slane %v3587_v61, 4  ;;  %v3620_v1 = vrot.slane %v3618_v55, 5  ;;  %v2011_v15 = vunpack.c.l.bf16 %v5737_v9  ;;  %v2009_v14 = vunpack.c.l.bf16 %v5706_v41 }
 0x20b   : > { %4994 = vmatmul.mubr.msk.bf16.vlgmr.msra.gmra.mrb[0].mxu1 %vm408_vm3, %v5290_v31  ;;  %v5296_v31 = vld [vmem:[%s6582_s3 + $0x100] sm:$0xff]  }
 0x20c   : > { %5002 = vmatpush3.bf16.msra.mxu1 %v5289_v2  ;;  %4997 = vmatprep.mubr.msk.bf16.mxu1 %vm408_vm3, %v5291_v33  ;;  %v5295_v2 = vld [vmem:[%s6582_s3 + $0xf8] sm:$0xff]   ;;  %v3579_v33 = vsel %vm5505_vm2, %v3574_v27, %v3578_v37  ;;  %v3621_v61 = vsel %vm5505_vm2, %v3616_v52, %v3620_v1  ;;  %v4544_v27 = vrot.slane %v3768_v32, 9  ;;  %v3772_v37 = vld [vmem:[#allocation2 + $0x40] sm:$0xe] }
 0x20d   : > { %5003 = vmatprep.subr.bf16.mxu1 %v5292_v40  ;;  %v4533_v44 = vcombine.low %v3621_v61, %v3635_v20 }
 0x210   : > { %5004 = vmatpush3.bf16.msra.mxu1 %v5292_v40  ;;  %v3592_v40 = vrot.slane %v3590_v4, 5  ;;  %v3771_v4 = vld [vmem:[#allocation2 + $0x38] sm:$0xe] }
 0x211   : > { %5005 = vmatprep.subr.bf16.mxu1 %v5293_v24  ;;  %v4547_v62 = vrot.slane %v3771_v4, 9 }
 0x212   : > { %v3593_v36 = vsel %vm5505_vm2, %v3588_v0, %v3592_v40  ;;  %v3812_v0 = vrot.slane %v6422_v53, 5  ;;  %v4549_v40 = vrot.slane %v3773_v54, 9  ;;  %v4548_v53 = vrot.slane %v3772_v37, 9 }
 0x213   : > { %4998 = vmatmul.mubr.msk.bf16.gmra.mrb[4].mxu1 %vm408_vm3, %v5294_v26  ;;  %v4532_v12 = vcombine.low %v3593_v36, %v3607_v23  ;;  %v3797_v26 = vsel %vm5596_vm6, %v4543_v13, %v3796_v47  ;;  %v2010_v23 = vunpack.c.l.bf16 %v5716_v25  ;;  %v2013_v25 = vunpack.c.l.bf16 %v5745_v11 }
 0x214   : > { %5006 = vmatpush3.bf16.msra.mxu1 %v5293_v24  ;;  %5009 = vmatprep.mubr.msk.bf16.mxu1 %vm408_vm3, %v4530_v39  ;;  %v4531_v24 = vcombine.low %v3565_v43, %v3579_v33  ;;  %v3808_v39 = vrot.slane %v6417_v3, 5  ;;  %v3801_v3 = vsel %vm5596_vm6, %v4544_v27, %v3800_v49  ;;  %v3813_v63 = vsel %vm5596_vm6, %v4547_v62, %v3812_v0 }
 0x215   : > { %5007 = vmatprep.subr.bf16.mxu1 %v5295_v2  ;;  %v3817_v33 = vsel %vm5596_vm6, %v4548_v53, %v3816_v30  ;;  %v3821_v42 = vsel %vm5596_vm6, %v4549_v40, %v3820_v60 }
 0x216   : > { %v3809_v17 = vsel %vm5596_vm6, %v4546_v5, %v3808_v39  ;;  %v4561_v51 = vcombine.low %v3817_v33, %v3821_v42 }
 0x217   : > { %v4560_v7 = vcombine.low %v3809_v17, %v3813_v63 }
 0x218   : > { %5008 = vmatpush3.bf16.msra.mxu1 %v5295_v2  ;;  %v4558_v2 = vcombine.low %v3793_v38, %v3797_v26 }
 0x219   : > { %5017 = vmatprep.subr.bf16.mxu1 %v5296_v31 }
 0x21b   : > { %5010 = vmatmul.mubr.msk.bf16.vlgmr.msra.gmra.mrb[0].mxu1 %vm408_vm3, %v4531_v24 }
 0x21c   : > { %5018 = vmatpush3.bf16.msra.mxu1 %v5296_v31  ;;  %5013 = vmatprep.mubr.msk.bf16.mxu1 %vm408_vm3, %v4532_v12  ;;  %v4559_v31 = vcombine.low %v3801_v3, %v3805_v16 }
 0x21d   : > { %5019 = vmatprep.subr.bf16.mxu1 %v5297_v57 }
 0x220   : > { %5020 = vmatpush3.bf16.msra.mxu1 %v5297_v57 }
 0x221   : > { %5021 = vmatprep.subr.bf16.mxu1 %v5298_v35 }
 0x223   : > { %5014 = vmatmul.mubr.msk.bf16.gmra.mrb[4].mxu1 %vm408_vm3, %v4533_v44  ;;  %v2014_v44 = vunpack.c.l.bf16 %v5754_v22 }
 0x224   : > { %5022 = vmatpush3.bf16.msra.mxu1 %v5298_v35  ;;  %5025 = vmatprep.mubr.msk.bf16.mxu1 %vm408_vm3, %v4558_v2  ;;  %v2015_v35 = vunpack.c.l.bf16 %v5804_v56 }
 0x225   : > { %5023 = vmatprep.subr.bf16.mxu1 %v5299_v58 }
 0x228   : > { %5024 = vmatpush3.bf16.msra.mxu1 %v5299_v58 }
 0x22b   : > { %5026 = vmatmul.mubr.msk.bf16.vlgmr.msra.gmra.mrb[0].mxu1 %vm408_vm3, %v4559_v31 }
 0x22c   : > { %5029 = vmatprep.mubr.msk.bf16.mxu1 %vm408_vm3, %v4560_v7 }
 0x233   : > { %5030 = vmatmul.mubr.msk.bf16.gmra.mrb[4].mxu1 %vm408_vm3, %v4561_v51 }
 0x2fe   : > { %v5027_v36 = vpop.f32.mrb[0].mxu1 }
 0x2ff   : > { %v3961_v43 = vadd.f32 %v5027_v36, %v4570_v46  ;;  %v3913_v55 = vpop.f32.mrb[1].mxu1 }
 0x300   : > { %v3959_v24 = vadd.f32 %v4570_v46, %v3913_v55  ;;  %v5028_v6 = vpop.f32.mrb[2].mxu1 }
 0x301   : > { %v3969_v57 = vadd.f32 %v3961_v43, %v2011_v15  ;;  %v3962_v12 = vadd.f32 %v5028_v6, %v4570_v46  ;;  %v3916_v52 = vpop.f32.mrb[3].mxu1 }
 0x302   : > { %v3967_v19 = vadd.f32 %v3959_v24, %v2009_v14  ;;  %v3960_v34 = vadd.f32 %v4570_v46, %v3916_v52 }
 0x303   : > { %v3977_v9 = vmax.f32 %v3969_v57, 0.0  ;;  %v3970_v18 = vadd.f32 %v3962_v12, %v2012_v8 }
 0x304   : > { %v3975_v50 = vmax.f32 %v3967_v19, 0.0  ;;  %v3968_v45 = vadd.f32 %v3960_v34, %v2010_v23 }
 0x305   : > { %v4594_v41 = vpack.c.bf16 %v3977_v9, %v3977_v9  ;;  %v3978_v1 = vmax.f32 %v3970_v18, 0.0 }
 0x306   : > { %v4592_v10 = vpack.c.bf16 %v3975_v50, %v3975_v50  ;;  %v3976_v13 = vmax.f32 %v3968_v45, 0.0  ;;  %v5031_v47 = vpop.f32.mrb[4].mxu1 }
 0x307   : > { %4017 = vst.msk [vmem:[%s6507_s26 + $0x8] sm:$0xf] %vm2017_vm7, %v4594_v41  ;;  %v4595_v61 = vpack.c.bf16 %v3978_v1, %v3978_v1  ;;  %v3965_v20 = vadd.f32 %v5031_v47, %v4570_v46  ;;  %v3929_v38 = vpop.f32.mrb[5].mxu1 }
 0x308   : > { %4015 = vst.msk [vmem:[%s6507_s26] sm:$0xf] %vm2017_vm7, %v4592_v10  ;;  %v4593_v56 = vpack.c.bf16 %v3976_v13, %v3976_v13  ;;  %v3963_v21 = vadd.f32 %v4570_v46, %v3929_v38  ;;  %v5032_v11 = vpop.f32.mrb[6].mxu1 }
 0x309   : > { %4018 = vst.msk [vmem:[%s6507_s26 + $0xc] sm:$0xf] %vm2017_vm7, %v4595_v61  ;;  %v3973_v26 = vadd.f32 %v3965_v20, %v2015_v35  ;;  %v3966_v58 = vadd.f32 %v5032_v11, %v4570_v46  ;;  %v3932_v32 = vpop.f32.mrb[7].mxu1 }
 0x30a   : > { %4016 = vst.msk [vmem:[%s6507_s26 + $0x4] sm:$0xf] %vm2017_vm7, %v4593_v56  ;;  %v3971_v2 = vadd.f32 %v3963_v21, %v2013_v25  ;;  %v3964_v59 = vadd.f32 %v4570_v46, %v3932_v32 }
 0x30b   : > { %v3981_v48 = vmax.f32 %v3973_v26, 0.0  ;;  %v3974_v29 = vadd.f32 %v3966_v58, %v2016_v28 }
 0x30c   : > { %v3979_v4 = vmax.f32 %v3971_v2, 0.0  ;;  %v3972_v5 = vadd.f32 %v3964_v59, %v2014_v44 }
 0x30d   : > { %v4598_v22 = vpack.c.bf16 %v3981_v48, %v3981_v48  ;;  %v3982_v39 = vmax.f32 %v3974_v29, 0.0 }
 0x30e   : > { %v4596_v27 = vpack.c.bf16 %v3979_v4, %v3979_v4  ;;  %v3980_v49 = vmax.f32 %v3972_v5, 0.0 }
 0x30f   : > { %4021 = vst.msk [vmem:[%s6507_s26 + $0x18] sm:$0xf] %vm2017_vm7, %v4598_v22  ;;  %v4599_v62 = vpack.c.bf16 %v3982_v39, %v3982_v39 }
 0x310   : > { %4019 = vst.msk [vmem:[%s6507_s26 + $0x10] sm:$0xf] %vm2017_vm7, %v4596_v27  ;;  %v4597_v0 = vpack.c.bf16 %v3980_v49, %v3980_v49 }
 0x311   : > { %4022 = vst.msk [vmem:[%s6507_s26 + $0x1c] sm:$0xf] %vm2017_vm7, %v4599_v62 }
 0x312   : > { %4020 = vst.msk [vmem:[%s6507_s26 + $0x14] sm:$0xf] %vm2017_vm7, %v4597_v0 }
 0x313   : > { %5313 = shalt.err (!%p5310_p3)
}
 0x314   : > { %s5314_s13 = scalar_lea.hbm %s6526_s8, 512  ;;  %s5318_s16 = scalar_lea.hbm %s6584_s5, 1024 }
 0x315   : > { %p5315_p4 = scmp.ne.s32.totalorder %s6526_s8, %s5314_s13  ;;  %p5319_p9 = scmp.lt.u32.totalorder %s6526_s8, %s6584_s5 }
 0x316   : > { %p5320_p10 = scmp.lt.u32.totalorder %s5318_s16, %s5314_s13  ;;  %p5322_p12 = scmp.lt.u32.totalorder %s5314_s13, %s6526_s8 }
 0x317   : > { %p5316_p7 = pnand %p5315_p4, %p5436_p5 }
 0x318   : > { %p5321_p11 = por %p5320_p10, %p5319_p9 }
 0x319   : > { %p5317_p8 = pneg %p5316_p7 }
 0x31a   : > { %p5323_p13 = por %p5322_p12, %p5321_p11 }
 0x31c   : > { %p5324_p0 = pnand %p5323_p13, %p5317_p8 }
 0x31e   : > { %5327 = shalt.err (!%p5324_p0)
}
 0x31f   : > { %s5366_s26 = smov 64   ;;  %s5367_s30 = smov 4  }
 0x320   : > { %5162 = dma.vmem_to_hbm [thread:$0]  (%p5436_p5), %s6528_s17, 512, %s6526_s8, %s6538_s22, %s5366_s26, %s5366_s26, %s5367_s30  }
 0x321 PF: > { %p5168_p1 = scmp.ge.s32.totalorder %s5362_s21, 2  ;;  %s4052_s6 = sand.u32 1, %s5350_s18  }
 0x322   : > { %s4053_s7 = scalar_lea.sflag [#allocation4], %s4052_s6 }
 0x323   : > { %p5165_p2 = pnand %p5168_p1, %p5440_p6 }
 0x325   : > { %5345 = dma.done.wait (!%p5165_p2), %s4053_s7, 512  }
 0x326   : > { %5347 = vsyncadd (!%p5165_p2), %s4053_s7, 4294966784  ;;  %p15_p3 = scmp.ge.s32.totalorder %s5423_s24, 4   ;;  %s6595_s18 = smov %s5354_s19 }
 0x327   : > { %s6596_s19 = smov %s5358_s20  ;;  %s6597_s20 = smov %s5434_s27 }
 0x328   : > { %s6598_s21 = smov %s5423_s24  ;;  %17 = sbr.rel (!%p15_p3) target bundleno = 3 (0x3), region = 95 }
 0x32f   :  { %4058 = vsyncpa [#allocation4], 1 }
 0x330   :  { %4060 = vsyncpa [#allocation4 + $0x1], 1 }

</bundles_post_ra>
